<compile_context>
chip_gen: v5e
topology: v5e:2x2
jax: 0.10.0
libtpu: 0.0.40
codegen_flags: <defaults>
</compile_context>

<pallas_src>
import functools

import jax
import jax.numpy as jnp
from jax.experimental import pallas as pl
from jax.experimental.pallas import tpu as pltpu

NERF_DIM = 256
GAN_DIM = 512
HID = 256
SHAPE_DIM = 100
EXP_DIM = 50
ALBEDO_DIM = 50
LIT_DIM = 27
CODE_DIM = SHAPE_DIM + EXP_DIM + ALBEDO_DIM + LIT_DIM   # 227
OUT_PAD = 256                                            # lane-dense padded output width

# Column offsets of each code inside the padded (B, 256) output slab.
CODE_OFFSETS = {
    "shapecode": (0, SHAPE_DIM),
    "expcode": (SHAPE_DIM, SHAPE_DIM + EXP_DIM),
    "albedocode": (SHAPE_DIM + EXP_DIM, SHAPE_DIM + EXP_DIM + ALBEDO_DIM),
    "litcode": (SHAPE_DIM + EXP_DIM + ALBEDO_DIM, CODE_DIM),
}


def _round_up(x, m):
  return ((x + m - 1) // m) * m


def _bf16_dot(h, w):
  # bf16 x bf16 MXU matmul with f32 accumulation (native on v5e/v6e/v7x).
  return jnp.dot(h.astype(jnp.bfloat16), w.astype(jnp.bfloat16),
                 preferred_element_type=jnp.float32)


# -----------------------------------------------------------------------------
# Pallas kernel: one batch tile per grid step; all weights VMEM-resident.
# -----------------------------------------------------------------------------
def _latent2code_kernel(
    sl_ref, al_ref,                      # (TB, 256) / (TB, 512) latents (f32 or bf16)
    w0a, w0b, b0,                        # trunk layer 0 (split over the concat axis)
    w1, b1, w2, b2,                      # trunk layers 1, 2
    wh0, bh0,                            # fused head first layers  (256 -> 1024)
    wh1, bh1,                            # fused head second layers (1024 -> 256 padded)
    out_ref,                             # (TB, 256) padded codes, f32
):
  def mm(h_bf16, w_ref):
    # Operands are already bf16; accumulate in f32 on the MXU.
    return jnp.dot(h_bf16, w_ref[...], preferred_element_type=jnp.float32)

  def act(v_f32):
    # LeakyReLU(0.2) on the f32 accumulator, materialized once as bf16 so the
    # inter-matmul intermediate (esp. hid at (TB,1024)) spills half as many bytes.
    return jnp.maximum(v_f32, 0.2 * v_f32).astype(jnp.bfloat16)

  sl = sl_ref[...].astype(jnp.bfloat16)          # no-op if latents already bf16
  al = al_ref[...].astype(jnp.bfloat16)

  fea = act(mm(sl, w0a) + mm(al, w0b) + b0[...])
  fea = act(mm(fea, w1) + b1[...])
  fea = act(mm(fea, w2) + b2[...])

  hid = act(mm(fea, wh0) + bh0[...])             # (TB, 1024): 4 heads' hidden, fused
  out_ref[...] = mm(hid, wh1) + bh1[...]         # block-structured -> (TB, 256) padded


# -----------------------------------------------------------------------------
# One-time parameter fusion (call ONCE at init, not per forward call).
# -----------------------------------------------------------------------------
def prepare_fused_params(params):
  """Pack per-layer folded (in,out) weights into the fused bf16 kernel layout."""
  w0, b0 = params["fea0"]            # (768, 256), (1, 256)
  w1, b1 = params["fea1"]
  w2, b2 = params["fea2"]
  w0a, w0b = w0[:NERF_DIM], w0[NERF_DIM:]

  heads = (("shape", SHAPE_DIM), ("exp", EXP_DIM),
           ("albedo", ALBEDO_DIM), ("lit", LIT_DIM))

  # Fused head first layers: (256, 4*256) and (1, 4*256).
  wh0 = jnp.concatenate([params[f"{n}0"][0] for n, _ in heads], axis=1)
  bh0 = jnp.concatenate([params[f"{n}0"][1] for n, _ in heads], axis=1)

  # Fused head second layers: block-structured (1024, 256), zero-padded to lane width.
  # NOTE(v5e): this fused matmul is 3/4 zeros; if profiling on v5e shows MXU-bound,
  # split into four (256,128)-padded matmuls there. On v6e/v7x (256-wide MXU) the
  # fused layout is the right call.
  wh1 = jnp.zeros((4 * HID, OUT_PAD), jnp.float32)
  bh1 = jnp.zeros((1, OUT_PAD), jnp.float32)
  col = 0
  for i, (n, d) in enumerate(heads):
    w, b = params[f"{n}1"]
    wh1 = wh1.at[i * HID:(i + 1) * HID, col:col + d].set(w)
    bh1 = bh1.at[:, col:col + d].set(b)
    col += d

  bf16 = lambda a: jnp.asarray(a, jnp.bfloat16)
  fused = (bf16(w0a), bf16(w0b), b0,
           bf16(w1), b1, bf16(w2), b2,
           bf16(wh0), bh0, bf16(wh1), bh1)
  # Commit to device once so nothing is rebuilt per call.
  return jax.tree_util.tree_map(jnp.asarray, fused)


# -----------------------------------------------------------------------------
# Forward wrapper (jitted): grid + BlockSpecs; pre-fused params passed through.
# -----------------------------------------------------------------------------
def _pick_tb(batch):
  if batch < 16:
    return batch                       # single tile (block == full batch dim)
  # >= 2 grid steps so the "parallel" axis can shard across v7x's two TensorCores;
  # cap at 512 so large B amortizes per-step overhead on single-TC v5e/v6e.
  return min(512, _round_up(pl.cdiv(batch, 2), 8))


@functools.partial(jax.jit, static_argnames="return_padded")
def latent2code2_forward(shape_latent, appearance_latent, fused_params,
                         return_padded=False):
  """Pallas implementation of Latent2Code2's code-prediction forward pass.

  `fused_params` must come from prepare_fused_params() (called once at init).
  With return_padded=True, returns the lane-dense (B, 256) padded code slab
  (column offsets in CODE_OFFSETS) and skips the four output slice copies.
  """
  batch = shape_latent.shape[0]
  tb = _pick_tb(batch)
  grid = (pl.cdiv(batch, tb),)

  def row_spec(cols):
    return pl.BlockSpec((tb, cols), lambda i: (i, 0))

  def const_spec(arr):
    # Constant block index -> weight stays VMEM-resident across the batch grid.
    return pl.BlockSpec(arr.shape, lambda i: (0, 0))

  weight_args = tuple(fused_params)

  flops = 2 * batch * (NERF_DIM * HID + GAN_DIM * HID + 2 * HID * HID
                       + HID * 4 * HID + 4 * HID * OUT_PAD)
  bytes_accessed = (
      sum(int(a.size) * a.dtype.itemsize for a in weight_args)
      + int(shape_latent.size) * shape_latent.dtype.itemsize
      + int(appearance_latent.size) * appearance_latent.dtype.itemsize
      + batch * OUT_PAD * 4)

  # Only raise the scoped-VMEM limit when the big (tb=512) tile is in play.
  vmem_limit = (32 * 1024 * 1024) if tb > 256 else None

  codes = pl.pallas_call(
      _latent2code_kernel,
      out_shape=jax.ShapeDtypeStruct((batch, OUT_PAD), jnp.float32),
      grid=grid,
      in_specs=[row_spec(NERF_DIM), row_spec(GAN_DIM)]
               + [const_spec(a) for a in weight_args],
      out_specs=row_spec(OUT_PAD),
      compiler_params=pltpu.CompilerParams(
          dimension_semantics=("parallel",),
          vmem_limit_bytes=vmem_limit),
      cost_estimate=pl.CostEstimate(
          flops=flops, transcendentals=0, bytes_accessed=bytes_accessed),
  )(shape_latent, appearance_latent, *weight_args)

  if return_padded:
    return codes

  return {name: codes[:, lo:hi] for name, (lo, hi) in CODE_OFFSETS.items()}


# -----------------------------------------------------------------------------
# Parameter construction (mirrors _initialize_weights: Linear ~ N(0, 0.01),
# bias = 0, weight-norm gain g = 1).
# NOTE: weight-norm is folded with the Frobenius norm of the whole matrix
# (neural-volumes-style LinearWN: W_eff = g[:,None] * W / ||W||_F). If the
# original LinearWN instead uses torch.nn.utils.weight_norm(dim=0) (per-row
# norm), only this folding helper needs to change; the kernel is unaffected.
# -----------------------------------------------------------------------------
def _make_linear_wn(key, fan_in, fan_out):
  w = 0.01 * jax.random.normal(key, (fan_out, fan_in), jnp.float32)   # torch (out, in)
  g = jnp.ones((fan_out,), jnp.float32)
  b = jnp.zeros((fan_out,), jnp.float32)
  w_eff = (g[:, None] * w) / jnp.sqrt(jnp.sum(w * w))
  return w_eff.T, b[None, :]            # kernel layout: (in, out) weight, (1, out) bias


def build_params(key):
  layer_dims = {
      "fea0": (NERF_DIM + GAN_DIM, HID),
      "fea1": (HID, HID),
      "fea2": (HID, HID),
      "shape0": (HID, HID), "shape1": (HID, SHAPE_DIM),
      "exp0": (HID, HID), "exp1": (HID, EXP_DIM),
      "albedo0": (HID, HID), "albedo1": (HID, ALBEDO_DIM),
      "lit0": (HID, HID), "lit1": (HID, LIT_DIM),
  }
  keys = jax.random.split(key, len(layer_dims))
  return {name: _make_linear_wn(k, fi, fo)
          for k, (name, (fi, fo)) in zip(keys, layer_dims.items())}


# -----------------------------------------------------------------------------
# Pure-JAX reference (same bf16-weight / bf16-activation / f32-accumulation
# numerics, unfused per-head structure) for verification of the fused kernel.
# -----------------------------------------------------------------------------
def reference_forward(shape_latent, appearance_latent, params):
  def lin(h, name):
    w, b = params[name]
    return _bf16_dot(h, w) + b

  def leaky(v):
    return jnp.maximum(v, 0.2 * v)

  x = jnp.concatenate([shape_latent, appearance_latent], axis=1)
  fea = leaky(lin(x, "fea0"))
  fea = leaky(lin(fea, "fea1"))
  fea = leaky(lin(fea, "fea2"))
  return {
      "shapecode": lin(leaky(lin(fea, "shape0")), "shape1"),
      "expcode": lin(leaky(lin(fea, "exp0")), "exp1"),
      "albedocode": lin(leaky(lin(fea, "albedo0")), "albedo1"),
      "litcode": lin(leaky(lin(fea, "lit0")), "lit1"),
  }


if __name__ == "__main__":
  key = jax.random.PRNGKey(0)
  k_params, k_shape, k_app = jax.random.split(key, 3)

  params = build_params(k_params)
  fused_params = prepare_fused_params(params)     # one-time fusion, hoisted out of forward

  batch = 16                                      # exercises the >=2-step grid path
  shape_latent = jax.random.normal(k_shape, (batch, NERF_DIM), jnp.float32)
  appearance_latent = jax.random.normal(k_app, (batch, GAN_DIM), jnp.float32)

  out = latent2code2_forward(shape_latent, appearance_latent, fused_params)
  out = jax.tree_util.tree_map(jax.block_until_ready, out)

  # Also exercise the padded (slice-free) output path.
  padded = latent2code2_forward(shape_latent, appearance_latent, fused_params,
                                return_padded=True)
  padded = jax.block_until_ready(padded)
  assert padded.shape == (batch, OUT_PAD)

  ref = reference_forward(shape_latent, appearance_latent, params)
  expected_dims = {"shapecode": SHAPE_DIM, "expcode": EXP_DIM,
                   "albedocode": ALBEDO_DIM, "litcode": LIT_DIM}
  for name, dim in expected_dims.items():
    assert out[name].shape == (batch, dim), (name, out[name].shape)
    max_err = float(jnp.max(jnp.abs(out[name] - ref[name])))
    assert max_err < 1e-4, (name, max_err)
    lo, hi = CODE_OFFSETS[name]
    max_err_p = float(jnp.max(jnp.abs(padded[:, lo:hi] - ref[name])))
    assert max_err_p < 1e-4, (name, max_err_p)

  print("KERNEL_OK")
</pallas_src>

<mosaic_0001>
module attributes {stable_mosaic.version = 11 : i64} {
  func.func @_latent2code_kernel(%arg0: i32, %arg1: memref<8x256xf32, #tpu.memory_space<vmem>>, %arg2: memref<8x512xf32, #tpu.memory_space<vmem>>, %arg3: memref<256x256xbf16, #tpu.memory_space<vmem>>, %arg4: memref<512x256xbf16, #tpu.memory_space<vmem>>, %arg5: memref<1x256xf32, #tpu.memory_space<vmem>>, %arg6: memref<256x256xbf16, #tpu.memory_space<vmem>>, %arg7: memref<1x256xf32, #tpu.memory_space<vmem>>, %arg8: memref<256x256xbf16, #tpu.memory_space<vmem>>, %arg9: memref<1x256xf32, #tpu.memory_space<vmem>>, %arg10: memref<256x1024xbf16, #tpu.memory_space<vmem>>, %arg11: memref<1x1024xf32, #tpu.memory_space<vmem>>, %arg12: memref<1024x256xbf16, #tpu.memory_space<vmem>>, %arg13: memref<1x256xf32, #tpu.memory_space<vmem>>, %arg14: memref<8x256xf32, #tpu.memory_space<vmem>>) attributes {dimension_semantics = [#tpu.dimension_semantics<parallel>], iteration_bounds = array<i64: 2>, scalar_prefetch = 0 : i64, scratch_operands = 0 : i64, tpu.core_type = #tpu.core_type<tc>, window_params = [{transform_indices = @transform_0, window_bounds = array<i64: 8, 256>}, {transform_indices = @transform_1, window_bounds = array<i64: 8, 512>}, {pipeline_mode = #tpu.pipeline_mode<synchronous>, transform_indices = @transform_2, window_bounds = array<i64: 256, 256>}, {pipeline_mode = #tpu.pipeline_mode<synchronous>, transform_indices = @transform_3, window_bounds = array<i64: 512, 256>}, {pipeline_mode = #tpu.pipeline_mode<synchronous>, transform_indices = @transform_4, window_bounds = array<i64: 1, 256>}, {pipeline_mode = #tpu.pipeline_mode<synchronous>, transform_indices = @transform_5, window_bounds = array<i64: 256, 256>}, {pipeline_mode = #tpu.pipeline_mode<synchronous>, transform_indices = @transform_6, window_bounds = array<i64: 1, 256>}, {pipeline_mode = #tpu.pipeline_mode<synchronous>, transform_indices = @transform_7, window_bounds = array<i64: 256, 256>}, {pipeline_mode = #tpu.pipeline_mode<synchronous>, transform_indices = @transform_8, window_bounds = array<i64: 1, 256>}, {pipeline_mode = #tpu.pipeline_mode<synchronous>, transform_indices = @transform_9, window_bounds = array<i64: 256, 1024>}, {pipeline_mode = #tpu.pipeline_mode<synchronous>, transform_indices = @transform_10, window_bounds = array<i64: 1, 1024>}, {pipeline_mode = #tpu.pipeline_mode<synchronous>, transform_indices = @transform_11, window_bounds = array<i64: 1024, 256>}, {pipeline_mode = #tpu.pipeline_mode<synchronous>, transform_indices = @transform_12, window_bounds = array<i64: 1, 256>}, {transform_indices = @transform_13, window_bounds = array<i64: 8, 256>}]} {
    %c0 = arith.constant 0 : index
    %c0_0 = arith.constant 0 : index
    %0 = vector.load %arg1[%c0, %c0_0] : memref<8x256xf32, #tpu.memory_space<vmem>>, vector<8x256xf32>
    %1 = arith.truncf %0 : vector<8x256xf32> to vector<8x256xbf16>
    %c0_1 = arith.constant 0 : index
    %c0_2 = arith.constant 0 : index
    %2 = vector.load %arg2[%c0_1, %c0_2] : memref<8x512xf32, #tpu.memory_space<vmem>>, vector<8x512xf32>
    %3 = arith.truncf %2 : vector<8x512xf32> to vector<8x512xbf16>
    %c0_3 = arith.constant 0 : index
    %c0_4 = arith.constant 0 : index
    %4 = vector.load %arg3[%c0_3, %c0_4] : memref<256x256xbf16, #tpu.memory_space<vmem>>, vector<256x256xbf16>
    %cst = arith.constant dense<0.000000e+00> : vector<8x256xf32>
    %5 = tpu.matmul %1, %4, %cst {dimension_numbers = #tpu.dot_dimension_numbers<[1], [0], [0], [1], [0, 0, 1, 1], [], []>} : vector<8x256xbf16>, vector<256x256xbf16>, vector<8x256xf32> -> vector<8x256xf32>
    %c0_5 = arith.constant 0 : index
    %c0_6 = arith.constant 0 : index
    %6 = vector.load %arg4[%c0_5, %c0_6] : memref<512x256xbf16, #tpu.memory_space<vmem>>, vector<512x256xbf16>
    %cst_7 = arith.constant dense<0.000000e+00> : vector<8x256xf32>
    %7 = tpu.matmul %3, %6, %cst_7 {dimension_numbers = #tpu.dot_dimension_numbers<[1], [0], [0], [1], [0, 0, 1, 1], [], []>} : vector<8x512xbf16>, vector<512x256xbf16>, vector<8x256xf32> -> vector<8x256xf32>
    %8 = arith.addf %5, %7 : vector<8x256xf32>
    %c0_8 = arith.constant 0 : index
    %c0_9 = arith.constant 0 : index
    %9 = vector.load %arg5[%c0_8, %c0_9] : memref<1x256xf32, #tpu.memory_space<vmem>>, vector<1x256xf32>
    %10 = vector.broadcast %9 : vector<1x256xf32> to vector<8x256xf32>
    %11 = arith.addf %8, %10 : vector<8x256xf32>
    %cst_10 = arith.constant 2.000000e-01 : f32
    %12 = vector.broadcast %cst_10 : f32 to vector<8x256xf32>
    %13 = arith.mulf %12, %11 : vector<8x256xf32>
    %14 = arith.maximumf %11, %13 : vector<8x256xf32>
    %15 = arith.truncf %14 : vector<8x256xf32> to vector<8x256xbf16>
    %c0_11 = arith.constant 0 : index
    %c0_12 = arith.constant 0 : index
    %16 = vector.load %arg6[%c0_11, %c0_12] : memref<256x256xbf16, #tpu.memory_space<vmem>>, vector<256x256xbf16>
    %cst_13 = arith.constant dense<0.000000e+00> : vector<8x256xf32>
    %17 = tpu.matmul %15, %16, %cst_13 {dimension_numbers = #tpu.dot_dimension_numbers<[1], [0], [0], [1], [0, 0, 1, 1], [], []>} : vector<8x256xbf16>, vector<256x256xbf16>, vector<8x256xf32> -> vector<8x256xf32>
    %c0_14 = arith.constant 0 : index
    %c0_15 = arith.constant 0 : index
    %18 = vector.load %arg7[%c0_14, %c0_15] : memref<1x256xf32, #tpu.memory_space<vmem>>, vector<1x256xf32>
    %19 = vector.broadcast %18 : vector<1x256xf32> to vector<8x256xf32>
    %20 = arith.addf %17, %19 : vector<8x256xf32>
    %cst_16 = arith.constant 2.000000e-01 : f32
    %21 = vector.broadcast %cst_16 : f32 to vector<8x256xf32>
    %22 = arith.mulf %21, %20 : vector<8x256xf32>
    %23 = arith.maximumf %20, %22 : vector<8x256xf32>
    %24 = arith.truncf %23 : vector<8x256xf32> to vector<8x256xbf16>
    %c0_17 = arith.constant 0 : index
    %c0_18 = arith.constant 0 : index
    %25 = vector.load %arg8[%c0_17, %c0_18] : memref<256x256xbf16, #tpu.memory_space<vmem>>, vector<256x256xbf16>
    %cst_19 = arith.constant dense<0.000000e+00> : vector<8x256xf32>
    %26 = tpu.matmul %24, %25, %cst_19 {dimension_numbers = #tpu.dot_dimension_numbers<[1], [0], [0], [1], [0, 0, 1, 1], [], []>} : vector<8x256xbf16>, vector<256x256xbf16>, vector<8x256xf32> -> vector<8x256xf32>
    %c0_20 = arith.constant 0 : index
    %c0_21 = arith.constant 0 : index
    %27 = vector.load %arg9[%c0_20, %c0_21] : memref<1x256xf32, #tpu.memory_space<vmem>>, vector<1x256xf32>
    %28 = vector.broadcast %27 : vector<1x256xf32> to vector<8x256xf32>
    %29 = arith.addf %26, %28 : vector<8x256xf32>
    %cst_22 = arith.constant 2.000000e-01 : f32
    %30 = vector.broadcast %cst_22 : f32 to vector<8x256xf32>
    %31 = arith.mulf %30, %29 : vector<8x256xf32>
    %32 = arith.maximumf %29, %31 : vector<8x256xf32>
    %33 = arith.truncf %32 : vector<8x256xf32> to vector<8x256xbf16>
    %c0_23 = arith.constant 0 : index
    %c0_24 = arith.constant 0 : index
    %34 = vector.load %arg10[%c0_23, %c0_24] : memref<256x1024xbf16, #tpu.memory_space<vmem>>, vector<256x1024xbf16>
    %cst_25 = arith.constant dense<0.000000e+00> : vector<8x1024xf32>
    %35 = tpu.matmul %33, %34, %cst_25 {dimension_numbers = #tpu.dot_dimension_numbers<[1], [0], [0], [1], [0, 0, 1, 1], [], []>} : vector<8x256xbf16>, vector<256x1024xbf16>, vector<8x1024xf32> -> vector<8x1024xf32>
    %c0_26 = arith.constant 0 : index
    %c0_27 = arith.constant 0 : index
    %36 = vector.load %arg11[%c0_26, %c0_27] : memref<1x1024xf32, #tpu.memory_space<vmem>>, vector<1x1024xf32>
    %37 = vector.broadcast %36 : vector<1x1024xf32> to vector<8x1024xf32>
    %38 = arith.addf %35, %37 : vector<8x1024xf32>
    %cst_28 = arith.constant 2.000000e-01 : f32
    %39 = vector.broadcast %cst_28 : f32 to vector<8x1024xf32>
    %40 = arith.mulf %39, %38 : vector<8x1024xf32>
    %41 = arith.maximumf %38, %40 : vector<8x1024xf32>
    %42 = arith.truncf %41 : vector<8x1024xf32> to vector<8x1024xbf16>
    %c0_29 = arith.constant 0 : index
    %c0_30 = arith.constant 0 : index
    %43 = vector.load %arg12[%c0_29, %c0_30] : memref<1024x256xbf16, #tpu.memory_space<vmem>>, vector<1024x256xbf16>
    %cst_31 = arith.constant dense<0.000000e+00> : vector<8x256xf32>
    %44 = tpu.matmul %42, %43, %cst_31 {dimension_numbers = #tpu.dot_dimension_numbers<[1], [0], [0], [1], [0, 0, 1, 1], [], []>} : vector<8x1024xbf16>, vector<1024x256xbf16>, vector<8x256xf32> -> vector<8x256xf32>
    %c0_32 = arith.constant 0 : index
    %c0_33 = arith.constant 0 : index
    %45 = vector.load %arg13[%c0_32, %c0_33] : memref<1x256xf32, #tpu.memory_space<vmem>>, vector<1x256xf32>
    %46 = vector.broadcast %45 : vector<1x256xf32> to vector<8x256xf32>
    %47 = arith.addf %44, %46 : vector<8x256xf32>
    %c0_34 = arith.constant 0 : index
    %c0_35 = arith.constant 0 : index
    %48 = vector.load %arg14[%c0_34, %c0_35] : memref<8x256xf32, #tpu.memory_space<vmem>>, vector<8x256xf32>
    tpu.vector_store %arg14[%c0_34, %c0_35], %47 {strides = array<i32>} : memref<8x256xf32, #tpu.memory_space<vmem>>, vector<8x256xf32>,
    return
  }
  func.func @transform_0(%arg0: i32) -> (i32, i32) {
    %c0_i32 = arith.constant 0 : i32
    %c0_i32_0 = arith.constant 0 : i32
    return %arg0, %c0_i32 : i32, i32
  }
  func.func @transform_1(%arg0: i32) -> (i32, i32) {
    %c0_i32 = arith.constant 0 : i32
    %c0_i32_0 = arith.constant 0 : i32
    return %arg0, %c0_i32 : i32, i32
  }
  func.func @transform_2(%arg0: i32) -> (i32, i32) {
    %c0_i32 = arith.constant 0 : i32
    %c0_i32_0 = arith.constant 0 : i32
    %c0_i32_1 = arith.constant 0 : i32
    return %c0_i32, %c0_i32_0 : i32, i32
  }
  func.func @transform_3(%arg0: i32) -> (i32, i32) {
    %c0_i32 = arith.constant 0 : i32
    %c0_i32_0 = arith.constant 0 : i32
    %c0_i32_1 = arith.constant 0 : i32
    return %c0_i32, %c0_i32_0 : i32, i32
  }
  func.func @transform_4(%arg0: i32) -> (i32, i32) {
    %c0_i32 = arith.constant 0 : i32
    %c0_i32_0 = arith.constant 0 : i32
    %c0_i32_1 = arith.constant 0 : i32
    return %c0_i32, %c0_i32_0 : i32, i32
  }
  func.func @transform_5(%arg0: i32) -> (i32, i32) {
    %c0_i32 = arith.constant 0 : i32
    %c0_i32_0 = arith.constant 0 : i32
    %c0_i32_1 = arith.constant 0 : i32
    return %c0_i32, %c0_i32_0 : i32, i32
  }
  func.func @transform_6(%arg0: i32) -> (i32, i32) {
    %c0_i32 = arith.constant 0 : i32
    %c0_i32_0 = arith.constant 0 : i32
    %c0_i32_1 = arith.constant 0 : i32
    return %c0_i32, %c0_i32_0 : i32, i32
  }
  func.func @transform_7(%arg0: i32) -> (i32, i32) {
    %c0_i32 = arith.constant 0 : i32
    %c0_i32_0 = arith.constant 0 : i32
    %c0_i32_1 = arith.constant 0 : i32
    return %c0_i32, %c0_i32_0 : i32, i32
  }
  func.func @transform_8(%arg0: i32) -> (i32, i32) {
    %c0_i32 = arith.constant 0 : i32
    %c0_i32_0 = arith.constant 0 : i32
    %c0_i32_1 = arith.constant 0 : i32
    return %c0_i32, %c0_i32_0 : i32, i32
  }
  func.func @transform_9(%arg0: i32) -> (i32, i32) {
    %c0_i32 = arith.constant 0 : i32
    %c0_i32_0 = arith.constant 0 : i32
    %c0_i32_1 = arith.constant 0 : i32
    return %c0_i32, %c0_i32_0 : i32, i32
  }
  func.func @transform_10(%arg0: i32) -> (i32, i32) {
    %c0_i32 = arith.constant 0 : i32
    %c0_i32_0 = arith.constant 0 : i32
    %c0_i32_1 = arith.constant 0 : i32
    return %c0_i32, %c0_i32_0 : i32, i32
  }
  func.func @transform_11(%arg0: i32) -> (i32, i32) {
    %c0_i32 = arith.constant 0 : i32
    %c0_i32_0 = arith.constant 0 : i32
    %c0_i32_1 = arith.constant 0 : i32
    return %c0_i32, %c0_i32_0 : i32, i32
  }
  func.func @transform_12(%arg0: i32) -> (i32, i32) {
    %c0_i32 = arith.constant 0 : i32
    %c0_i32_0 = arith.constant 0 : i32
    %c0_i32_1 = arith.constant 0 : i32
    return %c0_i32, %c0_i32_0 : i32, i32
  }
  func.func @transform_13(%arg0: i32) -> (i32, i32) {
    %c0_i32 = arith.constant 0 : i32
    %c0_i32_0 = arith.constant 0 : i32
    return %arg0, %c0_i32 : i32, i32
  }
}

</mosaic_0001>

<bundles_post_ra>
// kernel: latent2code2_forward.1
= control target key start
LH: loop header
LB: loop body
LE: loop exit
PB: predicated region body
PF: predicated region fallthrough
CT: control target
= control target key end

     0   :  { %s7078_s0 = inlined_call_operand.hbm [shape: f32[16,256], index: 0, kind: input, shape index: {}]   ;;  %s7079_s1 = inlined_call_operand.hbm [shape: f32[16,512], index: 1, kind: input, shape index: {}]   ;;  %s7080_s2 = inlined_call_operand.hbm [shape: bf16[256,256], index: 2, kind: input, shape index: {}]   ;;  %s7081_s3 = inlined_call_operand.hbm [shape: bf16[512,256], index: 3, kind: input, shape index: {}]   ;;  %s7082_s4 = inlined_call_operand.vmem [shape: f32[1,256], index: 4, kind: input, shape index: {}]   ;;  %s7083_s5 = inlined_call_operand.hbm [shape: bf16[256,256], index: 5, kind: input, shape index: {}]   ;;  %s7084_s6 = inlined_call_operand.vmem [shape: f32[1,256], index: 6, kind: input, shape index: {}]   ;;  %s7085_s7 = inlined_call_operand.hbm [shape: bf16[256,256], index: 7, kind: input, shape index: {}]   ;;  %s7086_s8 = inlined_call_operand.hbm [shape: f32[1,256], index: 8, kind: input, shape index: {}]   ;;  %s7087_s9 = inlined_call_operand.hbm [shape: bf16[256,1024], index: 9, kind: input, shape index: {}]   ;;  %s7088_s10 = inlined_call_operand.hbm [shape: f32[1,1024], index: 10, kind: input, shape index: {}]   ;;  %s7089_s11 = inlined_call_operand.hbm [shape: bf16[1024,256], index: 11, kind: input, shape index: {}]   ;;  %s7090_s12 = inlined_call_operand.vmem [shape: f32[1,256], index: 12, kind: input, shape index: {}]   ;;  %s7091_s13 = inlined_call_operand.vmem [shape: f32[16,256], index: 13, kind: output, shape index: {}]  }
   0x1   :  { %7092 = sst [smem:[#allocation25_spill]] %s7080_s2 }
   0x2   :  { %7093 = sst [smem:[#allocation26_spill]] %s7081_s3 }
   0x3   :  { %7094 = sst [smem:[#allocation27_spill]] %s7083_s5 }
   0x4   :  { %7095 = sst [smem:[#allocation28_spill]] %s7085_s7 }
   0x5   :  { %7096 = sst [smem:[#allocation29_spill]] %s7086_s8 }
   0x6   :  { %7097 = sst [smem:[#allocation30_spill]] %s7087_s9 }
   0x7   :  { %7098 = sst [smem:[#allocation31_spill]] %s7088_s10 }
   0x8   :  { %7099 = sst [smem:[#allocation32_spill]] %s7090_s12 }
   0x9   :  { %7100 = sst [smem:[#allocation33_spill]] %s7091_s13 }
   0xa   :  { %18 = vsyncpa [#allocation3], 0 }
   0xb   :  { %20 = vsyncpa [#allocation3 + $0x1], 0 }
   0xc   :  { %21 = vsyncpa [#allocation5], 0 }
   0xd   :  { %23 = vsyncpa [#allocation5 + $0x1], 0 }
   0xe   :  { %24 = vsyncpa [#allocation8], 0 }
   0xf   :  { %25 = vsyncpa [#allocation11], 0 }
  0x10   :  { %26 = vsyncpa [#allocation14], 0 }
  0x11   :  { %27 = vsyncpa [#allocation17], 0  ;;  %s6753_s25 = smov 0   ;;  %s6755_s26 = smov 0  }
  0x12   :  { %s6757_s27 = smov 0   ;;  %s6759_s28 = smov 0  }
  0x13 LB: > { %s7101_s2 = sld [smem:[#allocation25_spill]]  ;;  %s6777_s15 = sadd.s32 4294967295, %s6669_s28   ;;  %s6669_s28 = sphi %s6759_s28, %s7117_s28   ;;  %s6665_s27 = sphi %s6757_s27, %s7116_s27   ;;  %s6661_s26 = sphi %s6755_s26, %s7115_s26   ;;  %s6657_s25 = sphi %s6753_s25, %s7114_s25  }
  0x14   : > { %p4068_p0 = scmp.ge.s32.totalorder %s6669_s28, 1  ;;  %p54_p1 = scmp.eq.s32.totalorder %s6777_s15, 0 }
  0x15   : > { %p347_p2 = scmp.lt.s32.totalorder %s6669_s28, 3  ;;  %s6671_s17 = smov [#allocation6]  }
  0x16   : > { %s360_s18 = sshll.u32 %s6671_s17, 4  ;;  %s7103_s3 = sld [smem:[#allocation26_spill]]  ;;  %s361_s18 = int_to_ptr.vmem [resolvable:$true] %s360_s18 }
  0x17   : > { %p6782_p3 = pnand %p4068_p0, %p347_p2  ;;  %s7105_s7 = sld [smem:[#allocation28_spill]] }
  0x18   : > { %s6672_s30 = smov [#allocation7]   ;;  %s6674_s13 = smov 8  }
  0x19   : > { %s358_s14 = sshll.u32 %s7101_s2, 4  ;;  %p6218_p4 = pneg %p6782_p3  ;;  %s359_s14 = int_to_ptr.hbm [resolvable:$true] %s358_s14 }
  0x1a   : > { %s374_s17 = sshll.u32 %s6672_s30, 4  ;;  %s6673_s2 = smov 128   ;;  %s375_s17 = int_to_ptr.vmem [resolvable:$true] %s374_s17 }
  0x1b   : > { %p6793_p5 = pnand %p6218_p4, %p54_p1  ;;  %s7106_s9 = sld [smem:[#allocation30_spill]] }
  0x1c   : > { %s372_s21 = sshll.u32 %s7103_s3, 4  ;;  %s6675_s24 = smov [#allocation10]   ;;  %s373_s21 = int_to_ptr.hbm [resolvable:$true] %s372_s21 }
  0x1d   : > { %s406_s29 = sshll.u32 %s7105_s7, 4  ;;  %s408_s30 = sshll.u32 %s6675_s24, 4  ;;  %s407_s29 = int_to_ptr.hbm [resolvable:$true] %s406_s29  ;;  %s409_s30 = int_to_ptr.vmem [resolvable:$true] %s408_s30 }
  0x1e   : > { %6221 = dma.hbm_to_vmem [thread:$0]  (!%p6793_p5), %s359_s14, 4096, %s361_s18, [#allocation5], %s6673_s2, %s6673_s2, %s6674_s13  }
  0x1f   : > { %6224 = dma.hbm_to_vmem [thread:$0]  (!%p6793_p5), %s373_s21, 8192, %s375_s17, [#allocation8], %s6673_s2, %s6673_s2, %s6674_s13  }
  0x20   : > { %6230 = dma.hbm_to_vmem [thread:$0]  (!%p6793_p5), %s407_s29, 4096, %s409_s30, [#allocation11], %s6673_s2, %s6673_s2, %s6674_s13  }
  0x21   : > { %s432_s23 = sshll.u32 %s7106_s9, 4  ;;  %s6676_s14 = smov [#allocation13]   ;;  %s433_s23 = int_to_ptr.hbm [resolvable:$true] %s432_s23 }
  0x22   : > { %s434_s18 = sshll.u32 %s6676_s14, 4  ;;  %s6677_s3 = smov 512   ;;  %s435_s18 = int_to_ptr.vmem [resolvable:$true] %s434_s18 }
  0x23   : > { %s6678_s21 = smov 32   ;;  %s7107_s5 = sld [smem:[#allocation27_spill]] }
  0x24   : > { %6236 = dma.hbm_to_vmem [thread:$0]  (!%p6793_p5), %s433_s23, 16384, %s435_s18, [#allocation14], %s6677_s3, %s6677_s3, %s6678_s21  }
  0x25   : > { %s6679_s24 = smov [#allocation9]   ;;  %s7108_s8 = sld [smem:[#allocation29_spill]] }
  0x26   : > { %s391_s7 = sshll.u32 %s6679_s24, 4  ;;  %s6680_s3 = smov [#allocation12]   ;;  %s392_s7 = int_to_ptr.vmem [resolvable:$true] %s391_s7 }
  0x27   : > { %s423_s23 = sshll.u32 %s6680_s3, 4  ;;  %s7109_s10 = sld [smem:[#allocation31_spill]]  ;;  %s424_s23 = int_to_ptr.vmem [resolvable:$true] %s423_s23 }
  0x28   : > { %s6681_s21 = smov [#allocation15]   ;;  %s6682_s19 = smov [#allocation16]  }
  0x29   : > { %s389_s20 = sshll.u32 %s7107_s5, 4  ;;  %s449_s17 = sshll.u32 %s6681_s21, 4  ;;  %s390_s20 = int_to_ptr.hbm [resolvable:$true] %s389_s20  ;;  %s450_s17 = int_to_ptr.vmem [resolvable:$true] %s449_s17 }
  0x2a   : > { %6227 = dma.hbm_to_vmem [thread:$0]  (!%p6793_p5), %s390_s20, 4096, %s392_s7, [#allocation8], %s6673_s2, %s6673_s2, %s6674_s13  }
  0x2b   : > { %s421_s29 = sshll.u32 %s7108_s8, 4  ;;  %s458_s7 = sshll.u32 %s7089_s11, 4  ;;  %s422_s29 = int_to_ptr.hbm [resolvable:$true] %s421_s29  ;;  %s459_s7 = int_to_ptr.hbm [resolvable:$true] %s458_s7 }
  0x2c   : > { %6233 = dma.hbm_to_vmem [thread:$0]  (!%p6793_p5), %s422_s29, 32, %s424_s23, [#allocation11]  }
  0x2d   : > { %s447_s18 = sshll.u32 %s7109_s10, 4  ;;  %s460_s20 = sshll.u32 %s6682_s19, 4  ;;  %s448_s18 = int_to_ptr.hbm [resolvable:$true] %s447_s18  ;;  %s461_s20 = int_to_ptr.vmem [resolvable:$true] %s460_s20 }
  0x2e   : > { %6239 = dma.hbm_to_vmem [thread:$0]  (!%p6793_p5), %s448_s18, 128, %s450_s17, [#allocation14]  }
  0x2f   : > { %6242 = dma.hbm_to_vmem [thread:$0]  (!%p6793_p5), %s459_s7, 16384, %s461_s20, [#allocation17], %s6673_s2, %s6673_s2, %s6674_s13  }
  0x30   : > { %s6847_s24 = sadd.s32 1, %s6669_s28   ;;  %s40_s29 = sadd.s32 1, %s6665_s27 }
  0x31   : > { %s37_s3 = ssub.s32 %s6669_s28, %s6847_s24  ;;  %p47_p6 = scmp.ne.s32.totalorder %s6665_s27, %s6661_s26 }
  0x32   : > { %p38_p7 = scmp.eq.s32.totalorder %s37_s3, 0  ;;  %p48_p8 = scmp.eq.s32.totalorder %s6669_s28, 0 }
  0x33   : > { %p53_p9 = scmp.ne.s32.totalorder %s6661_s26, %s6657_s25  ;;  %p6258_p10 = scmp.lt.s32.totalorder %s6669_s28, 2 }
  0x34   : > { %s6859_s23 = scalar_select %p38_p7, %s6665_s27, %s40_s29  }
  0x35   : > { %p49_p11 = por %p48_p8, %p47_p6  ;;  %p6863_p12 = por %p54_p1, %p53_p9 }
  0x36   : > { %s477_s2 = sand.u32 1, %s6665_s27   ;;  %s5763_s13 = sshll.u32 %s6669_s28, 4 }
  0x37   : > { %s4078_s30 = sshll.u32 %s477_s2, 4  ;;  %s486_s9 = scalar_lea.hbm %s7078_s0, %s5763_s13 }
  0x38   : > { %s488_s12 = sshll.u32 %s486_s9, 4  ;;  %s481_s7 = scalar_lea.vmem [#allocation2], %s4078_s30  ;;  %s489_s12 = int_to_ptr.hbm [resolvable:$true] %s488_s12 }
  0x39   : > { %s490_s21 = sshll.u32 %s481_s7, 4  ;;  %p6874_p13 = pnand %p6258_p10, %p49_p11  ;;  %s491_s21 = int_to_ptr.vmem [resolvable:$true] %s490_s21 }
  0x3a   : > { %s497_s17 = sand.u32 1, %s6669_s28   ;;  %s4081_s19 = sshll.u32 %s477_s2, 5 }
  0x3b   : > { %s478_s20 = scalar_lea.sflag [#allocation3], %s477_s2  ;;  %s6551_s29 = sshra.s32 %s489_s12, 4  ;;  %s6552_s29 = int_to_ptr.hbm [resolvable:$true] %s6551_s29 }
  0x3c   : > { %s6553_s3 = scalar_lea.hbm %s6552_s29, 16  ;;  %p6555_p2 = pneg %p6874_p13 }
  0x3d   : > { %p6554_p0 = scmp.ne.s32.totalorder %s6552_s29, %s6553_s3  ;;  %s6558_s14 = scalar_lea.hbm %s7078_s0, 32 }
  0x3e   : > { %p6559_p6 = scmp.lt.s32.totalorder %s6552_s29, %s7078_s0  ;;  %p6560_p7 = scmp.lt.s32.totalorder %s6558_s14, %s6553_s3 }
  0x3f   : > { %p6556_p4 = pnand %p6555_p2, %p6554_p0 }
  0x40   : > { %p6561_p8 = por %p6560_p7, %p6559_p6 }
  0x41   : > { %p6557_p5 = pneg %p6556_p4 }
  0x43   : > { %p6562_p9 = pnand %p6561_p8, %p6557_p5 }
  0x45   : > { %6565 = shalt.err (!%p6562_p9)
}
  0x46   : > { %6246 = dma.hbm_to_vmem [thread:$0]  (!%p6874_p13), %s489_s12, 256, %s491_s21, %s478_s20  }
  0x47   : > { %s5764_s2 = sshll.u32 %s6669_s28, 5  ;;  %s501_s7 = scalar_lea.vmem [#allocation4], %s4081_s19 }
  0x48   : > { %s510_s5 = sshll.u32 %s501_s7, 4  ;;  %s506_s13 = scalar_lea.hbm %s7079_s1, %s5764_s2  ;;  %s511_s5 = int_to_ptr.vmem [resolvable:$true] %s510_s5 }
  0x49   : > { %s508_s30 = sshll.u32 %s506_s13, 4  ;;  %s498_s29 = scalar_lea.sflag [#allocation5], %s497_s17  ;;  %s509_s30 = int_to_ptr.hbm [resolvable:$true] %s508_s30 }
  0x4a   : > { %s6581_s3 = sshra.s32 %s509_s30, 4  ;;  %s6588_s21 = scalar_lea.hbm %s7079_s1, 64  ;;  %s6582_s3 = int_to_ptr.hbm [resolvable:$true] %s6581_s3 }
  0x4b   : > { %s6583_s14 = scalar_lea.hbm %s6582_s3, 32  ;;  %p6589_p4 = scmp.lt.s32.totalorder %s6582_s3, %s7079_s1 }
  0x4c   : > { %p6584_p10 = scmp.ne.s32.totalorder %s6582_s3, %s6583_s14  ;;  %p6590_p5 = scmp.lt.s32.totalorder %s6588_s21, %s6583_s14 }
  0x4e   : > { %p6586_p11 = pnand %p6584_p10, %p6555_p2  ;;  %p6591_p6 = por %p6590_p5, %p6589_p4 }
  0x50   : > { %p6587_p0 = pneg %p6586_p11 }
  0x52   : > { %p6592_p7 = pnand %p6591_p6, %p6587_p0 }
  0x54   : > { %6595 = shalt.err (!%p6592_p7)
}
  0x55   : > { %6249 = dma.hbm_to_vmem [thread:$0]  (!%p6874_p13), %s509_s30, 512, %s511_s5, %s498_s29  }
  0x56   : > { %519 = sbr.rel (%p6782_p3) target bundleno = 1005 (0x3ed), region = 72  ;;  %s521_s8 = sand.u32 (!%p6782_p3), 1, %s6661_s26  }
  0x57   : > { %s4085_s10 = sshll.u32 (!%p6782_p3), %s521_s8, 4  ;;  %s522_s17 = scalar_lea.sflag (!%p6782_p3), [#allocation3], %s521_s8 }
  0x58   : > { %s6910_s18 = scalar_lea.vmem (!%p6782_p3), [#allocation2], %s4085_s10 }
  0x5b   : > { %6628 = dma.done.wait (%p6863_p12), %s522_s17, 256  }
  0x5c   : > { %6630 = vsyncadd (%p6863_p12), %s522_s17, 4294967040  ;;  %s531_s9 = sand.u32 1, %s6777_s15   ;;  %s4086_s25 = sshll.u32 %s521_s8, 5 }
  0x5d   : > { %s532_s5 = scalar_lea.sflag [#allocation5], %s531_s9  ;;  %s6917_s2 = scalar_lea.vmem [#allocation4], %s4086_s25 }
  0x5e   : > { %6632 = dma.done.wait (%p6863_p12), %s532_s5, 512  }
  0x5f   : > { %6634 = vsyncadd (%p6863_p12), %s532_s5, 4294966784 }
  0x60   : > { %6636 = dma.done.wait (%p54_p1), [#allocation5], 4096  }
  0x61   : > { %6638 = vsyncadd (%p54_p1), [#allocation5], 4294963200 }
  0x62   : > { %6640 = dma.done.wait (%p54_p1), [#allocation8], 12288  }
  0x63   : > { %6642 = vsyncadd (%p54_p1), [#allocation8], 4294955008 }
  0x64   : > { %6644 = dma.done.wait (%p54_p1), [#allocation11], 4128  }
  0x65   : > { %6646 = vsyncadd (%p54_p1), [#allocation11], 4294963168 }
  0x66   : > { %6648 = dma.done.wait (%p54_p1), [#allocation14], 16512  }
  0x67   : > { %6650 = vsyncadd (%p54_p1), [#allocation14], 4294950784 }
  0x68   : > { %6652 = dma.done.wait (%p54_p1), [#allocation17], 16384  }
  0x69   : > { %6654 = vsyncadd (%p54_p1), [#allocation17], 4294950912  ;;  %v4155_v0 = vld [vmem:[#allocation7 + $0x70] sm:$0xf]  ;;  %v5813_v1 = vld [vmem:[#allocation7 + $0x74] sm:$0xf0] }
  0x6a   : > { %v4219_v2 = vld [vmem:[#allocation7 + $0xf0] sm:$0xf]  ;;  %v4156_v3 = vor.u32 %v5813_v1, %v4155_v0  ;;  %v5829_v4 = vld [vmem:[#allocation7 + $0xf4] sm:$0xf0]  ;;  %v4147_v11 = vld [vmem:[#allocation7 + $0x60] sm:$0xf] }
  0x6b   : > { %v4283_v5 = vld [vmem:[#allocation7 + $0x170] sm:$0xf]  ;;  %v5845_v6 = vld [vmem:[#allocation7 + $0x174] sm:$0xf0]  ;;  %v4220_v7 = vor.u32 %v5829_v4, %v4219_v2  ;;  %v5811_v13 = vld [vmem:[#allocation7 + $0x64] sm:$0xf0] }
  0x6c   : > { %v4284_v8 = vor.u32 %v5845_v6, %v4283_v5  ;;  %v4347_v9 = vld [vmem:[#allocation7 + $0x1f0] sm:$0xf]  ;;  %v5861_v10 = vld [vmem:[#allocation7 + $0x1f4] sm:$0xf0]  ;;  %1057 = vmatpush.bf16.msra.mxu0 %v4156_v3  ;;  %v4211_v14 = vld [vmem:[#allocation7 + $0xe0] sm:$0xf]  ;;  %v4148_v16 = vor.u32 %v5811_v13, %v4147_v11 }
  0x6d   : > { %v4348_v12 = vor.u32 %v5861_v10, %v4347_v9  ;;  %v5827_v15 = vld [vmem:[#allocation7 + $0xe4] sm:$0xf0]  ;;  %1070 = vmatpush.bf16.msra.mxu1 %v4220_v7  ;;  %v4275_v18 = vld [vmem:[#allocation7 + $0x160] sm:$0xf]  ;;  %v4139_v23 = vld [vmem:[#allocation7 + $0x50] sm:$0xf] }
  0x6e   : > { %1083 = vmatpush.bf16.msra.mxu2 %v4284_v8  ;;  %v4212_v17 = vor.u32 %v5827_v15, %v4211_v14  ;;  %v5843_v19 = vld [vmem:[#allocation7 + $0x164] sm:$0xf0]  ;;  %v4339_v20 = vld [vmem:[#allocation7 + $0x1e0] sm:$0xf]  ;;  %v5809_v24 = vld [vmem:[#allocation7 + $0x54] sm:$0xf0] }
  0x6f   : > { %1096 = vmatpush.bf16.msra.mxu3 %v4348_v12  ;;  %v4276_v21 = vor.u32 %v5843_v19, %v4275_v18  ;;  %v5859_v22 = vld [vmem:[#allocation7 + $0x1e4] sm:$0xf0]  ;;  %v4203_v26 = vld [vmem:[#allocation7 + $0xd0] sm:$0xf]  ;;  %v5825_v27 = vld [vmem:[#allocation7 + $0xd4] sm:$0xf0]  ;;  %v4140_v29 = vor.u32 %v5809_v24, %v4139_v23 }
  0x70   : > { %v4340_v25 = vor.u32 %v5859_v22, %v4339_v20  ;;  %v4267_v28 = vld [vmem:[#allocation7 + $0x150] sm:$0xf]  ;;  %1058 = vmatpush.bf16.msra.mxu0 %v4148_v16  ;;  %v5841_v30 = vld [vmem:[#allocation7 + $0x154] sm:$0xf0]  ;;  %v4204_v33 = vor.u32 %v5825_v27, %v4203_v26  ;;  %v4131_v35 = vld [vmem:[#allocation7 + $0x40] sm:$0xf] }
  0x71   : > { %v4331_v31 = vld [vmem:[#allocation7 + $0x1d0] sm:$0xf]  ;;  %v5857_v32 = vld [vmem:[#allocation7 + $0x1d4] sm:$0xf0]  ;;  %1071 = vmatpush.bf16.msra.mxu1 %v4212_v17  ;;  %v4268_v34 = vor.u32 %v5841_v30, %v4267_v28  ;;  %v5807_v36 = vld [vmem:[#allocation7 + $0x44] sm:$0xf0] }
  0x72   : > { %1084 = vmatpush.bf16.msra.mxu2 %v4276_v21  ;;  %v4195_v37 = vld [vmem:[#allocation7 + $0xc0] sm:$0xf]  ;;  %v4332_v38 = vor.u32 %v5857_v32, %v4331_v31  ;;  %v5823_v39 = vld [vmem:[#allocation7 + $0xc4] sm:$0xf0]  ;;  %v4132_v44 = vor.u32 %v5807_v36, %v4131_v35  ;;  %v4123_v47 = vld [vmem:[#allocation7 + $0x30] sm:$0xf] }
  0x73   : > { %1097 = vmatpush.bf16.msra.mxu3 %v4340_v25  ;;  %v4259_v40 = vld [vmem:[#allocation7 + $0x140] sm:$0xf]  ;;  %v5839_v41 = vld [vmem:[#allocation7 + $0x144] sm:$0xf0]  ;;  %v4196_v45 = vor.u32 %v5823_v39, %v4195_v37  ;;  %v5805_v48 = vld [vmem:[#allocation7 + $0x34] sm:$0xf0] }
  0x74   : > { %v4323_v42 = vld [vmem:[#allocation7 + $0x1c0] sm:$0xf]  ;;  %v5855_v43 = vld [vmem:[#allocation7 + $0x1c4] sm:$0xf0]  ;;  %1059 = vmatpush.bf16.msra.mxu0 %v4140_v29  ;;  %v4260_v46 = vor.u32 %v5839_v41, %v4259_v40  ;;  %v4187_v49 = vld [vmem:[#allocation7 + $0xb0] sm:$0xf]  ;;  %v4124_v56 = vor.u32 %v5805_v48, %v4123_v47 }
  0x75   : > { %1072 = vmatpush.bf16.msra.mxu1 %v4204_v33  ;;  %v4324_v50 = vor.u32 %v5855_v43, %v4323_v42  ;;  %v5821_v51 = vld [vmem:[#allocation7 + $0xb4] sm:$0xf0]  ;;  %v4251_v52 = vld [vmem:[#allocation7 + $0x130] sm:$0xf]  ;;  %v4115_v59 = vld [vmem:[#allocation7 + $0x20] sm:$0xf] }
  0x76   : > { %1085 = vmatpush.bf16.msra.mxu2 %v4268_v34  ;;  %v5837_v53 = vld [vmem:[#allocation7 + $0x134] sm:$0xf0]  ;;  %v4315_v54 = vld [vmem:[#allocation7 + $0x1b0] sm:$0xf]  ;;  %v4188_v57 = vor.u32 %v5821_v51, %v4187_v49  ;;  %v5803_v60 = vld [vmem:[#allocation7 + $0x24] sm:$0xf0] }
  0x77   : > { %1098 = vmatpush.bf16.msra.mxu3 %v4332_v38  ;;  %v5853_v55 = vld [vmem:[#allocation7 + $0x1b4] sm:$0xf0]  ;;  %v4252_v58 = vor.u32 %v5837_v53, %v4251_v52  ;;  %v4179_v61 = vld [vmem:[#allocation7 + $0xa0] sm:$0xf]  ;;  %v5819_v63 = vld [vmem:[#allocation7 + $0xa4] sm:$0xf0]  ;;  %v4116_v4 = vor.u32 %v5803_v60, %v4115_v59 }
  0x78   : > { %1060 = vmatpush.bf16.msra.mxu0 %v4132_v44  ;;  %v4316_v62 = vor.u32 %v5853_v55, %v4315_v54  ;;  %v4243_v0 = vld [vmem:[#allocation7 + $0x120] sm:$0xf]  ;;  %v5835_v1 = vld [vmem:[#allocation7 + $0x124] sm:$0xf0]  ;;  %v4180_v5 = vor.u32 %v5819_v63, %v4179_v61  ;;  %v4107_v7 = vld [vmem:[#allocation7 + $0x10] sm:$0xf] }
  0x79   : > { %1073 = vmatpush.bf16.msra.mxu1 %v4196_v45  ;;  %v4307_v2 = vld [vmem:[#allocation7 + $0x1a0] sm:$0xf]  ;;  %v5851_v3 = vld [vmem:[#allocation7 + $0x1a4] sm:$0xf0]  ;;  %v4244_v6 = vor.u32 %v5835_v1, %v4243_v0  ;;  %v5801_v8 = vld [vmem:[#allocation7 + $0x14] sm:$0xf0] }
  0x7a   : > { %1086 = vmatpush.bf16.msra.mxu2 %v4260_v46  ;;  %v4171_v9 = vld [vmem:[#allocation7 + $0x90] sm:$0xf]  ;;  %v4308_v10 = vor.u32 %v5851_v3, %v4307_v2  ;;  %v5817_v11 = vld [vmem:[#allocation7 + $0x94] sm:$0xf0]  ;;  %v4108_v16 = vor.u32 %v5801_v8, %v4107_v7  ;;  %v4099_v17 = vld [vmem:[#allocation7] sm:$0xf] }
  0x7b   : > { %1099 = vmatpush.bf16.msra.mxu3 %v4324_v50  ;;  %v4235_v12 = vld [vmem:[#allocation7 + $0x110] sm:$0xf]  ;;  %v5833_v13 = vld [vmem:[#allocation7 + $0x114] sm:$0xf0]  ;;  %v5799_v18 = vld [vmem:[#allocation7 + $0x4] sm:$0xf0]  ;;  %v4172_v19 = vor.u32 %v5817_v11, %v4171_v9 }
  0x7c   : > { %1061 = vmatpush.bf16.msra.mxu0 %v4124_v56  ;;  %v4299_v14 = vld [vmem:[#allocation7 + $0x190] sm:$0xf]  ;;  %v5849_v15 = vld [vmem:[#allocation7 + $0x194] sm:$0xf0]  ;;  %v4236_v20 = vor.u32 %v5833_v13, %v4235_v12  ;;  %v4163_v21 = vld [vmem:[#allocation7 + $0x80] sm:$0xf]  ;;  %v4100_v31 = vor.u32 %v5799_v18, %v4099_v17 }
  0x7d   : > { %1074 = vmatpush.bf16.msra.mxu1 %v4188_v57  ;;  %v5815_v22 = vld [vmem:[#allocation7 + $0x84] sm:$0xf0]  ;;  %v4227_v23 = vld [vmem:[#allocation7 + $0x100] sm:$0xf]  ;;  %v4300_v24 = vor.u32 %v5849_v15, %v4299_v14  ;;  %v5812_v28 = vld [vmem:[#allocation7 + $0x74] sm:$0xf] }
  0x7e   : > { %1087 = vmatpush.bf16.msra.mxu2 %v4252_v58  ;;  %v5831_v25 = vld [vmem:[#allocation7 + $0x104] sm:$0xf0]  ;;  %v4291_v26 = vld [vmem:[#allocation7 + $0x180] sm:$0xf]  ;;  %v4157_v29 = vld [vmem:[#allocation7 + $0x78] sm:$0xf0]  ;;  %v4164_v35 = vor.u32 %v5815_v22, %v4163_v21 }
  0x7f   : > { %1100 = vmatpush.bf16.msra.mxu3 %v4316_v62  ;;  %v5847_v27 = vld [vmem:[#allocation7 + $0x184] sm:$0xf0]  ;;  %v5828_v30 = vld [vmem:[#allocation7 + $0xf4] sm:$0xf]  ;;  %v4221_v32 = vld [vmem:[#allocation7 + $0xf8] sm:$0xf0]  ;;  %v4228_v36 = vor.u32 %v5831_v25, %v4227_v23  ;;  %v4160_v40 = vor.u32 %v5812_v28, %v4157_v29 }
  0x80   : > { %1062 = vmatpush.bf16.msra.mxu0 %v4116_v4  ;;  %v5844_v33 = vld [vmem:[#allocation7 + $0x174] sm:$0xf]  ;;  %v4285_v34 = vld [vmem:[#allocation7 + $0x178] sm:$0xf0]  ;;  %v4292_v39 = vor.u32 %v5847_v27, %v4291_v26  ;;  %v4224_v41 = vor.u32 %v5828_v30, %v4221_v32  ;;  %v5810_v43 = vld [vmem:[#allocation7 + $0x64] sm:$0xf] }
  0x81   : > { %1075 = vmatpush.bf16.msra.mxu1 %v4180_v5  ;;  %v5860_v37 = vld [vmem:[#allocation7 + $0x1f4] sm:$0xf]  ;;  %v4349_v38 = vld [vmem:[#allocation7 + $0x1f8] sm:$0xf0]  ;;  %v4288_v42 = vor.u32 %v5844_v33, %v4285_v34  ;;  %v4149_v44 = vld [vmem:[#allocation7 + $0x68] sm:$0xf0] }
  0x82   : > { %1088 = vmatpush.bf16.msra.mxu2 %v4244_v6  ;;  %v5826_v45 = vld [vmem:[#allocation7 + $0xe4] sm:$0xf]  ;;  %v4352_v46 = vor.u32 %v5860_v37, %v4349_v38  ;;  %v4213_v47 = vld [vmem:[#allocation7 + $0xe8] sm:$0xf0]  ;;  %v4152_v52 = vor.u32 %v5810_v43, %v4149_v44  ;;  %v5808_v53 = vld [vmem:[#allocation7 + $0x54] sm:$0xf] }
  0x83   : > { %1101 = vmatpush.bf16.msra.mxu3 %v4308_v10  ;;  %v5842_v48 = vld [vmem:[#allocation7 + $0x164] sm:$0xf]  ;;  %v4277_v49 = vld [vmem:[#allocation7 + $0x168] sm:$0xf0]  ;;  %v4216_v54 = vor.u32 %v5826_v45, %v4213_v47  ;;  %v4141_v56 = vld [vmem:[#allocation7 + $0x58] sm:$0xf0] }
  0x84   : > { %1063 = vmatpush.bf16.msra.mxu0 %v4108_v16  ;;  %v5858_v50 = vld [vmem:[#allocation7 + $0x1e4] sm:$0xf]  ;;  %v4341_v51 = vld [vmem:[#allocation7 + $0x1e8] sm:$0xf0]  ;;  %v4280_v55 = vor.u32 %v5842_v48, %v4277_v49  ;;  %v5824_v57 = vld [vmem:[#allocation7 + $0xd4] sm:$0xf]  ;;  %v4144_v2 = vor.u32 %v5808_v53, %v4141_v56 }
  0x85   : > { %1076 = vmatpush.bf16.msra.mxu1 %v4172_v19  ;;  %v635_v58 = vld [vmem:[%s6917_s2 + $0x10] sm:$0xff]  ;;  %v4344_v59 = vor.u32 %v5858_v50, %v4341_v51  ;;  %v4205_v60 = vld [vmem:[#allocation7 + $0xd8] sm:$0xf0]  ;;  %v5806_v3 = vld [vmem:[#allocation7 + $0x44] sm:$0xf]  ;;  %s7112_s3 = sld [smem:[#allocation32_spill]] }
  0x86   : > { %1089 = vmatpush.bf16.msra.mxu2 %v4236_v20  ;;  %v5840_v61 = vld [vmem:[#allocation7 + $0x154] sm:$0xf]  ;;  %v4269_v62 = vld [vmem:[#allocation7 + $0x158] sm:$0xf0]  ;;  %v6944_v63 = vpack.c.bf16 %v635_v58, %v635_v58  ;;  %v4208_v5 = vor.u32 %v5824_v57, %v4205_v60  ;;  %v4133_v7 = vld [vmem:[#allocation7 + $0x48] sm:$0xf0] }
  0x87   : > { %1102 = vmatpush.bf16.msra.mxu3 %v4300_v24  ;;  %v5856_v0 = vld [vmem:[#allocation7 + $0x1d4] sm:$0xf]  ;;  %v4333_v1 = vld [vmem:[#allocation7 + $0x1d8] sm:$0xf0]  ;;  %v4272_v6 = vor.u32 %v5840_v61, %v4269_v62  ;;  %v5822_v8 = vld [vmem:[#allocation7 + $0xc4] sm:$0xf]  ;;  %v4136_v18 = vor.u32 %v5806_v3, %v4133_v7 }
  0x88   : > { %1064 = vmatpush.bf16.msra.mxu0 %v4100_v31  ;;  %v636_v4 = vld [vmem:[%s6917_s2 + $0x18] sm:$0xff]  ;;  %v633_v10 = vld [vmem:[%s6917_s2] sm:$0xff]  ;;  %v4336_v11 = vor.u32 %v5856_v0, %v4333_v1  ;;  %v4197_v12 = vld [vmem:[#allocation7 + $0xc8] sm:$0xf0]  ;;  %p624_p1 = scmp.lt.s32.totalorder %s6777_s15, 1  ;;  %s7113_s21 = sld [smem:[#allocation33_spill]] }
  0x89   : > { %1077 = vmatpush.bf16.msra.mxu1 %v4164_v35  ;;  %v6948_v9 = vpack.c.bf16 %v636_v4, %v636_v4  ;;  %v5838_v13 = vld [vmem:[#allocation7 + $0x144] sm:$0xf]  ;;  %v4261_v14 = vld [vmem:[#allocation7 + $0x148] sm:$0xf0]  ;;  %v6951_v15 = vpack.c.bf16 %v633_v10, %v633_v10  ;;  %v4200_v20 = vor.u32 %v5822_v8, %v4197_v12  ;;  %v5804_v22 = vld [vmem:[#allocation7 + $0x34] sm:$0xf] }
  0x8a   : > { %1090 = vmatpush.bf16.msra.mxu2 %v4228_v36  ;;  %v5854_v16 = vld [vmem:[#allocation7 + $0x1c4] sm:$0xf]  ;;  %v4325_v17 = vld [vmem:[#allocation7 + $0x1c8] sm:$0xf0]  ;;  %v4264_v21 = vor.u32 %v5838_v13, %v4261_v14  ;;  %v4125_v23 = vld [vmem:[#allocation7 + $0x38] sm:$0xf0] }
  0x8b   : > { %1103 = vmatpush.bf16.msra.mxu3 %v4292_v39  ;;  %v634_v19 = vld [vmem:[%s6917_s2 + $0x8] sm:$0xff]  ;;  %v5820_v24 = vld [vmem:[#allocation7 + $0xb4] sm:$0xf]  ;;  %v4328_v26 = vor.u32 %v5854_v16, %v4325_v17  ;;  %v4189_v27 = vld [vmem:[#allocation7 + $0xb8] sm:$0xf0]  ;;  %1065 = vmatmul.bf16.vlgmr.msra.gmra.mxu0 %v6951_v15  ;;  %v4128_v32 = vor.u32 %v5804_v22, %v4125_v23  ;;  %s7119_s15 = smov (!%p624_p1, %s6777_s15), 1 }
  0x8c   : > { %1109 = vmatpush.bf16.msrb.mxu0 %v4160_v40  ;;  %v6955_v25 = vpack.c.bf16 %v634_v19, %v634_v19  ;;  %v5836_v28 = vld [vmem:[#allocation7 + $0x134] sm:$0xf]  ;;  %v4253_v29 = vld [vmem:[#allocation7 + $0x138] sm:$0xf0]  ;;  %v4192_v33 = vor.u32 %v5820_v24, %v4189_v27  ;;  %v5802_v35 = vld [vmem:[#allocation7 + $0x24] sm:$0xf] }
  0x8d   : > { %1122 = vmatpush.bf16.msrb.mxu1 %v4224_v41  ;;  %1091 = vmatmul.bf16.vlgmr.msra.gmra.mxu2 %v6944_v63  ;;  %v5852_v30 = vld [vmem:[#allocation7 + $0x1b4] sm:$0xf]  ;;  %v4317_v31 = vld [vmem:[#allocation7 + $0x1b8] sm:$0xf0]  ;;  %v4256_v34 = vor.u32 %v5836_v28, %v4253_v29  ;;  %v4117_v36 = vld [vmem:[#allocation7 + $0x28] sm:$0xf0] }
  0x8e   : > { %1135 = vmatpush.bf16.msrb.mxu2 %v4288_v42  ;;  %1104 = vmatmul.bf16.vlgmr.msra.gmra.mxu3 %v6948_v9  ;;  %v5818_v37 = vld [vmem:[#allocation7 + $0xa4] sm:$0xf]  ;;  %v4320_v38 = vor.u32 %v5852_v30, %v4317_v31  ;;  %v4181_v39 = vld [vmem:[#allocation7 + $0xa8] sm:$0xf0]  ;;  %v4120_v44 = vor.u32 %v5802_v35, %v4117_v36  ;;  %v5800_v47 = vld [vmem:[#allocation7 + $0x14] sm:$0xf] }
  0x8f   : > { %1148 = vmatpush.bf16.msrb.mxu3 %v4352_v46  ;;  %1078 = vmatmul.bf16.vlgmr.msra.gmra.mxu1 %v6955_v25  ;;  %v5834_v40 = vld [vmem:[#allocation7 + $0x124] sm:$0xf]  ;;  %v4245_v41 = vld [vmem:[#allocation7 + $0x128] sm:$0xf0]  ;;  %v4184_v45 = vor.u32 %v5818_v37, %v4181_v39  ;;  %v4109_v48 = vld [vmem:[#allocation7 + $0x18] sm:$0xf0] }
  0x90   : > { %1110 = vmatpush.bf16.msrb.mxu0 %v4152_v52  ;;  %v5850_v42 = vld [vmem:[#allocation7 + $0x1a4] sm:$0xf]  ;;  %v4309_v43 = vld [vmem:[#allocation7 + $0x1a8] sm:$0xf0]  ;;  %v4248_v46 = vor.u32 %v5834_v40, %v4245_v41  ;;  %v5816_v49 = vld [vmem:[#allocation7 + $0x94] sm:$0xf]  ;;  %v4112_v56 = vor.u32 %v5800_v47, %v4109_v48 }
  0x91   : > { %1123 = vmatpush.bf16.msrb.mxu1 %v4216_v54  ;;  %v4312_v50 = vor.u32 %v5850_v42, %v4309_v43  ;;  %v4173_v51 = vld [vmem:[#allocation7 + $0x98] sm:$0xf0]  ;;  %v5832_v52 = vld [vmem:[#allocation7 + $0x114] sm:$0xf]  ;;  %v5798_v57 = vld [vmem:[#allocation7 + $0x4] sm:$0xf] }
  0x92   : > { %1136 = vmatpush.bf16.msrb.mxu2 %v4280_v55  ;;  %v4237_v53 = vld [vmem:[#allocation7 + $0x118] sm:$0xf0]  ;;  %v5848_v54 = vld [vmem:[#allocation7 + $0x194] sm:$0xf]  ;;  %v4101_v58 = vld [vmem:[#allocation7 + $0x8] sm:$0xf0] }
  0x93   : > { %1149 = vmatpush.bf16.msrb.mxu3 %v4344_v59  ;;  %v4301_v55 = vld [vmem:[#allocation7 + $0x198] sm:$0xf0]  ;;  %v4176_v59 = vor.u32 %v5816_v49, %v4173_v51  ;;  %v4240_v60 = vor.u32 %v5832_v52, %v4237_v53  ;;  %v5814_v61 = vld [vmem:[#allocation7 + $0x84] sm:$0xf]  ;;  %v4165_v62 = vld [vmem:[#allocation7 + $0x88] sm:$0xf0]  ;;  %v4104_v8 = vor.u32 %v5798_v57, %v4101_v58 }
  0x94   : > { %1111 = vmatpush.bf16.msrb.mxu0 %v4144_v2  ;;  %v5830_v0 = vld [vmem:[#allocation7 + $0x104] sm:$0xf]  ;;  %v4304_v1 = vor.u32 %v5848_v54, %v4301_v55  ;;  %v4229_v2 = vld [vmem:[#allocation7 + $0x108] sm:$0xf0]  ;;  %v4475_v7 = vld [vmem:[#allocation6 + $0xf0] sm:$0xf]  ;;  %v4168_v13 = vor.u32 %v5814_v61, %v4165_v62 }
  0x95   : > { %1124 = vmatpush.bf16.msrb.mxu1 %v4208_v5  ;;  %v5846_v3 = vld [vmem:[#allocation7 + $0x184] sm:$0xf]  ;;  %v4293_v4 = vld [vmem:[#allocation7 + $0x188] sm:$0xf0]  ;;  %v4411_v5 = vld [vmem:[#allocation6 + $0x70] sm:$0xf]  ;;  %v4232_v14 = vor.u32 %v5830_v0, %v4229_v2 }
  0x96   : > { %1137 = vmatpush.bf16.msrb.mxu2 %v4272_v6  ;;  %v5781_v6 = vld [vmem:[#allocation6 + $0x74] sm:$0xf0]  ;;  %v4413_v12 = vld [vmem:[#allocation6 + $0x78] sm:$0xf0]  ;;  %v5796_v16 = vld [vmem:[#allocation6 + $0xf4] sm:$0xf] }
  0x97   : > { %1150 = vmatpush.bf16.msrb.mxu3 %v4336_v11  ;;  %v5797_v10 = vld [vmem:[#allocation6 + $0xf4] sm:$0xf0]  ;;  %v5780_v11 = vld [vmem:[#allocation6 + $0x74] sm:$0xf]  ;;  %v4477_v17 = vld [vmem:[#allocation6 + $0xf8] sm:$0xf0]  ;;  %v4412_v19 = vor.u32 %v5781_v6, %v4411_v5 }
  0x98   : > { %1112 = vmatpush.bf16.msrb.mxu0 %v4136_v18  ;;  %v4296_v18 = vor.u32 %v5846_v3, %v4293_v4  ;;  %v4403_v22 = vld [vmem:[#allocation6 + $0x60] sm:$0xf]  ;;  %v5779_v23 = vld [vmem:[#allocation6 + $0x64] sm:$0xf0]  ;;  %v5778_v28 = vld [vmem:[#allocation6 + $0x64] sm:$0xf] }
  0x99   : > { %1125 = vmatpush.bf16.msrb.mxu1 %v4200_v20  ;;  %v4476_v20 = vor.u32 %v5797_v10, %v4475_v7  ;;  %v4467_v24 = vld [vmem:[#allocation6 + $0xe0] sm:$0xf]  ;;  %v5795_v27 = vld [vmem:[#allocation6 + $0xe4] sm:$0xf0]  ;;  %v4405_v29 = vld [vmem:[#allocation6 + $0x68] sm:$0xf0] }
  0x9a   : > { %1138 = vmatpush.bf16.msrb.mxu2 %v4264_v21  ;;  %v4416_v21 = vor.u32 %v5780_v11, %v4413_v12  ;;  %v5794_v30 = vld [vmem:[#allocation6 + $0xe4] sm:$0xf]  ;;  %v4469_v31 = vld [vmem:[#allocation6 + $0xe8] sm:$0xf0]  ;;  %v4395_v35 = vld [vmem:[#allocation6 + $0x50] sm:$0xf] }
  0x9b   : > { %1151 = vmatpush.bf16.msrb.mxu3 %v4328_v26  ;;  %v4480_v26 = vor.u32 %v5796_v16, %v4477_v17  ;;  %v5777_v36 = vld [vmem:[#allocation6 + $0x54] sm:$0xf0]  ;;  %v4459_v37 = vld [vmem:[#allocation6 + $0xd0] sm:$0xf]  ;;  %v5776_v40 = vld [vmem:[#allocation6 + $0x54] sm:$0xf] }
  0x9c   : > { %1113 = vmatpush.bf16.msrb.mxu0 %v4128_v32  ;;  %v4404_v32 = vor.u32 %v5779_v23, %v4403_v22  ;;  %v5793_v39 = vld [vmem:[#allocation6 + $0xd4] sm:$0xf0]  ;;  %v4397_v41 = vld [vmem:[#allocation6 + $0x58] sm:$0xf0]  ;;  %v5792_v42 = vld [vmem:[#allocation6 + $0xd4] sm:$0xf] }
  0x9d   : > { %1126 = vmatpush.bf16.msrb.mxu1 %v4192_v33  ;;  %v4468_v33 = vor.u32 %v5795_v27, %v4467_v24  ;;  %v4461_v43 = vld [vmem:[#allocation6 + $0xd8] sm:$0xf0]  ;;  %v4387_v47 = vld [vmem:[#allocation6 + $0x40] sm:$0xf]  ;;  %v5775_v48 = vld [vmem:[#allocation6 + $0x44] sm:$0xf0] }
  0x9e   : > { %1139 = vmatpush.bf16.msrb.mxu2 %v4256_v34  ;;  %v4408_v34 = vor.u32 %v5778_v28, %v4405_v29  ;;  %v4464_v49 = vor.u32 %v5792_v42, %v4461_v43  ;;  %v5774_v51 = vld [vmem:[#allocation6 + $0x44] sm:$0xf]  ;;  %v4389_v52 = vld [vmem:[#allocation6 + $0x48] sm:$0xf0]  ;;  %v4379_v55 = vld [vmem:[#allocation6 + $0x30] sm:$0xf] }
  0x9f   : > { %1152 = vmatpush.bf16.msrb.mxu3 %v4320_v38  ;;  %v4472_v38 = vor.u32 %v5794_v30, %v4469_v31  ;;  %v5790_v53 = vld [vmem:[#allocation6 + $0xc4] sm:$0xf]  ;;  %v4443_v57 = vld [vmem:[#allocation6 + $0xb0] sm:$0xf]  ;;  %v4381_v61 = vld [vmem:[#allocation6 + $0x38] sm:$0xf0] }
  0xa0   : > { %1114 = vmatpush.bf16.msrb.mxu0 %v4120_v44  ;;  %v4396_v44 = vor.u32 %v5777_v36, %v4395_v35  ;;  %v5788_v62 = vld [vmem:[#allocation6 + $0xb4] sm:$0xf]  ;;  %v4445_v0 = vld [vmem:[#allocation6 + $0xb8] sm:$0xf0]  ;;  %v4371_v4 = vld [vmem:[#allocation6 + $0x20] sm:$0xf] }
  0xa1   : > { %1127 = vmatpush.bf16.msrb.mxu1 %v4184_v45  ;;  %v4460_v45 = vor.u32 %v5793_v39, %v4459_v37  ;;  %v5771_v5 = vld [vmem:[#allocation6 + $0x24] sm:$0xf0]  ;;  %v4435_v6 = vld [vmem:[#allocation6 + $0xa0] sm:$0xf]  ;;  %v4448_v7 = vor.u32 %v5788_v62, %v4445_v0  ;;  %v5770_v10 = vld [vmem:[#allocation6 + $0x24] sm:$0xf] }
  0xa2   : > { %1140 = vmatpush.bf16.msrb.mxu2 %v4248_v46  ;;  %v4400_v46 = vor.u32 %v5776_v40, %v4397_v41  ;;  %v4373_v11 = vld [vmem:[#allocation6 + $0x28] sm:$0xf0]  ;;  %v5786_v12 = vld [vmem:[#allocation6 + $0xa4] sm:$0xf]  ;;  %v5785_v22 = vld [vmem:[#allocation6 + $0x94] sm:$0xf0] }
  0xa3   : > { %1153 = vmatpush.bf16.msrb.mxu3 %v4312_v50  ;;  %v5791_v50 = vld [vmem:[#allocation6 + $0xc4] sm:$0xf0]  ;;  %v4376_v17 = vor.u32 %v5770_v10, %v4373_v11  ;;  %v5768_v23 = vld [vmem:[#allocation6 + $0x14] sm:$0xf]  ;;  %v4365_v24 = vld [vmem:[#allocation6 + $0x18] sm:$0xf0] }
  0xa4   : > { %1115 = vmatpush.bf16.msrb.mxu0 %v4112_v56  ;;  %v5773_v56 = vld [vmem:[#allocation6 + $0x34] sm:$0xf0]  ;;  %v4429_v27 = vld [vmem:[#allocation6 + $0x98] sm:$0xf0]  ;;  %v4368_v30 = vor.u32 %v5768_v23, %v4365_v24  ;;  %v4355_v31 = vld [vmem:[#allocation6] sm:$0xf] }
  0xa5   : > { %1128 = vmatpush.bf16.msrb.mxu1 %v4176_v59  ;;  %v5789_v59 = vld [vmem:[#allocation6 + $0xb4] sm:$0xf0]  ;;  %v5783_v35 = vld [vmem:[#allocation6 + $0x84] sm:$0xf0]  ;;  %v5766_v36 = vld [vmem:[#allocation6 + $0x4] sm:$0xf] }
  0xa6   : > { %1141 = vmatpush.bf16.msrb.mxu2 %v4240_v60  ;;  %v5772_v60 = vld [vmem:[#allocation6 + $0x34] sm:$0xf]  ;;  %v4444_v2 = vor.u32 %v5789_v59, %v4443_v57  ;;  %v4357_v37 = vld [vmem:[#allocation6 + $0x8] sm:$0xf0]  ;;  %v4603_v57 = vld [vmem:[#allocation9 + $0xf0] sm:$0xf] }
  0xa7   : > { %1154 = vmatpush.bf16.msrb.mxu3 %v4304_v1  ;;  %v4380_v1 = vor.u32 %v5773_v56, %v4379_v55  ;;  %v4384_v3 = vor.u32 %v5772_v60, %v4381_v61  ;;  %v4421_v39 = vld [vmem:[#allocation6 + $0x88] sm:$0xf0]  ;;  %v629_v41 = vld [vmem:[%s6910_s18] sm:$0xff]  ;;  %v4360_v43 = vor.u32 %v5766_v36, %v4357_v37  ;;  %v4605_v0 = vld [vmem:[#allocation9 + $0xf8] sm:$0xf0]  ;;  %s5765_s14 = sshll.u32 %s7119_s15, 4 }
  0xa8   : > { %1116 = vmatpush.bf16.msrb.mxu0 %v4104_v8  ;;  %v5787_v8 = vld [vmem:[#allocation6 + $0xa4] sm:$0xf0]  ;;  %v4533_v56 = vld [vmem:[#allocation9 + $0x68] sm:$0xf0]  ;;  %v5892_v62 = vld [vmem:[#allocation9 + $0xf4] sm:$0xf]  ;;  %s628_s19 = scalar_lea.vmem %s7113_s21, %s5765_s14 }
  0xa9   : > { %1129 = vmatpush.bf16.msrb.mxu1 %v4168_v13  ;;  %v4437_v13 = vld [vmem:[#allocation6 + $0xa8] sm:$0xf0]  ;;  %v4436_v16 = vor.u32 %v5787_v8, %v4435_v6  ;;  %v4595_v8 = vld [vmem:[#allocation9 + $0xe0] sm:$0xf]  ;;  %v5891_v10 = vld [vmem:[#allocation9 + $0xe4] sm:$0xf0] }
  0xaa   : > { %1142 = vmatpush.bf16.msrb.mxu2 %v4232_v14  ;;  %v4372_v14 = vor.u32 %v5771_v5, %v4371_v4  ;;  %v5873_v4 = vld [vmem:[#allocation9 + $0x54] sm:$0xf0]  ;;  %v5872_v5 = vld [vmem:[#allocation9 + $0x54] sm:$0xf]  ;;  %v4587_v24 = vld [vmem:[#allocation9 + $0xd0] sm:$0xf] }
  0xab   : > { %1155 = vmatpush.bf16.msrb.mxu3 %v4296_v18  ;;  %1117 = vmatmul.bf16.vlgmr.msrb.gmra.mxu0 %v6951_v15  ;;  %v4388_v15 = vor.u32 %v5775_v48, %v4387_v47  ;;  %v4363_v18 = vld [vmem:[#allocation6 + $0x10] sm:$0xf]  ;;  %v4509_v36 = vld [vmem:[#allocation9 + $0x38] sm:$0xf0] }
  0xac   : > { %1321 = vmatpush.bf16.msra.mxu0 %v4412_v19  ;;  %1130 = vmatmul.bf16.vlgmr.msrb.gmra.mxu1 %v6955_v25  ;;  %v4392_v25 = vor.u32 %v5774_v51, %v4389_v52  ;;  %v5769_v19 = vld [vmem:[#allocation6 + $0x14] sm:$0xf0]  ;;  %v4539_v48 = vld [vmem:[#allocation9 + $0x70] sm:$0xf]  ;;  %v4541_v51 = vld [vmem:[#allocation9 + $0x78] sm:$0xf0] }
  0xad   : > { %1334 = vmatpush.bf16.msra.mxu1 %v4476_v20  ;;  %1143 = vmatmul.bf16.vlgmr.msrb.gmra.mxu2 %v6944_v63  ;;  %v4451_v63 = vld [vmem:[#allocation6 + $0xc0] sm:$0xf]  ;;  %v4427_v20 = vld [vmem:[#allocation6 + $0x90] sm:$0xf]  ;;  %v4364_v28 = vor.u32 %v5769_v19, %v4363_v18  ;;  %v5871_v18 = vld [vmem:[#allocation9 + $0x44] sm:$0xf0] }
  0xae   : > { %1347 = vmatpush.bf16.msra.mxu2 %v4416_v21  ;;  %1156 = vmatmul.bf16.vlgmr.msrb.gmra.mxu3 %v6948_v9  ;;  %v4453_v9 = vld [vmem:[#allocation6 + $0xc8] sm:$0xf0]  ;;  %v4452_v54 = vor.u32 %v5791_v50, %v4451_v63  ;;  %v4440_v21 = vor.u32 %v5786_v12, %v4437_v13  ;;  %v4428_v29 = vor.u32 %v5785_v22, %v4427_v20  ;;  %v5877_v63 = vld [vmem:[#allocation9 + $0x74] sm:$0xf0]  ;;  %v5890_v13 = vld [vmem:[#allocation9 + $0xe4] sm:$0xf] }
  0xaf   : > { %1360 = vmatpush.bf16.msra.mxu3 %v4480_v26  ;;  %v4456_v58 = vor.u32 %v5790_v53, %v4453_v9  ;;  %v5784_v26 = vld [vmem:[#allocation6 + $0x94] sm:$0xf]  ;;  %v4540_v50 = vor.u32 %v5877_v63, %v4539_v48  ;;  %v4531_v53 = vld [vmem:[#allocation9 + $0x60] sm:$0xf]  ;;  %v5875_v9 = vld [vmem:[#allocation9 + $0x64] sm:$0xf0]  ;;  %v4596_v12 = vor.u32 %v5891_v10, %v4595_v8 }
  0xb0   : > { %1322 = vmatpush.bf16.msra.mxu0 %v4404_v32  ;;  %v5767_v32 = vld [vmem:[#allocation6 + $0x4] sm:$0xf0]  ;;  %v4532_v55 = vor.u32 %v5875_v9, %v4531_v53  ;;  %v5870_v19 = vld [vmem:[#allocation9 + $0x44] sm:$0xf]  ;;  %v4517_v20 = vld [vmem:[#allocation9 + $0x48] sm:$0xf0] }
  0xb1   : > { %1335 = vmatpush.bf16.msra.mxu1 %v4468_v33  ;;  %v4419_v33 = vld [vmem:[#allocation6 + $0x80] sm:$0xf]  ;;  %v4356_v40 = vor.u32 %v5767_v32, %v4355_v31  ;;  %v4589_v31 = vld [vmem:[#allocation9 + $0xd8] sm:$0xf0]  ;;  %v4507_v32 = vld [vmem:[#allocation9 + $0x30] sm:$0xf] }
  0xb2   : > { %1348 = vmatpush.bf16.msra.mxu2 %v4408_v34  ;;  %v4432_v34 = vor.u32 %v5784_v26, %v4429_v27  ;;  %v4420_v42 = vor.u32 %v5783_v35, %v4419_v33  ;;  %v5889_v26 = vld [vmem:[#allocation9 + $0xd4] sm:$0xf0]  ;;  %v5888_v27 = vld [vmem:[#allocation9 + $0xd4] sm:$0xf]  ;;  %v5866_v48 = vld [vmem:[#allocation9 + $0x24] sm:$0xf] }
  0xb3   : > { %1361 = vmatpush.bf16.msra.mxu3 %v4472_v38  ;;  %v5782_v38 = vld [vmem:[#allocation6 + $0x84] sm:$0xf]  ;;  %v5869_v33 = vld [vmem:[#allocation9 + $0x34] sm:$0xf0]  ;;  %v5868_v35 = vld [vmem:[#allocation9 + $0x34] sm:$0xf] }
  0xb4   : > { %1323 = vmatpush.bf16.msra.mxu0 %v4396_v44  ;;  %v630_v44 = vld [vmem:[%s6910_s18 + $0x8] sm:$0xff] }
  0xb5   : > { %1336 = vmatpush.bf16.msra.mxu1 %v4460_v45  ;;  %v4424_v45 = vor.u32 %v5782_v38, %v4421_v39  ;;  %v632_v47 = vpack.c.bf16 %v630_v44, %v630_v44  ;;  %v4508_v38 = vor.u32 %v5869_v33, %v4507_v32  ;;  %v4512_v39 = vor.u32 %v5868_v35, %v4509_v36  ;;  %v4581_v44 = vld [vmem:[#allocation9 + $0xc8] sm:$0xf0]  ;;  %v4667_v36 = vld [vmem:[#allocation10 + $0x70] sm:$0xf] }
  0xb6   : > { %1349 = vmatpush.bf16.msra.mxu2 %v4400_v46  ;;  %v631_v46 = vpack.c.bf16 %v629_v41, %v629_v41  ;;  %v5887_v41 = vld [vmem:[#allocation9 + $0xc4] sm:$0xf0]  ;;  %v4549_v32 = vld [vmem:[#allocation9 + $0x88] sm:$0xf0] }
  0xb7   : > { %1362 = vmatpush.bf16.msra.mxu3 %v4464_v49  ;;  %v5876_v49 = vld [vmem:[#allocation9 + $0x74] sm:$0xf] }
  0xb8   : > { %1324 = vmatpush.bf16.msra.mxu0 %v4388_v15  ;;  %v4544_v52 = vor.u32 %v5876_v49, %v4541_v51  ;;  %v5874_v15 = vld [vmem:[#allocation9 + $0x64] sm:$0xf]  ;;  %v4501_v49 = vld [vmem:[#allocation9 + $0x28] sm:$0xf0]  ;;  %v4571_v51 = vld [vmem:[#allocation9 + $0xb0] sm:$0xf] }
  0xb9   : > { %1337 = vmatpush.bf16.msra.mxu1 %v4452_v54  ;;  %v4536_v60 = vor.u32 %v5874_v15, %v4533_v56  ;;  %v5884_v15 = vld [vmem:[#allocation9 + $0xb4] sm:$0xf] }
  0xba   : > { %1350 = vmatpush.bf16.msra.mxu2 %v4392_v25 }
  0xbb   : > { %1363 = vmatpush.bf16.msra.mxu3 %v4456_v58  ;;  %v5893_v58 = vld [vmem:[#allocation9 + $0xf4] sm:$0xf0] }
  0xbc   : > { %1325 = vmatpush.bf16.msra.mxu0 %v4380_v1  ;;  %v4604_v61 = vor.u32 %v5893_v58, %v4603_v57  ;;  %v4608_v1 = vor.u32 %v5892_v62, %v4605_v0  ;;  %v4491_v58 = vld [vmem:[#allocation9 + $0x10] sm:$0xf]  ;;  %v4493_v0 = vld [vmem:[#allocation9 + $0x18] sm:$0xf0] }
  0xbd   : > { %1338 = vmatpush.bf16.msra.mxu1 %v4444_v2 }
  0xbe   : > { %1351 = vmatpush.bf16.msra.mxu2 %v4384_v3  ;;  %v4523_v3 = vld [vmem:[#allocation9 + $0x50] sm:$0xf] }
  0xbf   : > { %1364 = vmatpush.bf16.msra.mxu3 %v4448_v7  ;;  %v4524_v6 = vor.u32 %v5873_v4, %v4523_v3  ;;  %v4525_v7 = vld [vmem:[#allocation9 + $0x58] sm:$0xf0]  ;;  %v4563_v3 = vld [vmem:[#allocation9 + $0xa0] sm:$0xf]  ;;  %v5883_v4 = vld [vmem:[#allocation9 + $0xa4] sm:$0xf0] }
  0xc0   : > { %1326 = vmatpush.bf16.msra.mxu0 %v4372_v14  ;;  %v4528_v11 = vor.u32 %v5872_v5, %v4525_v7  ;;  %v4597_v14 = vld [vmem:[#allocation9 + $0xe8] sm:$0xf0]  ;;  %v5882_v5 = vld [vmem:[#allocation9 + $0xa4] sm:$0xf] }
  0xc1   : > { %1339 = vmatpush.bf16.msra.mxu1 %v4436_v16  ;;  %v4515_v16 = vld [vmem:[#allocation9 + $0x40] sm:$0xf]  ;;  %v4565_v7 = vld [vmem:[#allocation9 + $0xa8] sm:$0xf0] }
  0xc2   : > { %1352 = vmatpush.bf16.msra.mxu2 %v4376_v17  ;;  %v4600_v17 = vor.u32 %v5890_v13, %v4597_v14  ;;  %v4516_v23 = vor.u32 %v5871_v18, %v4515_v16  ;;  %v4568_v10 = vor.u32 %v5882_v5, %v4565_v7  ;;  %v5862_v13 = vld [vmem:[#allocation9 + $0x4] sm:$0xf]  ;;  %v5903_v5 = vld [vmem:[#allocation10 + $0x44] sm:$0xf0]  ;;  %v4715_v7 = vld [vmem:[#allocation10 + $0xd0] sm:$0xf] }
  0xc3   : > { %1365 = vmatpush.bf16.msra.mxu3 %v4440_v21 }
  0xc4   : > { %1327 = vmatpush.bf16.msra.mxu0 %v4364_v28 }
  0xc5   : > { %1340 = vmatpush.bf16.msra.mxu1 %v4428_v29  ;;  %v4520_v29 = vor.u32 %v5870_v19, %v4517_v20  ;;  %v4555_v19 = vld [vmem:[#allocation9 + $0x90] sm:$0xf]  ;;  %v5881_v20 = vld [vmem:[#allocation9 + $0x94] sm:$0xf0] }
  0xc6   : > { %1353 = vmatpush.bf16.msra.mxu2 %v4368_v30  ;;  %v4588_v30 = vor.u32 %v5889_v26, %v4587_v24  ;;  %v4557_v24 = vld [vmem:[#allocation9 + $0x98] sm:$0xf0] }
  0xc7   : > { %1366 = vmatpush.bf16.msra.mxu3 %v4432_v34  ;;  %v4592_v34 = vor.u32 %v5888_v27, %v4589_v31 }
  0xc8   : > { %1328 = vmatpush.bf16.msra.mxu0 %v4356_v40  ;;  %v4579_v40 = vld [vmem:[#allocation9 + $0xc0] sm:$0xf] }
  0xc9   : > { %1341 = vmatpush.bf16.msra.mxu1 %v4420_v42  ;;  %v5886_v42 = vld [vmem:[#allocation9 + $0xc4] sm:$0xf] }
  0xca   : > { %1354 = vmatpush.bf16.msra.mxu2 %v4360_v43  ;;  %v4580_v43 = vor.u32 %v5887_v41, %v4579_v40  ;;  %v4669_v40 = vld [vmem:[#allocation10 + $0x78] sm:$0xf0]  ;;  %v4659_v41 = vld [vmem:[#allocation10 + $0x60] sm:$0xf] }
  0xcb   : > { %1367 = vmatpush.bf16.msra.mxu3 %v4424_v45  ;;  %1329 = vmatmul.bf16.vlgmr.msra.gmra.mxu0 %v631_v46  ;;  %v4584_v45 = vor.u32 %v5886_v42, %v4581_v44  ;;  %v5907_v42 = vld [vmem:[#allocation10 + $0x64] sm:$0xf0]  ;;  %v5906_v44 = vld [vmem:[#allocation10 + $0x64] sm:$0xf] }
  0xcc   : > { %1342 = vmatmul.bf16.vlgmr.msra.gmra.mxu1 %v632_v47  ;;  %1585 = vmatpush.bf16.msrb.mxu0 %v4540_v50  ;;  %v4504_v50 = vor.u32 %v5866_v48, %v4501_v49  ;;  %v4660_v48 = vor.u32 %v5907_v42, %v4659_v41  ;;  %v5924_v49 = vld [vmem:[#allocation10 + $0xf4] sm:$0xf] }
  0xcd   : > { %1355 = vmatmul.bf16.vlgmr.msra.gmra.mxu2 %v631_v46  ;;  %1598 = vmatpush.bf16.msrb.mxu1 %v4604_v61  ;;  %v4499_v46 = vld [vmem:[#allocation9 + $0x20] sm:$0xf]  ;;  %v5864_v61 = vld [vmem:[#allocation9 + $0x14] sm:$0xf] }
  0xce   : > { %1368 = vmatmul.bf16.vlgmr.msra.gmra.mxu3 %v632_v47  ;;  %1611 = vmatpush.bf16.msrb.mxu2 %v4544_v52  ;;  %v5867_v47 = vld [vmem:[#allocation9 + $0x24] sm:$0xf0]  ;;  %v5885_v52 = vld [vmem:[#allocation9 + $0xb4] sm:$0xf0] }
  0xcf   : > { %1624 = vmatpush.bf16.msrb.mxu3 %v4608_v1  ;;  %v4500_v63 = vor.u32 %v5867_v47, %v4499_v46  ;;  %v4572_v9 = vor.u32 %v5885_v52, %v4571_v51  ;;  %v4496_v1 = vor.u32 %v5864_v61, %v4493_v0  ;;  %v4731_v46 = vld [vmem:[#allocation10 + $0xf0] sm:$0xf]  ;;  %v5923_v61 = vld [vmem:[#allocation10 + $0xe4] sm:$0xf0]  ;;  %v5922_v0 = vld [vmem:[#allocation10 + $0xe4] sm:$0xf] }
  0xd0   : > { %1586 = vmatpush.bf16.msrb.mxu0 %v4532_v55  ;;  %v4573_v55 = vld [vmem:[#allocation9 + $0xb8] sm:$0xf0] }
  0xd1   : > { %1599 = vmatpush.bf16.msrb.mxu1 %v4596_v12  ;;  %v4576_v57 = vor.u32 %v5884_v15, %v4573_v55  ;;  %v5863_v12 = vld [vmem:[#allocation9 + $0x4] sm:$0xf0]  ;;  %v4651_v15 = vld [vmem:[#allocation10 + $0x50] sm:$0xf]  ;;  %v5905_v55 = vld [vmem:[#allocation10 + $0x54] sm:$0xf0] }
  0xd2   : > { %1612 = vmatpush.bf16.msrb.mxu2 %v4536_v60  ;;  %v5865_v60 = vld [vmem:[#allocation9 + $0x14] sm:$0xf0] }
  0xd3   : > { %1625 = vmatpush.bf16.msrb.mxu3 %v4600_v17  ;;  %v4492_v62 = vor.u32 %v5865_v60, %v4491_v58  ;;  %v4485_v17 = vld [vmem:[#allocation9 + $0x8] sm:$0xf0]  ;;  %v4653_v58 = vld [vmem:[#allocation10 + $0x58] sm:$0xf0]  ;;  %v4723_v60 = vld [vmem:[#allocation10 + $0xe0] sm:$0xf] }
  0xd4   : > { %1587 = vmatpush.bf16.msrb.mxu0 %v4524_v6  ;;  %v4564_v6 = vor.u32 %v5883_v4, %v4563_v3  ;;  %v4488_v18 = vor.u32 %v5862_v13, %v4485_v17  ;;  %v4643_v4 = vld [vmem:[#allocation10 + $0x40] sm:$0xf]  ;;  %v4645_v13 = vld [vmem:[#allocation10 + $0x48] sm:$0xf0] }
  0xd5   : > { %1600 = vmatpush.bf16.msrb.mxu1 %v4588_v30  ;;  %v5878_v30 = vld [vmem:[#allocation9 + $0x84] sm:$0xf] }
  0xd6   : > { %1613 = vmatpush.bf16.msrb.mxu2 %v4528_v11  ;;  %v4483_v11 = vld [vmem:[#allocation9] sm:$0xf] }
  0xd7   : > { %1626 = vmatpush.bf16.msrb.mxu3 %v4592_v34  ;;  %v4484_v16 = vor.u32 %v5863_v12, %v4483_v11  ;;  %v4552_v34 = vor.u32 %v5878_v30, %v4549_v32  ;;  %v5920_v11 = vld [vmem:[#allocation10 + $0xd4] sm:$0xf]  ;;  %v5902_v12 = vld [vmem:[#allocation10 + $0x44] sm:$0xf] }
  0xd8   : > { %1588 = vmatpush.bf16.msrb.mxu0 %v4516_v23  ;;  %v5880_v23 = vld [vmem:[#allocation9 + $0x94] sm:$0xf] }
  0xd9   : > { %1601 = vmatpush.bf16.msrb.mxu1 %v4580_v43  ;;  %v4560_v27 = vor.u32 %v5880_v23, %v4557_v24  ;;  %v4648_v23 = vor.u32 %v5902_v12, %v4645_v13  ;;  %v4691_v12 = vld [vmem:[#allocation10 + $0xa0] sm:$0xf]  ;;  %v5915_v13 = vld [vmem:[#allocation10 + $0xa4] sm:$0xf0] }
  0xda   : > { %1614 = vmatpush.bf16.msrb.mxu2 %v4520_v29  ;;  %v5879_v29 = vld [vmem:[#allocation9 + $0x84] sm:$0xf0] }
  0xdb   : > { %1627 = vmatpush.bf16.msrb.mxu3 %v4584_v45  ;;  %v4661_v45 = vld [vmem:[#allocation10 + $0x68] sm:$0xf0] }
  0xdc   : > { %1589 = vmatpush.bf16.msrb.mxu0 %v4508_v38  ;;  %v5908_v38 = vld [vmem:[#allocation10 + $0x74] sm:$0xf]  ;;  %v4664_v51 = vor.u32 %v5906_v44, %v4661_v45  ;;  %v5901_v44 = vld [vmem:[#allocation10 + $0x34] sm:$0xf0] }
  0xdd   : > { %1602 = vmatpush.bf16.msrb.mxu1 %v4572_v9  ;;  %v4672_v43 = vor.u32 %v5908_v38, %v4669_v40  ;;  %v5900_v45 = vld [vmem:[#allocation10 + $0x34] sm:$0xf] }
  0xde   : > { %1615 = vmatpush.bf16.msrb.mxu2 %v4512_v39 }
  0xdf   : > { %1628 = vmatpush.bf16.msrb.mxu3 %v4576_v57  ;;  %v5904_v57 = vld [vmem:[#allocation10 + $0x54] sm:$0xf] }
  0xe0   : > { %1590 = vmatpush.bf16.msrb.mxu0 %v4500_v63  ;;  %v5925_v63 = vld [vmem:[#allocation10 + $0xf4] sm:$0xf0] }
  0xe1   : > { %1603 = vmatpush.bf16.msrb.mxu1 %v4564_v6  ;;  %v4732_v52 = vor.u32 %v5925_v63, %v4731_v46  ;;  %v4656_v6 = vor.u32 %v5904_v57, %v4653_v58  ;;  %v4707_v63 = vld [vmem:[#allocation10 + $0xc0] sm:$0xf]  ;;  %v5898_v58 = vld [vmem:[#allocation10 + $0x24] sm:$0xf] }
  0xe2   : > { %1616 = vmatpush.bf16.msrb.mxu2 %v4504_v50  ;;  %v4733_v50 = vld [vmem:[#allocation10 + $0xf8] sm:$0xf0] }
  0xe3   : > { %1629 = vmatpush.bf16.msrb.mxu3 %v4568_v10  ;;  %v4736_v9 = vor.u32 %v5924_v49, %v4733_v50  ;;  %v5921_v10 = vld [vmem:[#allocation10 + $0xd4] sm:$0xf0]  ;;  %v5919_v49 = vld [vmem:[#allocation10 + $0xc4] sm:$0xf0]  ;;  %v5918_v50 = vld [vmem:[#allocation10 + $0xc4] sm:$0xf] }
  0xe4   : > { %1591 = vmatpush.bf16.msrb.mxu0 %v4492_v62  ;;  %v4724_v62 = vor.u32 %v5923_v61, %v4723_v60  ;;  %v4629_v60 = vld [vmem:[#allocation10 + $0x28] sm:$0xf0] }
  0xe5   : > { %v4632_v61 = vor.u32 %v5898_v58, %v4629_v60  ;;  %v6038_v58 = vld [vmem:[#allocation13 + $0x384] sm:$0xf] }
  0xe6   : > { %1617 = vmatpush.bf16.msrb.mxu2 %v4496_v1  ;;  %v4652_v1 = vor.u32 %v5905_v55, %v4651_v15  ;;  %v5899_v15 = vld [vmem:[#allocation10 + $0x24] sm:$0xf0] }
  0xe7   : > { %1630 = vmatpush.bf16.msrb.mxu3 %v4560_v27  ;;  %v5189_v60 = vld [vmem:[#allocation13 + $0x3a0] sm:$0xf0] }
  0xe8   : > { %1592 = vmatpush.bf16.msrb.mxu0 %v4484_v16  ;;  %v4717_v16 = vld [vmem:[#allocation10 + $0xd8] sm:$0xf0] }
  0xea   : > { %1618 = vmatpush.bf16.msrb.mxu2 %v4488_v18  ;;  %v4716_v18 = vor.u32 %v5921_v10, %v4715_v7  ;;  %v5896_v7 = vld [vmem:[#allocation10 + $0x14] sm:$0xf]  ;;  %v4621_v10 = vld [vmem:[#allocation10 + $0x18] sm:$0xf0] }
  0xeb   : > { %1631 = vmatpush.bf16.msrb.mxu3 %v4552_v34 }
  0xee   : > { %1867 = vmatpush.bf16.msra.mxu2 %v4672_v43 }
  0xef   : > { %1880 = vmatpush.bf16.msra.mxu3 %v4736_v9  ;;  %v4627_v9 = vld [vmem:[#allocation10 + $0x20] sm:$0xf] }
  0xf0   : > { %v4628_v57 = vor.u32 %v5899_v15, %v4627_v9  ;;  %v4901_v9 = vld [vmem:[#allocation13 + $0x160] sm:$0xf0]  ;;  %v5187_v15 = vld [vmem:[#allocation13 + $0x380] sm:$0xf] }
  0xf2   : > { %1868 = vmatpush.bf16.msra.mxu2 %v4664_v51  ;;  %v4708_v51 = vor.u32 %v5919_v49, %v4707_v63 }
  0xf6   : > { %1869 = vmatpush.bf16.msra.mxu2 %v4656_v6 }
  0xfa   : > { %1870 = vmatpush.bf16.msra.mxu2 %v4648_v23  ;;  %v4613_v23 = vld [vmem:[#allocation10 + $0x8] sm:$0xf0] }
 0x108   : > { %v6965_v54 = vpop.f32.mrf.mxu0 }
 0x10c   : > { %v6969_v59 = vpop.f32.mrf.mxu1 }
 0x10d   : > { %v1080_v47 = vadd.f32 %v6969_v59, %v6965_v54  ;;  %v4725_v54 = vld [vmem:[#allocation10 + $0xe8] sm:$0xf0] }
 0x10e   : > { %v4728_v3 = vor.u32 %v5922_v0, %v4725_v54  ;;  %v5917_v0 = vld [vmem:[#allocation10 + $0xb4] sm:$0xf0]  ;;  %v5916_v54 = vld [vmem:[#allocation10 + $0xb4] sm:$0xf] }
 0x110   : > { %v6967_v25 = vpop.f32.mrf.mxu2  ;;  %v1068_v21 = vpop.f32.mrf.mxu0  ;;  %1881 = vmatpush.bf16.msra.mxu3 %v4728_v3 }
 0x111   : > { %v6971_v2 = vpop.f32.mrf.mxu3  ;;  %v1093_v59 = vadd.f32 %v6967_v25, %v1080_v47  ;;  %v1373_v25 = vld [vmem:[%s7082_s4] sm:$0x3]  ;;  %v4637_v47 = vld [vmem:[#allocation10 + $0x38] sm:$0xf0] }
 0x112   : > { %v1375_v27 = vperm.slane %v1373_v25, 0 }
 0x114   : > { %v1081_v28 = vpop.f32.mrf.mxu1 }
 0x115   : > { %v4547_v28 = vld [vmem:[#allocation9 + $0x80] sm:$0xf] }
 0x116   : > { %v4548_v31 = vor.u32 %v5879_v29, %v4547_v28 }
 0x118   : > { %v1094_v22 = vpop.f32.mrf.mxu2 }
 0x119   : > { %v1107_v37 = vpop.f32.mrf.mxu3  ;;  %v4556_v22 = vor.u32 %v5881_v20, %v4555_v19  ;;  %v4720_v19 = vor.u32 %v5920_v11, %v4717_v16  ;;  %v1106_v20 = vadd.f32 %v6971_v2, %v1093_v59  ;;  %v4624_v11 = vor.u32 %v5896_v7, %v4621_v10  ;;  %v5914_v16 = vld [vmem:[#allocation10 + $0xa4] sm:$0xf] }
 0x11a   : > { %v5909_v37 = vld [vmem:[#allocation10 + $0x74] sm:$0xf0]  ;;  %v4869_v7 = vld [vmem:[#allocation13 + $0x120] sm:$0xf0] }
 0x11b   : > { %1604 = vmatpush.bf16.msrb.mxu1 %v4556_v22  ;;  %v4668_v39 = vor.u32 %v5909_v37, %v4667_v36  ;;  %1882 = vmatpush.bf16.msra.mxu3 %v4720_v19  ;;  %v4611_v19 = vld [vmem:[#allocation10] sm:$0xf]  ;;  %v5157_v10 = vld [vmem:[#allocation13 + $0x360] sm:$0xf0] }
 0x11d   : > { %1841 = vmatpush.bf16.msra.mxu0 %v4668_v39 }
 0x11f   : > { %1605 = vmatpush.bf16.msrb.mxu1 %v4548_v31 }
 0x121   : > { %1842 = vmatpush.bf16.msra.mxu0 %v4660_v48  ;;  %v4640_v48 = vor.u32 %v5900_v45, %v4637_v47  ;;  %v6050_v45 = vld [vmem:[#allocation13 + $0x3dc] sm:$0xf0]  ;;  %v5221_v47 = vld [vmem:[#allocation13 + $0x3e0] sm:$0xf0] }
 0x123   : > { %1854 = vmatpush.bf16.msra.mxu1 %v4732_v52  ;;  %v4709_v52 = vld [vmem:[#allocation10 + $0xc8] sm:$0xf0]  ;;  %1871 = vmatpush.bf16.msra.mxu2 %v4640_v48 }
 0x124   : > { %v4712_v55 = vor.u32 %v5918_v50, %v4709_v52  ;;  %v4899_v50 = vld [vmem:[#allocation13 + $0x140] sm:$0xf]  ;;  %v5966_v52 = vld [vmem:[#allocation13 + $0x144] sm:$0xf] }
 0x125   : > { %1843 = vmatpush.bf16.msra.mxu0 %v4652_v1  ;;  %v4701_v1 = vld [vmem:[#allocation10 + $0xb8] sm:$0xf0] }
 0x126   : > { %1883 = vmatpush.bf16.msra.mxu3 %v4712_v55  ;;  %v4704_v3 = vor.u32 %v5916_v54, %v4701_v1  ;;  %v6042_v55 = vld [vmem:[#allocation13 + $0x39c] sm:$0xf0]  ;;  %v4904_v1 = vor.u32 %v5966_v52, %v4901_v9 }
 0x127   : > { %1855 = vmatpush.bf16.msra.mxu1 %v4724_v62  ;;  %v4699_v62 = vld [vmem:[#allocation10 + $0xb0] sm:$0xf]  ;;  %1872 = vmatpush.bf16.msra.mxu2 %v4632_v61  ;;  %v6995_v61 = vld [vmem:[%s7084_s6] sm:$0x3]  ;;  %v4867_v54 = vld [vmem:[#allocation13 + $0x100] sm:$0xf] }
 0x128   : > { %v6973_v53 = vpop.f32.mrf.mxu0  ;;  %v4700_v59 = vor.u32 %v5917_v0, %v4699_v62  ;;  %v5192_v0 = vor.u32 %v6038_v58, %v5189_v60  ;;  %v4739_v58 = vld [vmem:[#allocation13] sm:$0xf] }
 0x129   : > { %v6975_v56 = vpop.f32.mrf.mxu1 }
 0x12a   : > { %v1132_v17 = vadd.f32 %v6975_v56, %v6973_v53  ;;  %1884 = vmatpush.bf16.msra.mxu3 %v4704_v3  ;;  %v5155_v3 = vld [vmem:[#allocation13 + $0x340] sm:$0xf] }
 0x12b   : > { %1856 = vmatpush.bf16.msra.mxu1 %v4716_v18  ;;  %1873 = vmatpush.bf16.msra.mxu2 %v4624_v11 }
 0x12f   : > { %1857 = vmatpush.bf16.msra.mxu1 %v4708_v51  ;;  %v5970_v51 = vld [vmem:[#allocation13 + $0x15c] sm:$0xf0] }
 0x130   : > { %v6977_v8 = vpop.f32.mrf.mxu2  ;;  %v1120_v21 = vpop.f32.mrf.mxu0  ;;  %v4900_v62 = vor.u32 %v5970_v51, %v4899_v50  ;;  %v6006_v50 = vld [vmem:[#allocation13 + $0x284] sm:$0xf] }
 0x131   : > { %v6979_v14 = vpop.f32.mrf.mxu3  ;;  %v1133_v26 = vpop.f32.mrf.mxu1  ;;  %v4644_v21 = vor.u32 %v5903_v5, %v4643_v4  ;;  %v1145_v53 = vadd.f32 %v6977_v8, %v1132_v17  ;;  %v4619_v4 = vld [vmem:[#allocation10 + $0x10] sm:$0xf]  ;;  %v5897_v5 = vld [vmem:[#allocation10 + $0x14] sm:$0xf0]  ;;  %v4692_v17 = vor.u32 %v5915_v13, %v4691_v12  ;;  %v5061_v51 = vld [vmem:[#allocation13 + $0x2a0] sm:$0xf0] }
 0x132   : > { %v4620_v6 = vor.u32 %v5897_v5, %v4619_v4  ;;  %v6034_v4 = vld [vmem:[#allocation13 + $0x35c] sm:$0xf0]  ;;  %v6030_v5 = vld [vmem:[#allocation13 + $0x344] sm:$0xf] }
 0x133   : > { %1844 = vmatpush.bf16.msra.mxu0 %v4644_v21  ;;  %v1158_v29 = vadd.f32 %v6979_v14, %v1145_v53  ;;  %v4635_v14 = vld [vmem:[#allocation10 + $0x30] sm:$0xf]  ;;  %1858 = vmatpush.bf16.msra.mxu1 %v4700_v59  ;;  %v5894_v21 = vld [vmem:[#allocation10 + $0x4] sm:$0xf]  ;;  %v5912_v53 = vld [vmem:[#allocation10 + $0x94] sm:$0xf]  ;;  %v5156_v12 = vor.u32 %v6034_v4, %v5155_v3  ;;  %v5160_v13 = vor.u32 %v6030_v5, %v5157_v10 }
 0x134   : > { %v4636_v46 = vor.u32 %v5901_v44, %v4635_v14  ;;  %v5219_v14 = vld [vmem:[#allocation13 + $0x3c0] sm:$0xf]  ;;  %v5926_v5 = vld [vmem:[#allocation13 + $0x4] sm:$0xf] }
 0x135   : > { %v5220_v63 = vor.u32 %v6050_v45, %v5219_v14  ;;  %v5962_v59 = vld [vmem:[#allocation13 + $0x11c] sm:$0xf0]  ;;  %v5934_v45 = vld [vmem:[#allocation13 + $0x44] sm:$0xf] }
 0x136   : > { %v4771_v14 = vld [vmem:[#allocation13 + $0x40] sm:$0xf] }
 0x137   : > { %1845 = vmatpush.bf16.msra.mxu0 %v4636_v46  ;;  %1859 = vmatpush.bf16.msra.mxu1 %v4692_v17  ;;  %v6046_v46 = vld [vmem:[#allocation13 + $0x3c4] sm:$0xf]  ;;  %v4868_v17 = vor.u32 %v5962_v59, %v4867_v54  ;;  %v5064_v54 = vor.u32 %v6006_v50, %v5061_v51  ;;  %v5930_v59 = vld [vmem:[#allocation13 + $0x1c] sm:$0xf0]  ;;  %v4875_v50 = vld [vmem:[#allocation13 + $0x108] sm:$0xf] }
 0x138   : > { %v1146_v33 = vpop.f32.mrf.mxu2  ;;  %v5224_v49 = vor.u32 %v6046_v46, %v5221_v47  ;;  %v6002_v3 = vld [vmem:[#allocation13 + $0x25c] sm:$0xf0]  ;;  %v5963_v51 = vld [vmem:[#allocation13 + $0x124] sm:$0xf0] }
 0x139   : > { %v1159_v35 = vpop.f32.mrf.mxu3  ;;  %v1376_v33 = vperm.slane %v1373_v25, 1  ;;  %v4693_v25 = vld [vmem:[#allocation10 + $0xa8] sm:$0xf0] }
 0x13a   : > { %v4696_v18 = vor.u32 %v5914_v16, %v4693_v25  ;;  %v5123_v16 = vld [vmem:[#allocation13 + $0x300] sm:$0xf] }
 0x13b   : > { %1846 = vmatpush.bf16.msra.mxu0 %v4628_v57  ;;  %v5188_v57 = vor.u32 %v6042_v55, %v5187_v15  ;;  %v6026_v25 = vld [vmem:[#allocation13 + $0x31c] sm:$0xf0] }
 0x13c   : > { %1885 = vmatpush.bf16.msra.mxu3 %v4696_v18  ;;  %v6022_v18 = vld [vmem:[#allocation13 + $0x304] sm:$0xf] }
 0x13f   : > { %1847 = vmatpush.bf16.msra.mxu0 %v4620_v6  ;;  %v5958_v6 = vld [vmem:[#allocation13 + $0x104] sm:$0xf] }
 0x148   : > { %v1330_v22 = vpop.f32.mrf.mxu0 }
 0x149   : > { %v1331_v24 = vadd.f32 %v1330_v22, %v1106_v20  ;;  %v1343_v26 = vpop.f32.mrf.mxu1  ;;  %v5895_v20 = vld [vmem:[#allocation10 + $0x4] sm:$0xf0] }
 0x14a   : > { %v4612_v22 = vor.u32 %v5895_v20, %v4611_v19  ;;  %v5125_v19 = vld [vmem:[#allocation13 + $0x320] sm:$0xf0]  ;;  %v1421_v20 = vperm.slane %v6995_v61, 0 }
 0x14b   : > { %v1344_v56 = vadd.f32 %v1343_v26, %v1331_v24  ;;  %v4616_v24 = vor.u32 %v5894_v21, %v4613_v23  ;;  %v4683_v26 = vld [vmem:[#allocation10 + $0x90] sm:$0xf]  ;;  %v4872_v21 = vor.u32 %v5958_v6, %v4869_v7  ;;  %v5954_v23 = vld [vmem:[#allocation13 + $0xdc] sm:$0xf0]  ;;  %v4741_v6 = vld [vmem:[#allocation13 + $0x20] sm:$0xf0] }
 0x14c   : > { %1848 = vmatpush.bf16.msra.mxu0 %v4612_v22  ;;  %v4835_v22 = vld [vmem:[#allocation13 + $0xc0] sm:$0xf]  ;;  %v4971_v7 = vld [vmem:[#allocation13 + $0x1c8] sm:$0xf] }
 0x14d   : > { %v1379_v28 = vadd.f32 %v1375_v27, %v1344_v56  ;;  %v5913_v27 = vld [vmem:[#allocation10 + $0x94] sm:$0xf0]  ;;  %1874 = vmatpush.bf16.msra.mxu2 %v4616_v24  ;;  %v5950_v24 = vld [vmem:[#allocation13 + $0xc4] sm:$0xf] }
 0x14e   : > { %v4684_v56 = vor.u32 %v5913_v27, %v4683_v26  ;;  %v4837_v26 = vld [vmem:[#allocation13 + $0xe0] sm:$0xf0]  ;;  %v5124_v27 = vor.u32 %v6026_v25, %v5123_v16  ;;  %v4973_v16 = vld [vmem:[#allocation13 + $0x1e8] sm:$0xf0] }
 0x14f   : > { %v1381_v30 = vmul.f32 0.2, %v1379_v28  ;;  %v5998_v25 = vld [vmem:[#allocation13 + $0x244] sm:$0xf] }
 0x150   : > { %v1356_v2 = vpop.f32.mrf.mxu2  ;;  %v1332_v34 = vpop.f32.mrf.mxu0  ;;  %1860 = vmatpush.bf16.msra.mxu1 %v4684_v56  ;;  %v5091_v56 = vld [vmem:[#allocation13 + $0x2c0] sm:$0xf] }
 0x151   : > { %v1357_v31 = vadd.f32 %v1356_v2, %v1158_v29  ;;  %v1369_v32 = vpop.f32.mrf.mxu3  ;;  %v1383_v35 = vmax.f32 %v1379_v28, %v1381_v30  ;;  %v1345_v36 = vpop.f32.mrf.mxu1  ;;  %v4685_v28 = vld [vmem:[#allocation10 + $0x98] sm:$0xf0]  ;;  %v4675_v30 = vld [vmem:[#allocation10 + $0x80] sm:$0xf]  ;;  %v5911_v2 = vld [vmem:[#allocation10 + $0x84] sm:$0xf0] }
 0x152   : > { %v4688_v29 = vor.u32 %v5912_v53, %v4685_v28  ;;  %v5986_v36 = vld [vmem:[#allocation13 + $0x1dc] sm:$0xf0]  ;;  %v5128_v53 = vor.u32 %v6022_v18, %v5125_v19  ;;  %v4836_v28 = vor.u32 %v5954_v23, %v4835_v22  ;;  %v5029_v18 = vld [vmem:[#allocation13 + $0x260] sm:$0xf0]  ;;  %v4744_v22 = vor.u32 %v5926_v5, %v4741_v6  ;;  %v4845_v5 = vld [vmem:[#allocation13 + $0xe8] sm:$0xf0] }
 0x153   : > { %v1370_v37 = vadd.f32 %v1369_v32, %v1357_v31  ;;  %v1385_v38 = vpack.c.bf16 %v1383_v35, %v1383_v35  ;;  %v5910_v31 = vld [vmem:[#allocation10 + $0x84] sm:$0xf]  ;;  %v4676_v32 = vor.u32 %v5911_v2, %v4675_v30  ;;  %v5131_v6 = vld [vmem:[#allocation13 + $0x308] sm:$0xf] }
 0x154   : > { %1886 = vmatpush.bf16.msra.mxu3 %v4688_v29  ;;  %v4963_v35 = vld [vmem:[#allocation13 + $0x1c0] sm:$0xf]  ;;  %v6014_v30 = vld [vmem:[#allocation13 + $0x2c4] sm:$0xf] }
 0x155   : > { %v1380_v39 = vadd.f32 %v1376_v33, %v1370_v37  ;;  %1593 = vmatmul.bf16.vlgmr.msrb.gmra.mxu0 %v1385_v38  ;;  %1619 = vmatmul.bf16.vlgmr.msrb.gmra.mxu2 %v1385_v38  ;;  %v4677_v33 = vld [vmem:[#allocation10 + $0x88] sm:$0xf0]  ;;  %v5982_v37 = vld [vmem:[#allocation13 + $0x1c4] sm:$0xf]  ;;  %v4964_v38 = vor.u32 %v5986_v36, %v4963_v35  ;;  %v6018_v29 = vld [vmem:[#allocation13 + $0x2dc] sm:$0xf0] }
 0x156   : > { %v4680_v34 = vor.u32 %v5910_v31, %v4677_v33  ;;  %1861 = vmatpush.bf16.msra.mxu1 %v4676_v32  ;;  %v5093_v2 = vld [vmem:[#allocation13 + $0x2e0] sm:$0xf0]  ;;  %v4840_v33 = vor.u32 %v5950_v24, %v4837_v26  ;;  %v5946_v35 = vld [vmem:[#allocation13 + $0x9c] sm:$0xf0]  ;;  %v5227_v24 = vld [vmem:[#allocation13 + $0x3c8] sm:$0xf] }
 0x157   : > { %v1382_v8 = vmul.f32 0.2, %v1380_v39  ;;  %2685 = vmatpush.bf16.msrb.mxu0 %v4964_v38  ;;  %v4805_v38 = vld [vmem:[#allocation13 + $0xa0] sm:$0xf0]  ;;  %v6051_v26 = vld [vmem:[#allocation13 + $0x3e4] sm:$0xf0] }
 0x158   : > { %v1358_v40 = vpop.f32.mrf.mxu2  ;;  %1887 = vmatpush.bf16.msra.mxu3 %v4680_v34  ;;  %v4803_v34 = vld [vmem:[#allocation13 + $0x80] sm:$0xf] }
 0x159   : > { %v1384_v41 = vmax.f32 %v1380_v39, %v1382_v8  ;;  %v1371_v42 = vpop.f32.mrf.mxu3  ;;  %v4965_v39 = vld [vmem:[#allocation13 + $0x1e0] sm:$0xf0]  ;;  %v4931_v8 = vld [vmem:[#allocation13 + $0x180] sm:$0xf] }
 0x15a   : > { %v5978_v40 = vld [vmem:[#allocation13 + $0x19c] sm:$0xf0]  ;;  %v5974_v42 = vld [vmem:[#allocation13 + $0x184] sm:$0xf] }
 0x15b   : > { %v1386_v43 = vpack.c.bf16 %v1384_v41, %v1384_v41  ;;  %v4968_v41 = vor.u32 %v5982_v37, %v4965_v39  ;;  %v4932_v44 = vor.u32 %v5978_v40, %v4931_v8  ;;  %v5942_v37 = vld [vmem:[#allocation13 + $0x84] sm:$0xf]  ;;  %v1422_v8 = vperm.slane %v6995_v61, 1 }
 0x15c   : > { %v4808_v47 = vor.u32 %v5942_v37, %v4805_v38  ;;  %v5229_v37 = vld [vmem:[#allocation13 + $0x3e8] sm:$0xf0] }
 0x15d   : > { %1606 = vmatmul.bf16.vlgmr.msrb.gmra.mxu1 %v1386_v43  ;;  %1632 = vmatmul.bf16.vlgmr.msrb.gmra.mxu3 %v1386_v43  ;;  %v4933_v43 = vld [vmem:[#allocation13 + $0x1a0] sm:$0xf0] }
 0x15e   : > { %2711 = vmatpush.bf16.msrb.mxu2 %v4968_v41  ;;  %v4936_v48 = vor.u32 %v5974_v42, %v4933_v43  ;;  %2698 = vmatpush.bf16.msrb.mxu1 %v5220_v63  ;;  %v5092_v41 = vor.u32 %v6018_v29, %v5091_v56  ;;  %v5096_v42 = vor.u32 %v6014_v30, %v5093_v2  ;;  %v6010_v63 = vld [vmem:[#allocation13 + $0x29c] sm:$0xf0]  ;;  %v5979_v29 = vld [vmem:[#allocation13 + $0x1a4] sm:$0xf0]  ;;  %v5975_v30 = vld [vmem:[#allocation13 + $0x18c] sm:$0xf] }
 0x15f   : > { %2724 = vmatpush.bf16.msrb.mxu3 %v5224_v49  ;;  %2686 = vmatpush.bf16.msrb.mxu0 %v4932_v44  ;;  %v4804_v43 = vor.u32 %v5946_v35, %v4803_v34  ;;  %v5938_v44 = vld [vmem:[#allocation13 + $0x5c] sm:$0xf0]  ;;  %v4773_v49 = vld [vmem:[#allocation13 + $0x60] sm:$0xf0]  ;;  %v5032_v56 = vor.u32 %v5998_v25, %v5029_v18  ;;  %v5228_v35 = vor.u32 %v6051_v26, %v5227_v24  ;;  %v5947_v25 = vld [vmem:[#allocation13 + $0xa4] sm:$0xf0] }
 0x160   : > { %v4772_v55 = vor.u32 %v5938_v44, %v4771_v14  ;;  %v4997_v34 = vld [vmem:[#allocation13 + $0x220] sm:$0xf0]  ;;  %v5967_v44 = vld [vmem:[#allocation13 + $0x14c] sm:$0xf] }
 0x161   : > { %v5943_v18 = vld [vmem:[#allocation13 + $0x8c] sm:$0xf] }
 0x162   : > { %2712 = vmatpush.bf16.msrb.mxu2 %v4936_v48  ;;  %2699 = vmatpush.bf16.msrb.mxu1 %v5188_v57  ;;  %v5059_v48 = vld [vmem:[#allocation13 + $0x280] sm:$0xf]  ;;  %v6015_v26 = vld [vmem:[#allocation13 + $0x2cc] sm:$0xf] }
 0x163   : > { %2725 = vmatpush.bf16.msrb.mxu3 %v5192_v0  ;;  %2687 = vmatpush.bf16.msrb.mxu0 %v4900_v62  ;;  %v5060_v57 = vor.u32 %v6010_v63, %v5059_v48  ;;  %v4776_v0 = vor.u32 %v5934_v45, %v4773_v49  ;;  %v4909_v45 = vld [vmem:[#allocation13 + $0x168] sm:$0xf0] }
 0x164   : > { %v5197_v48 = vld [vmem:[#allocation13 + $0x3a8] sm:$0xf0]  ;;  %v4912_v49 = vor.u32 %v5967_v44, %v4909_v45 }
 0x165   : > { %v5999_v44 = vld [vmem:[#allocation13 + $0x24c] sm:$0xf] }
 0x166   : > { %2713 = vmatpush.bf16.msrb.mxu2 %v4904_v1  ;;  %2700 = vmatpush.bf16.msrb.mxu1 %v5156_v12  ;;  %v5027_v1 = vld [vmem:[#allocation13 + $0x240] sm:$0xf]  ;;  %v5983_v12 = vld [vmem:[#allocation13 + $0x1cc] sm:$0xf] }
 0x167   : > { %2726 = vmatpush.bf16.msrb.mxu3 %v5160_v13  ;;  %2688 = vmatpush.bf16.msrb.mxu0 %v4868_v17  ;;  %v4740_v13 = vor.u32 %v5930_v59, %v4739_v58  ;;  %v5028_v17 = vor.u32 %v6002_v3, %v5027_v1  ;;  %v5163_v58 = vld [vmem:[#allocation13 + $0x348] sm:$0xf]  ;;  %v5951_v3 = vld [vmem:[#allocation13 + $0xcc] sm:$0xf] }
 0x168   : > { %v4843_v59 = vld [vmem:[#allocation13 + $0xc8] sm:$0xf]  ;;  %v5037_v45 = vld [vmem:[#allocation13 + $0x268] sm:$0xf0] }
 0x169   : > { %v5955_v1 = vld [vmem:[#allocation13 + $0xe4] sm:$0xf0] }
 0x16a   : > { %2714 = vmatpush.bf16.msrb.mxu2 %v4872_v21  ;;  %2701 = vmatpush.bf16.msrb.mxu1 %v5124_v27  ;;  %v5994_v21 = vld [vmem:[#allocation13 + $0x21c] sm:$0xf0] }
 0x16b   : > { %2727 = vmatpush.bf16.msrb.mxu3 %v5128_v53  ;;  %2689 = vmatpush.bf16.msrb.mxu0 %v4836_v28  ;;  %v4976_v53 = vor.u32 %v5983_v12, %v4973_v16  ;;  %v4939_v28 = vld [vmem:[#allocation13 + $0x188] sm:$0xf]  ;;  %v6023_v12 = vld [vmem:[#allocation13 + $0x30c] sm:$0xf] }
 0x16c   : > { %v4940_v38 = vor.u32 %v5979_v29, %v4939_v28  ;;  %v5939_v28 = vld [vmem:[#allocation13 + $0x64] sm:$0xf0]  ;;  %v5935_v29 = vld [vmem:[#allocation13 + $0x4c] sm:$0xf] }
 0x16e   : > { %2715 = vmatpush.bf16.msrb.mxu2 %v4840_v33  ;;  %2702 = vmatpush.bf16.msrb.mxu1 %v5092_v41  ;;  %v5990_v33 = vld [vmem:[#allocation13 + $0x204] sm:$0xf] }
 0x16f   : > { %2728 = vmatpush.bf16.msrb.mxu3 %v5096_v42  ;;  %2690 = vmatpush.bf16.msrb.mxu0 %v4804_v43  ;;  %v5000_v41 = vor.u32 %v5990_v33, %v4997_v34  ;;  %v4907_v42 = vld [vmem:[#allocation13 + $0x148] sm:$0xf]  ;;  %v6007_v34 = vld [vmem:[#allocation13 + $0x28c] sm:$0xf] }
 0x170   : > { %v5971_v43 = vld [vmem:[#allocation13 + $0x164] sm:$0xf0] }
 0x171   : > { %v4908_v63 = vor.u32 %v5971_v43, %v4907_v42  ;;  %v6011_v33 = vld [vmem:[#allocation13 + $0x2a4] sm:$0xf0] }
 0x172   : > { %2716 = vmatpush.bf16.msrb.mxu2 %v4808_v47  ;;  %2703 = vmatpush.bf16.msrb.mxu1 %v5060_v57  ;;  %v6039_v47 = vld [vmem:[#allocation13 + $0x38c] sm:$0xf]  ;;  %v5035_v43 = vld [vmem:[#allocation13 + $0x248] sm:$0xf] }
 0x173   : > { %2691 = vmatpush.bf16.msrb.mxu0 %v4772_v55  ;;  %2729 = vmatpush.bf16.msrb.mxu3 %v5064_v54  ;;  %v4876_v55 = vor.u32 %v5963_v51, %v4875_v50  ;;  %v5991_v50 = vld [vmem:[#allocation13 + $0x20c] sm:$0xf] }
 0x174   : > { %v5005_v51 = vld [vmem:[#allocation13 + $0x228] sm:$0xf0] }
 0x176   : > { %2717 = vmatpush.bf16.msrb.mxu2 %v4776_v0  ;;  %2704 = vmatpush.bf16.msrb.mxu1 %v5028_v17  ;;  %v5165_v0 = vld [vmem:[#allocation13 + $0x368] sm:$0xf0]  ;;  %v4811_v17 = vld [vmem:[#allocation13 + $0x88] sm:$0xf] }
 0x177   : > { %2692 = vmatpush.bf16.msrb.mxu0 %v4740_v13  ;;  %2730 = vmatpush.bf16.msrb.mxu3 %v5032_v56  ;;  %v5133_v13 = vld [vmem:[#allocation13 + $0x328] sm:$0xf0]  ;;  %v4779_v56 = vld [vmem:[#allocation13 + $0x48] sm:$0xf] }
 0x178   : > { %v5136_v16 = vor.u32 %v6023_v12, %v5133_v13  ;;  %v4947_v12 = vld [vmem:[#allocation13 + $0x190] sm:$0xf] }
 0x17a   : > { %2718 = vmatpush.bf16.msrb.mxu2 %v4744_v22  ;;  %v5099_v22 = vld [vmem:[#allocation13 + $0x2c8] sm:$0xf] }
 0x17b   : > { %2731 = vmatpush.bf16.msrb.mxu3 %v5000_v41  ;;  %v4749_v41 = vld [vmem:[#allocation13 + $0x28] sm:$0xf0] }
 0x1d2   : > { %v1594_v11 = vpop.f32.mrf.mxu0 }
 0x1d3   : > { %v1595_v31 = vadd.f32 %v1594_v11, %v1421_v20  ;;  %v5987_v11 = vld [vmem:[#allocation13 + $0x1e4] sm:$0xf0]  ;;  %v4995_v20 = vld [vmem:[#allocation13 + $0x200] sm:$0xf] }
 0x1d4   : > { %v4972_v23 = vor.u32 %v5987_v11, %v4971_v7  ;;  %v6027_v7 = vld [vmem:[#allocation13 + $0x324] sm:$0xf0] }
 0x1d5   : > { %v5132_v11 = vor.u32 %v6027_v7, %v5131_v6 }
 0x1d8   : > { %v1620_v32 = vpop.f32.mrf.mxu2 }
 0x1d9   : > { %v1621_v9 = vadd.f32 %v1620_v32, %v1422_v8  ;;  %v4996_v32 = vor.u32 %v5994_v21, %v4995_v20  ;;  %v6043_v8 = vld [vmem:[#allocation13 + $0x3a4] sm:$0xf0]  ;;  %v4813_v20 = vld [vmem:[#allocation13 + $0xa8] sm:$0xf0] }
 0x1da   : > { %v1607_v36 = vpop.f32.mrf.mxu1  ;;  %v1596_v40 = vpop.f32.mrf.mxu0  ;;  %v4816_v21 = vor.u32 %v5943_v18, %v4813_v20  ;;  %v4949_v18 = vld [vmem:[#allocation13 + $0x1b0] sm:$0xf0] }
 0x1db   : > { %v1608_v39 = vadd.f32 %v1607_v36, %v1595_v31  ;;  %v4941_v31 = vld [vmem:[#allocation13 + $0x1a8] sm:$0xf0]  ;;  %2705 = vmatpush.bf16.msrb.mxu1 %v4996_v32  ;;  %v5067_v32 = vld [vmem:[#allocation13 + $0x288] sm:$0xf] }
 0x1dc   : > { %v6047_v36 = vld [vmem:[#allocation13 + $0x3cc] sm:$0xf]  ;;  %v4944_v40 = vor.u32 %v5975_v30, %v4941_v31  ;;  %v4780_v30 = vor.u32 %v5939_v28, %v4779_v56  ;;  %v4915_v56 = vld [vmem:[#allocation13 + $0x150] sm:$0xf] }
 0x1dd   : > { %v1637_v46 = vmul.f32 0.2, %v1608_v39  ;;  %v5232_v14 = vor.u32 %v6047_v36, %v5229_v37  ;;  %v5069_v36 = vld [vmem:[#allocation13 + $0x2a8] sm:$0xf0] }
 0x1de   : > { %v5072_v37 = vor.u32 %v6007_v34, %v5069_v36  ;;  %v6040_v36 = vld [vmem:[#allocation13 + $0x394] sm:$0xf] }
 0x1df   : > { %v1639_v52 = vmax.f32 %v1608_v39, %v1637_v46  ;;  %v5195_v39 = vld [vmem:[#allocation13 + $0x388] sm:$0xf] }
 0x1e0   : > { %v1633_v15 = vpop.f32.mrf.mxu3  ;;  %v1622_v62 = vpop.f32.mrf.mxu2  ;;  %v5196_v46 = vor.u32 %v6043_v8, %v5195_v39  ;;  %v5931_v39 = vld [vmem:[#allocation13 + $0x24] sm:$0xf0]  ;;  %v5927_v8 = vld [vmem:[#allocation13 + $0xc] sm:$0xf] }
 0x1e1   : > { %v1641_v60 = vpack.c.bf16 %v1639_v52, %v1639_v52  ;;  %v1634_v61 = vadd.f32 %v1633_v15, %v1621_v9  ;;  %v5200_v52 = vor.u32 %v6039_v47, %v5197_v48  ;;  %v5959_v9 = vld [vmem:[#allocation13 + $0x10c] sm:$0xf]  ;;  %v4752_v42 = vor.u32 %v5927_v8, %v4749_v41  ;;  %v5003_v48 = vld [vmem:[#allocation13 + $0x208] sm:$0xf]  ;;  %v5964_v41 = vld [vmem:[#allocation13 + $0x12c] sm:$0xf0] }
 0x1e2   : > { %v1609_v4 = vpop.f32.mrf.mxu1  ;;  %v4877_v15 = vld [vmem:[#allocation13 + $0x128] sm:$0xf0]  ;;  %v5040_v47 = vor.u32 %v5999_v44, %v5037_v45  ;;  %v5171_v45 = vld [vmem:[#allocation13 + $0x350] sm:$0xf] }
 0x1e3   : > { %v1638_v10 = vmul.f32 0.2, %v1634_v61  ;;  %1849 = vmatmul.bf16.vlgmr.msra.gmra.mxu0 %v1641_v60  ;;  %1875 = vmatmul.bf16.vlgmr.msra.gmra.mxu2 %v1641_v60  ;;  %v4880_v57 = vor.u32 %v5959_v9, %v4877_v15  ;;  %v6035_v60 = vld [vmem:[#allocation13 + $0x364] sm:$0xf0]  ;;  %v4844_v4 = vor.u32 %v5955_v1, %v4843_v59  ;;  %v1675_v9 = vld [vmem:[#allocation12] sm:$0x3] }
 0x1e4   : > { %2737 = vmatpush.bf16.msra.mxu0 %v4972_v23  ;;  %2763 = vmatpush.bf16.msra.mxu2 %v4976_v53  ;;  %v5164_v62 = vor.u32 %v6035_v60, %v5163_v58  ;;  %v6019_v23 = vld [vmem:[#allocation13 + $0x2e4] sm:$0xf0]  ;;  %v5988_v59 = vld [vmem:[#allocation13 + $0x1ec] sm:$0xf0] }
 0x1e5   : > { %v1640_v19 = vmax.f32 %v1634_v61, %v1638_v10  ;;  %v6031_v61 = vld [vmem:[#allocation13 + $0x34c] sm:$0xf]  ;;  %v4848_v10 = vor.u32 %v5951_v3, %v4845_v5  ;;  %v5100_v24 = vor.u32 %v6019_v23, %v5099_v22  ;;  %v5984_v3 = vld [vmem:[#allocation13 + $0x1d4] sm:$0xf]  ;;  %v6052_v22 = vld [vmem:[#allocation13 + $0x3ec] sm:$0xf0] }
 0x1e6   : > { %v5168_v54 = vor.u32 %v6031_v61, %v5165_v0 }
 0x1e7   : > { %v1642_v27 = vpack.c.bf16 %v1640_v19, %v1640_v19  ;;  %v4812_v19 = vor.u32 %v5947_v25, %v4811_v17  ;;  %v5980_v17 = vld [vmem:[#allocation13 + $0x1ac] sm:$0xf0]  ;;  %v5976_v25 = vld [vmem:[#allocation13 + $0x194] sm:$0xf] }
 0x1e8   : > { %v1635_v2 = vpop.f32.mrf.mxu3  ;;  %2738 = vmatpush.bf16.msra.mxu0 %v4940_v38  ;;  %2764 = vmatpush.bf16.msra.mxu2 %v4944_v40  ;;  %v4747_v38 = vld [vmem:[#allocation13 + $0x8] sm:$0xf] }
 0x1e9   : > { %1862 = vmatmul.bf16.vlgmr.msra.gmra.mxu1 %v1642_v27  ;;  %1888 = vmatmul.bf16.vlgmr.msra.gmra.mxu3 %v1642_v27  ;;  %v5101_v27 = vld [vmem:[#allocation13 + $0x2e8] sm:$0xf0]  ;;  %v4748_v40 = vor.u32 %v5931_v39, %v4747_v38 }
 0x1ea   : > { %2750 = vmatpush.bf16.msra.mxu1 %v5228_v35  ;;  %2776 = vmatpush.bf16.msra.mxu3 %v5232_v14  ;;  %v5104_v53 = vor.u32 %v6015_v26, %v5101_v27  ;;  %v4781_v2 = vld [vmem:[#allocation13 + $0x68] sm:$0xf0]  ;;  %v5068_v35 = vor.u32 %v6011_v33, %v5067_v32  ;;  %v6003_v14 = vld [vmem:[#allocation13 + $0x264] sm:$0xf0]  ;;  %v5237_v26 = vld [vmem:[#allocation13 + $0x3f0] sm:$0xf0]  ;;  %v4948_v27 = vor.u32 %v5980_v17, %v4947_v12 }
 0x1eb   : > { %v4784_v31 = vor.u32 %v5935_v29, %v4781_v2  ;;  %v5972_v29 = vld [vmem:[#allocation13 + $0x16c] sm:$0xf0]  ;;  %v4917_v2 = vld [vmem:[#allocation13 + $0x170] sm:$0xf0] }
 0x1ec   : > { %2739 = vmatpush.bf16.msra.mxu0 %v4908_v63  ;;  %2765 = vmatpush.bf16.msra.mxu2 %v4912_v49  ;;  %v5995_v63 = vld [vmem:[#allocation13 + $0x224] sm:$0xf0]  ;;  %v5203_v33 = vld [vmem:[#allocation13 + $0x390] sm:$0xf]  ;;  %v4916_v39 = vor.u32 %v5972_v29, %v4915_v56  ;;  %v5928_v29 = vld [vmem:[#allocation13 + $0x14] sm:$0xf] }
 0x1ed   : > { %v5004_v49 = vor.u32 %v5995_v63, %v5003_v48  ;;  %v5173_v48 = vld [vmem:[#allocation13 + $0x370] sm:$0xf0]  ;;  %v4787_v17 = vld [vmem:[#allocation13 + $0x50] sm:$0xf] }
 0x1ee   : > { %2751 = vmatpush.bf16.msra.mxu1 %v5196_v46  ;;  %2777 = vmatpush.bf16.msra.mxu3 %v5200_v52  ;;  %v5036_v46 = vor.u32 %v6003_v14, %v5035_v43  ;;  %v5008_v52 = vor.u32 %v5991_v50, %v5005_v51  ;;  %v4885_v43 = vld [vmem:[#allocation13 + $0x130] sm:$0xf0]  ;;  %v4851_v50 = vld [vmem:[#allocation13 + $0xd0] sm:$0xf] }
 0x1ef   : > { %v5956_v51 = vld [vmem:[#allocation13 + $0xec] sm:$0xf0] }
 0x1f0   : > { %2740 = vmatpush.bf16.msra.mxu0 %v4876_v55  ;;  %2766 = vmatpush.bf16.msra.mxu2 %v4880_v57  ;;  %v1677_v55 = vperm.slane %v1675_v9, 0  ;;  %v4755_v56 = vld [vmem:[#allocation13 + $0x10] sm:$0xf] }
 0x1f2   : > { %2752 = vmatpush.bf16.msra.mxu1 %v5164_v62  ;;  %2778 = vmatpush.bf16.msra.mxu3 %v5168_v54  ;;  %v1678_v62 = vperm.slane %v1675_v9, 1  ;;  %v4979_v54 = vld [vmem:[#allocation13 + $0x1d0] sm:$0xf]  ;;  %v4853_v9 = vld [vmem:[#allocation13 + $0xf0] sm:$0xf0] }
 0x1f4   : > { %2741 = vmatpush.bf16.msra.mxu0 %v4844_v4  ;;  %2767 = vmatpush.bf16.msra.mxu2 %v4848_v10  ;;  %v4981_v4 = vld [vmem:[#allocation13 + $0x1f0] sm:$0xf0]  ;;  %v4980_v10 = vor.u32 %v5988_v59, %v4979_v54  ;;  %v4819_v54 = vld [vmem:[#allocation13 + $0x90] sm:$0xf] }
 0x1f5   : > { %v5948_v59 = vld [vmem:[#allocation13 + $0xac] sm:$0xf0] }
 0x1f6   : > { %2753 = vmatpush.bf16.msra.mxu1 %v5132_v11  ;;  %2779 = vmatpush.bf16.msra.mxu3 %v5136_v16  ;;  %v4984_v11 = vor.u32 %v5984_v3, %v4981_v4  ;;  %v4821_v3 = vld [vmem:[#allocation13 + $0xb0] sm:$0xf0]  ;;  %v4820_v12 = vor.u32 %v5948_v59, %v4819_v54  ;;  %v5969_v54 = vld [vmem:[#allocation13 + $0x15c] sm:$0xf] }
 0x1f7   : > { %v4925_v59 = vld [vmem:[#allocation13 + $0x178] sm:$0xf0] }
 0x1f8   : > { %2742 = vmatpush.bf16.msra.mxu0 %v4812_v19  ;;  %2768 = vmatpush.bf16.msra.mxu2 %v4816_v21  ;;  %v5235_v21 = vld [vmem:[#allocation13 + $0x3d0] sm:$0xf] }
 0x1fa   : > { %2754 = vmatpush.bf16.msra.mxu1 %v5100_v24  ;;  %2780 = vmatpush.bf16.msra.mxu3 %v5104_v53  ;;  %v6048_v24 = vld [vmem:[#allocation13 + $0x3d4] sm:$0xf]  ;;  %v4952_v53 = vor.u32 %v5976_v25, %v4949_v18  ;;  %v5940_v25 = vld [vmem:[#allocation13 + $0x6c] sm:$0xf0] }
 0x1fb   : > { %v5240_v32 = vor.u32 %v6048_v24, %v5237_v26  ;;  %v5936_v18 = vld [vmem:[#allocation13 + $0x54] sm:$0xf] }
 0x1fc   : > { %2743 = vmatpush.bf16.msra.mxu0 %v4780_v30  ;;  %2769 = vmatpush.bf16.msra.mxu2 %v4784_v31  ;;  %v5968_v30 = vld [vmem:[#allocation13 + $0x154] sm:$0xf]  ;;  %v5236_v31 = vor.u32 %v6052_v22, %v5235_v21  ;;  %v5075_v22 = vld [vmem:[#allocation13 + $0x290] sm:$0xf] }
 0x1fd   : > { %v4920_v8 = vor.u32 %v5968_v30, %v4917_v2  ;;  %v6008_v24 = vld [vmem:[#allocation13 + $0x294] sm:$0xf]  ;;  %v4987_v2 = vld [vmem:[#allocation13 + $0x1d8] sm:$0xf] }
 0x1fe   : > { %2755 = vmatpush.bf16.msra.mxu1 %v5068_v35  ;;  %2781 = vmatpush.bf16.msra.mxu3 %v5072_v37  ;;  %v6044_v35 = vld [vmem:[#allocation13 + $0x3ac] sm:$0xf0]  ;;  %v5205_v37 = vld [vmem:[#allocation13 + $0x3b0] sm:$0xf0] }
 0x1ff   : > { %v5204_v14 = vor.u32 %v6044_v35, %v5203_v33  ;;  %v5208_v44 = vor.u32 %v6040_v36, %v5205_v37  ;;  %v5077_v26 = vld [vmem:[#allocation13 + $0x2b0] sm:$0xf0]  ;;  %v5985_v35 = vld [vmem:[#allocation13 + $0x1dc] sm:$0xf]  ;;  %v5043_v37 = vld [vmem:[#allocation13 + $0x250] sm:$0xf] }
 0x200   : > { %2744 = vmatpush.bf16.msra.mxu0 %v4748_v40  ;;  %2770 = vmatpush.bf16.msra.mxu2 %v4752_v42  ;;  %v4883_v40 = vld [vmem:[#allocation13 + $0x110] sm:$0xf]  ;;  %v5960_v42 = vld [vmem:[#allocation13 + $0x114] sm:$0xf]  ;;  %v5080_v33 = vor.u32 %v6008_v24, %v5077_v26  ;;  %v4989_v36 = vld [vmem:[#allocation13 + $0x1f8] sm:$0xf0] }
 0x201   : > { %v4884_v63 = vor.u32 %v5964_v41, %v4883_v40  ;;  %v4757_v30 = vld [vmem:[#allocation13 + $0x30] sm:$0xf0] }
 0x202   : > { %2756 = vmatpush.bf16.msra.mxu1 %v5036_v46  ;;  %2782 = vmatpush.bf16.msra.mxu3 %v5040_v47  ;;  %v6036_v46 = vld [vmem:[#allocation13 + $0x36c] sm:$0xf0]  ;;  %v6032_v47 = vld [vmem:[#allocation13 + $0x354] sm:$0xf]  ;;  %v4760_v41 = vor.u32 %v5928_v29, %v4757_v30 }
 0x206   : > { %2757 = vmatpush.bf16.msra.mxu1 %v5004_v49  ;;  %2783 = vmatpush.bf16.msra.mxu3 %v5008_v52  ;;  %v4888_v49 = vor.u32 %v5960_v42, %v4885_v43  ;;  %v5952_v52 = vld [vmem:[#allocation13 + $0xd4] sm:$0xf]  ;;  %v4992_v43 = vor.u32 %v5985_v35, %v4989_v36 }
 0x260   : > { %v1850_v15 = vpop.f32.mrf.mxu0 }
 0x261   : > { %v1851_v57 = vadd.f32 %v1850_v15, %v1677_v55  ;;  %v5172_v15 = vor.u32 %v6036_v46, %v5171_v45  ;;  %v5176_v55 = vor.u32 %v6032_v47, %v5173_v48  ;;  %v5977_v45 = vld [vmem:[#allocation13 + $0x19c] sm:$0xf] }
 0x262   : > { %v4957_v48 = vld [vmem:[#allocation13 + $0x1b8] sm:$0xf0] }
 0x266   : > { %v1863_v58 = vpop.f32.mrf.mxu1  ;;  %v1876_v60 = vpop.f32.mrf.mxu2 }
 0x267   : > { %v1864_v61 = vadd.f32 %v1863_v58, %v1851_v57  ;;  %v1877_v6 = vadd.f32 %v1876_v60, %v1678_v62  ;;  %v5139_v57 = vld [vmem:[#allocation13 + $0x310] sm:$0xf]  ;;  %v6024_v60 = vld [vmem:[#allocation13 + $0x314] sm:$0xf]  ;;  %v4852_v62 = vor.u32 %v5956_v51, %v4851_v50 }
 0x268   : > { %v1852_v0 = vpop.f32.mrf.mxu0  ;;  %v6028_v58 = vld [vmem:[#allocation13 + $0x32c] sm:$0xf0]  ;;  %v5992_v50 = vld [vmem:[#allocation13 + $0x214] sm:$0xf] }
 0x269   : > { %v1893_v1 = vmul.f32 0.2, %v1864_v61  ;;  %v4856_v0 = vor.u32 %v5952_v52, %v4853_v9  ;;  %v5140_v4 = vor.u32 %v6028_v58, %v5139_v57  ;;  %v5013_v51 = vld [vmem:[#allocation13 + $0x230] sm:$0xf0]  ;;  %v5243_v52 = vld [vmem:[#allocation13 + $0x3d8] sm:$0xf]  ;;  %v4960_v58 = vor.u32 %v5977_v45, %v4957_v48 }
 0x26a   : > { %v6053_v9 = vld [vmem:[#allocation13 + $0x3f4] sm:$0xf0] }
 0x26b   : > { %v1895_v5 = vmax.f32 %v1864_v61, %v1893_v1  ;;  %v5141_v61 = vld [vmem:[#allocation13 + $0x330] sm:$0xf0]  ;;  %v5941_v48 = vld [vmem:[#allocation13 + $0x74] sm:$0xf0] }
 0x26c   : > { %v1889_v7 = vpop.f32.mrf.mxu3  ;;  %v5944_v1 = vld [vmem:[#allocation13 + $0x94] sm:$0xf] }
 0x26d   : > { %v6999_v13 = vpack.c.bf16 %v1895_v5, %v1895_v5  ;;  %v1890_v16 = vadd.f32 %v1889_v7, %v1877_v6  ;;  %v5144_v5 = vor.u32 %v6024_v60, %v5141_v61  ;;  %v5107_v6 = vld [vmem:[#allocation13 + $0x2d0] sm:$0xf]  ;;  %v4923_v60 = vld [vmem:[#allocation13 + $0x158] sm:$0xf] }
 0x26e   : > { %v1865_v19 = vpop.f32.mrf.mxu1  ;;  %v1878_v20 = vpop.f32.mrf.mxu2  ;;  %v6020_v7 = vld [vmem:[#allocation13 + $0x2ec] sm:$0xf0] }
 0x26f   : > { %v1894_v23 = vmul.f32 0.2, %v1890_v16  ;;  %2693 = vmatmul.bf16.vlgmr.msrb.gmra.mxu0 %v6999_v13  ;;  %2719 = vmatmul.bf16.vlgmr.msrb.gmra.mxu2 %v6999_v13  ;;  %v4789_v19 = vld [vmem:[#allocation13 + $0x70] sm:$0xf0]  ;;  %v5108_v20 = vor.u32 %v6020_v7, %v5107_v6  ;;  %v6041_v6 = vld [vmem:[#allocation13 + $0x39c] sm:$0xf] }
 0x270   : > { %2789 = vmatpush.bf16.msrb.mxu0 %v4980_v10  ;;  %2815 = vmatpush.bf16.msrb.mxu2 %v4984_v11  ;;  %v6016_v10 = vld [vmem:[#allocation13 + $0x2d4] sm:$0xf]  ;;  %v5213_v7 = vld [vmem:[#allocation13 + $0x3b8] sm:$0xf0] }
 0x271   : > { %v1896_v28 = vmax.f32 %v1890_v16, %v1894_v23  ;;  %v5109_v11 = vld [vmem:[#allocation13 + $0x2f0] sm:$0xf0]  ;;  %v4824_v16 = vor.u32 %v5944_v1, %v4821_v3  ;;  %v6012_v23 = vld [vmem:[#allocation13 + $0x2ac] sm:$0xf0]  ;;  %v5244_v1 = vor.u32 %v6053_v9, %v5243_v52  ;;  %v5083_v52 = vld [vmem:[#allocation13 + $0x298] sm:$0xf] }
 0x272   : > { %v5112_v21 = vor.u32 %v6016_v10, %v5109_v11  ;;  %v4928_v11 = vor.u32 %v5969_v54, %v4925_v59  ;;  %v6013_v9 = vld [vmem:[#allocation13 + $0x2b4] sm:$0xf0] }
 0x273   : > { %v7003_v34 = vpack.c.bf16 %v1896_v28, %v1896_v28  ;;  %v5932_v28 = vld [vmem:[#allocation13 + $0x2c] sm:$0xf0]  ;;  %v5084_v54 = vor.u32 %v6013_v9, %v5083_v52  ;;  %v6061_v52 = vld [vmem:[#allocation16 + $0x34] sm:$0xf0]  ;;  %v5347_v9 = vld [vmem:[#allocation16 + $0xc0] sm:$0xf] }
 0x274   : > { %2790 = vmatpush.bf16.msrb.mxu0 %v4948_v27  ;;  %2816 = vmatpush.bf16.msrb.mxu2 %v4952_v53  ;;  %v1891_v38 = vpop.f32.mrf.mxu3  ;;  %v4788_v27 = vor.u32 %v5940_v25, %v4787_v17  ;;  %v4792_v53 = vor.u32 %v5936_v18, %v4789_v19  ;;  %v4756_v40 = vor.u32 %v5932_v28, %v4755_v56  ;;  %v5961_v17 = vld [vmem:[#allocation13 + $0x11c] sm:$0xf] }
 0x275   : > { %2706 = vmatmul.bf16.vlgmr.msrb.gmra.mxu1 %v7003_v34  ;;  %2732 = vmatmul.bf16.vlgmr.msrb.gmra.mxu3 %v7003_v34  ;;  %v6004_v38 = vld [vmem:[#allocation13 + $0x26c] sm:$0xf0]  ;;  %v4893_v25 = vld [vmem:[#allocation13 + $0x138] sm:$0xf0]  ;;  %v5216_v19 = vor.u32 %v6041_v6, %v5213_v7 }
 0x276   : > { %2802 = vmatpush.bf16.msrb.mxu1 %v5236_v31  ;;  %2828 = vmatpush.bf16.msrb.mxu3 %v5240_v32  ;;  %v5989_v31 = vld [vmem:[#allocation13 + $0x1f4] sm:$0xf0]  ;;  %v5076_v32 = vor.u32 %v6012_v23, %v5075_v22  ;;  %v5044_v46 = vor.u32 %v6004_v38, %v5043_v37  ;;  %v6033_v22 = vld [vmem:[#allocation13 + $0x35c] sm:$0xf]  ;;  %v4896_v26 = vor.u32 %v5961_v17, %v4893_v25  ;;  %v5299_v25 = vld [vmem:[#allocation16 + $0x60] sm:$0xf] }
 0x277   : > { %v4988_v42 = vor.u32 %v5989_v31, %v4987_v2  ;;  %v5181_v23 = vld [vmem:[#allocation13 + $0x378] sm:$0xf0]  ;;  %v5147_v2 = vld [vmem:[#allocation13 + $0x318] sm:$0xf] }
 0x278   : > { %2791 = vmatpush.bf16.msrb.mxu0 %v4916_v39  ;;  %2817 = vmatpush.bf16.msrb.mxu2 %v4920_v8  ;;  %v6000_v39 = vld [vmem:[#allocation13 + $0x254] sm:$0xf]  ;;  %v5953_v56 = vld [vmem:[#allocation13 + $0xdc] sm:$0xf]  ;;  %v5184_v30 = vor.u32 %v6033_v22, %v5181_v23  ;;  %v6029_v31 = vld [vmem:[#allocation13 + $0x334] sm:$0xf0] }
 0x279   : > { %v5045_v8 = vld [vmem:[#allocation13 + $0x270] sm:$0xf0]  ;;  %v4861_v28 = vld [vmem:[#allocation13 + $0xf8] sm:$0xf0]  ;;  %v4827_v37 = vld [vmem:[#allocation13 + $0x98] sm:$0xf] }
 0x27a   : > { %2803 = vmatpush.bf16.msrb.mxu1 %v5204_v14  ;;  %2829 = vmatpush.bf16.msrb.mxu3 %v5208_v44  ;;  %v4955_v14 = vld [vmem:[#allocation13 + $0x198] sm:$0xf]  ;;  %v5048_v47 = vor.u32 %v6000_v39, %v5045_v8  ;;  %v4864_v36 = vor.u32 %v5953_v56, %v4861_v28  ;;  %v5945_v39 = vld [vmem:[#allocation13 + $0x9c] sm:$0xf]  ;;  %v6101_v22 = vld [vmem:[#allocation16 + $0x174] sm:$0xf0] }
 0x27b   : > { %v5981_v44 = vld [vmem:[#allocation13 + $0x1b4] sm:$0xf0]  ;;  %v4829_v8 = vld [vmem:[#allocation13 + $0xb8] sm:$0xf0]  ;;  %v5427_v56 = vld [vmem:[#allocation16 + $0x160] sm:$0xf] }
 0x27c   : > { %2792 = vmatpush.bf16.msrb.mxu0 %v4884_v63  ;;  %2818 = vmatpush.bf16.msrb.mxu2 %v4888_v49  ;;  %v5011_v63 = vld [vmem:[#allocation13 + $0x210] sm:$0xf]  ;;  %v4956_v57 = vor.u32 %v5981_v44, %v4955_v14  ;;  %v5949_v38 = vld [vmem:[#allocation13 + $0xb4] sm:$0xf0]  ;;  %v6017_v14 = vld [vmem:[#allocation13 + $0x2dc] sm:$0xf] }
 0x27d   : > { %v5996_v49 = vld [vmem:[#allocation13 + $0x22c] sm:$0xf0]  ;;  %v5117_v44 = vld [vmem:[#allocation13 + $0x2f8] sm:$0xf0]  ;;  %v4828_v45 = vor.u32 %v5949_v38, %v4827_v37  ;;  %v5363_v37 = vld [vmem:[#allocation16 + $0xe0] sm:$0xf] }
 0x27e   : > { %2804 = vmatpush.bf16.msrb.mxu1 %v5172_v15  ;;  %2830 = vmatpush.bf16.msrb.mxu3 %v5176_v55  ;;  %v6049_v15 = vld [vmem:[#allocation13 + $0x3dc] sm:$0xf]  ;;  %v5012_v61 = vor.u32 %v5996_v49, %v5011_v63  ;;  %v6099_v28 = vld [vmem:[#allocation16 + $0x164] sm:$0xf0] }
 0x27f   : > { %2745 = vmatmul.bf16.vlgmr.msra.gmra.mxu0 %v6999_v13  ;;  %2771 = vmatmul.bf16.vlgmr.msra.gmra.mxu2 %v6999_v13  ;;  %v5245_v55 = vld [vmem:[#allocation13 + $0x3f8] sm:$0xf0]  ;;  %v6083_v38 = vld [vmem:[#allocation16 + $0xe4] sm:$0xf0] }
 0x280   : > { %2793 = vmatpush.bf16.msrb.mxu0 %v4852_v62  ;;  %2819 = vmatpush.bf16.msrb.mxu2 %v4856_v0  ;;  %v5016_v62 = vor.u32 %v5992_v50, %v5013_v51  ;;  %v5973_v0 = vld [vmem:[#allocation13 + $0x174] sm:$0xf0]  ;;  %v5248_v3 = vor.u32 %v6049_v15, %v5245_v55  ;;  %v5937_v63 = vld [vmem:[#allocation13 + $0x5c] sm:$0xf]  ;;  %v5120_v51 = vor.u32 %v6017_v14, %v5117_v44 }
 0x281   : > { %v4924_v10 = vor.u32 %v5973_v0, %v4923_v60  ;;  %v4797_v49 = vld [vmem:[#allocation13 + $0x78] sm:$0xf0]  ;;  %v4763_v60 = vld [vmem:[#allocation13 + $0x18] sm:$0xf]  ;;  %v5364_v44 = vor.u32 %v6083_v38, %v5363_v37 }
 0x282   : > { %2805 = vmatpush.bf16.msrb.mxu1 %v5140_v4  ;;  %2831 = vmatpush.bf16.msrb.mxu3 %v5144_v5  ;;  %v5211_v4 = vld [vmem:[#allocation13 + $0x398] sm:$0xf]  ;;  %v6009_v15 = vld [vmem:[#allocation13 + $0x29c] sm:$0xf] }
 0x283   : > { %v6045_v5 = vld [vmem:[#allocation13 + $0x3b4] sm:$0xf0]  ;;  %v5085_v55 = vld [vmem:[#allocation13 + $0x2b8] sm:$0xf0] }
 0x284   : > { %2794 = vmatpush.bf16.msrb.mxu0 %v4820_v12  ;;  %2820 = vmatpush.bf16.msrb.mxu2 %v4824_v16  ;;  %v4891_v12 = vld [vmem:[#allocation13 + $0x118] sm:$0xf]  ;;  %v5212_v18 = vor.u32 %v6045_v5, %v5211_v4  ;;  %v4765_v0 = vld [vmem:[#allocation13 + $0x38] sm:$0xf0]  ;;  %v5088_v59 = vor.u32 %v6009_v15, %v5085_v55  ;;  %v6069_v4 = vld [vmem:[#allocation16 + $0x74] sm:$0xf0] }
 0x285   : > { %2758 = vmatmul.bf16.vlgmr.msra.gmra.mxu1 %v7003_v34  ;;  %2784 = vmatmul.bf16.vlgmr.msra.gmra.mxu3 %v7003_v34  ;;  %v5965_v16 = vld [vmem:[#allocation13 + $0x134] sm:$0xf0]  ;;  %v6001_v6 = vld [vmem:[#allocation13 + $0x25c] sm:$0xf]  ;;  %v6079_v15 = vld [vmem:[#allocation16 + $0xc4] sm:$0xf0] }
 0x286   : > { %2806 = vmatpush.bf16.msrb.mxu1 %v5108_v20  ;;  %2832 = vmatpush.bf16.msrb.mxu3 %v5112_v21  ;;  %v5179_v20 = vld [vmem:[#allocation13 + $0x358] sm:$0xf]  ;;  %v4892_v24 = vor.u32 %v5965_v16, %v4891_v12  ;;  %v5053_v7 = vld [vmem:[#allocation13 + $0x278] sm:$0xf0] }
 0x287   : > { %v6037_v21 = vld [vmem:[#allocation13 + $0x374] sm:$0xf0]  ;;  %v5993_v23 = vld [vmem:[#allocation13 + $0x21c] sm:$0xf] }
 0x288   : > { %2795 = vmatpush.bf16.msrb.mxu0 %v4788_v27  ;;  %2821 = vmatpush.bf16.msrb.mxu2 %v4792_v53  ;;  %v4859_v27 = vld [vmem:[#allocation13 + $0xd8] sm:$0xf]  ;;  %v5180_v29 = vor.u32 %v6037_v21, %v5179_v20  ;;  %v6067_v20 = vld [vmem:[#allocation16 + $0x64] sm:$0xf0] }
 0x289   : > { %v5957_v53 = vld [vmem:[#allocation13 + $0xf4] sm:$0xf0] }
 0x28a   : > { %2807 = vmatpush.bf16.msrb.mxu1 %v5076_v32  ;;  %2833 = vmatpush.bf16.msrb.mxu3 %v5080_v33  ;;  %v6025_v32 = vld [vmem:[#allocation13 + $0x31c] sm:$0xf]  ;;  %v4860_v35 = vor.u32 %v5957_v53, %v4859_v27  ;;  %v6005_v5 = vld [vmem:[#allocation13 + $0x274] sm:$0xf0]  ;;  %v6085_v53 = vld [vmem:[#allocation16 + $0xf4] sm:$0xf0] }
 0x28b   : > { %v5149_v33 = vld [vmem:[#allocation13 + $0x338] sm:$0xf0]  ;;  %v5019_v12 = vld [vmem:[#allocation13 + $0x218] sm:$0xf] }
 0x28c   : > { %2796 = vmatpush.bf16.msrb.mxu0 %v4756_v40  ;;  %2822 = vmatpush.bf16.msrb.mxu2 %v4760_v41  ;;  %v5148_v40 = vor.u32 %v6029_v31, %v5147_v2  ;;  %v5152_v41 = vor.u32 %v6025_v32, %v5149_v33  ;;  %v5997_v16 = vld [vmem:[#allocation13 + $0x234] sm:$0xf0] }
 0x28d   : > { %v5435_v21 = vld [vmem:[#allocation16 + $0x170] sm:$0xf]  ;;  %v5020_v2 = vor.u32 %v5997_v16, %v5019_v12  ;;  %v6073_v16 = vld [vmem:[#allocation16 + $0x94] sm:$0xf0] }
 0x28e   : > { %2808 = vmatpush.bf16.msrb.mxu1 %v5044_v46  ;;  %2834 = vmatpush.bf16.msrb.mxu3 %v5048_v47  ;;  %v4832_v46 = vor.u32 %v5945_v39, %v4829_v8  ;;  %v4795_v47 = vld [vmem:[#allocation13 + $0x58] sm:$0xf]  ;;  %v5436_v27 = vor.u32 %v6101_v22, %v5435_v21  ;;  %v6117_v39 = vld [vmem:[#allocation16 + $0x1f4] sm:$0xf0]  ;;  %v5315_v21 = vld [vmem:[#allocation16 + $0x80] sm:$0xf] }
 0x28f   : > { %2797 = vmatmul.bf16.vlgmr.msrb.gmra.mxu0 %v6999_v13  ;;  %2823 = vmatmul.bf16.vlgmr.msrb.gmra.mxu2 %v6999_v13  ;;  %v5291_v33 = vld [vmem:[#allocation16 + $0x50] sm:$0xf]  ;;  %v6071_v22 = vld [vmem:[#allocation16 + $0x84] sm:$0xf0] }
 0x290   : > { %2841 = vmatpush.bf16.msra.mxu0 %v4988_v42  ;;  %2867 = vmatpush.bf16.msra.mxu2 %v4992_v43  ;;  %v5115_v42 = vld [vmem:[#allocation13 + $0x2d8] sm:$0xf] }
 0x291   : > { %v6021_v43 = vld [vmem:[#allocation13 + $0x2f4] sm:$0xf0] }
 0x292   : > { %2809 = vmatpush.bf16.msrb.mxu1 %v5012_v61  ;;  %2835 = vmatpush.bf16.msrb.mxu3 %v5016_v62  ;;  %v5116_v50 = vor.u32 %v6021_v43, %v5115_v42  ;;  %v5933_v61 = vld [vmem:[#allocation13 + $0x34] sm:$0xf0]  ;;  %v5929_v62 = vld [vmem:[#allocation13 + $0x1c] sm:$0xf]  ;;  %v5283_v43 = vld [vmem:[#allocation16 + $0x40] sm:$0xf] }
 0x293   : > { %v5323_v12 = vld [vmem:[#allocation16 + $0x90] sm:$0xf] }
 0x294   : > { %2842 = vmatpush.bf16.msra.mxu0 %v4956_v57  ;;  %2868 = vmatpush.bf16.msra.mxu2 %v4960_v58  ;;  %v4796_v57 = vor.u32 %v5941_v48, %v4795_v47  ;;  %v4800_v58 = vor.u32 %v5937_v63, %v4797_v49  ;;  %v5355_v47 = vld [vmem:[#allocation16 + $0xd0] sm:$0xf]  ;;  %v6081_v48 = vld [vmem:[#allocation16 + $0xd4] sm:$0xf0] }
 0x295   : > { %2810 = vmatmul.bf16.vlgmr.msrb.gmra.mxu1 %v7003_v34  ;;  %2836 = vmatmul.bf16.vlgmr.msrb.gmra.mxu3 %v7003_v34  ;;  %v5483_v38 = vld [vmem:[#allocation16 + $0x1d0] sm:$0xf] }
 0x296   : > { %2854 = vmatpush.bf16.msra.mxu1 %v5244_v1  ;;  %2880 = vmatpush.bf16.msra.mxu3 %v5248_v3  ;;  %v5051_v1 = vld [vmem:[#allocation13 + $0x258] sm:$0xf] }
 0x297   : > { %v5307_v3 = vld [vmem:[#allocation16 + $0x70] sm:$0xf] }
 0x298   : > { %2843 = vmatpush.bf16.msra.mxu0 %v4924_v10  ;;  %2869 = vmatpush.bf16.msra.mxu2 %v4928_v11  ;;  %v4764_v10 = vor.u32 %v5933_v61, %v4763_v60  ;;  %v4768_v11 = vor.u32 %v5929_v62, %v4765_v0  ;;  %v5308_v17 = vor.u32 %v6069_v4, %v5307_v3  ;;  %v6059_v60 = vld [vmem:[#allocation16 + $0x24] sm:$0xf0]  ;;  %v5339_v61 = vld [vmem:[#allocation16 + $0xb0] sm:$0xf]  ;;  %v6077_v62 = vld [vmem:[#allocation16 + $0xb4] sm:$0xf0] }
 0x299   : > { %v5340_v0 = vor.u32 %v6077_v62, %v5339_v61  ;;  %v6075_v3 = vld [vmem:[#allocation16 + $0xa4] sm:$0xf0]  ;;  %v6109_v61 = vld [vmem:[#allocation16 + $0x1b4] sm:$0xf0] }
 0x29a   : > { %2855 = vmatpush.bf16.msra.mxu1 %v5212_v18  ;;  %2881 = vmatpush.bf16.msra.mxu3 %v5216_v19  ;;  %v5052_v18 = vor.u32 %v6005_v5, %v5051_v1  ;;  %v5056_v19 = vor.u32 %v6001_v6, %v5053_v7  ;;  %v5331_v1 = vld [vmem:[#allocation16 + $0xa0] sm:$0xf]  ;;  %v6055_v7 = vld [vmem:[#allocation16 + $0x4] sm:$0xf0] }
 0x29b   : > { %v5332_v5 = vor.u32 %v6075_v3, %v5331_v1  ;;  %v5251_v6 = vld [vmem:[#allocation16] sm:$0xf] }
 0x29c   : > { %2844 = vmatpush.bf16.msra.mxu0 %v4892_v24  ;;  %2870 = vmatpush.bf16.msra.mxu2 %v4896_v26  ;;  %v5021_v24 = vld [vmem:[#allocation13 + $0x238] sm:$0xf0]  ;;  %v5371_v26 = vld [vmem:[#allocation16 + $0xf0] sm:$0xf] }
 0x29d   : > { %v5024_v31 = vor.u32 %v5993_v23, %v5021_v24  ;;  %v5372_v32 = vor.u32 %v6085_v53, %v5371_v26  ;;  %v5627_v23 = vld [vmem:[#allocation16 + $0x2f0] sm:$0xf]  ;;  %v6149_v24 = vld [vmem:[#allocation16 + $0x2f4] sm:$0xf0] }
 0x29e   : > { %2856 = vmatpush.bf16.msra.mxu1 %v5180_v29  ;;  %2882 = vmatpush.bf16.msra.mxu3 %v5184_v30  ;;  %v5300_v29 = vor.u32 %v6067_v20, %v5299_v25  ;;  %v5428_v30 = vor.u32 %v6099_v28, %v5427_v56  ;;  %v6131_v20 = vld [vmem:[#allocation16 + $0x264] sm:$0xf0]  ;;  %v5628_v53 = vor.u32 %v6149_v24, %v5627_v23  ;;  %v5547_v56 = vld [vmem:[#allocation16 + $0x250] sm:$0xf]  ;;  %v6129_v28 = vld [vmem:[#allocation16 + $0x254] sm:$0xf0] }
 0x29f   : > { %v5691_v23 = vld [vmem:[#allocation16 + $0x370] sm:$0xf]  ;;  %v6165_v24 = vld [vmem:[#allocation16 + $0x374] sm:$0xf0] }
 0x2a0   : > { %2845 = vmatpush.bf16.msra.mxu0 %v4860_v35  ;;  %2871 = vmatpush.bf16.msra.mxu2 %v4864_v36  ;;  %v6065_v35 = vld [vmem:[#allocation16 + $0x54] sm:$0xf0]  ;;  %v5499_v36 = vld [vmem:[#allocation16 + $0x1f0] sm:$0xf] }
 0x2a1   : > { %v5500_v8 = vor.u32 %v6117_v39, %v5499_v36  ;;  %v5292_v42 = vor.u32 %v6065_v35, %v5291_v33  ;;  %v5539_v35 = vld [vmem:[#allocation16 + $0x240] sm:$0xf]  ;;  %v6127_v36 = vld [vmem:[#allocation16 + $0x244] sm:$0xf0]  ;;  %v6113_v39 = vld [vmem:[#allocation16 + $0x1d4] sm:$0xf0] }
 0x2a2   : > { %2857 = vmatpush.bf16.msra.mxu1 %v5148_v40  ;;  %2883 = vmatpush.bf16.msra.mxu3 %v5152_v41  ;;  %v5419_v40 = vld [vmem:[#allocation16 + $0x150] sm:$0xf]  ;;  %v6097_v41 = vld [vmem:[#allocation16 + $0x154] sm:$0xf0] }
 0x2a3   : > { %v5420_v14 = vor.u32 %v6097_v41, %v5419_v40  ;;  %v5484_v40 = vor.u32 %v6113_v39, %v5483_v38  ;;  %v6145_v41 = vld [vmem:[#allocation16 + $0x2d4] sm:$0xf0]  ;;  %v5571_v38 = vld [vmem:[#allocation16 + $0x280] sm:$0xf]  ;;  %v6135_v39 = vld [vmem:[#allocation16 + $0x284] sm:$0xf0] }
 0x2a4   : > { %2846 = vmatpush.bf16.msra.mxu0 %v4828_v45  ;;  %2872 = vmatpush.bf16.msra.mxu2 %v4832_v46  ;;  %v5491_v45 = vld [vmem:[#allocation16 + $0x1e0] sm:$0xf]  ;;  %v6115_v46 = vld [vmem:[#allocation16 + $0x1e4] sm:$0xf0] }
 0x2a5   : > { %v5492_v63 = vor.u32 %v6115_v46, %v5491_v45  ;;  %v6125_v46 = vld [vmem:[#allocation16 + $0x234] sm:$0xf0] }
 0x2a6   : > { %2858 = vmatpush.bf16.msra.mxu1 %v5116_v50  ;;  %2884 = vmatpush.bf16.msra.mxu3 %v5120_v51  ;;  %v5356_v50 = vor.u32 %v6081_v48, %v5355_v47  ;;  %v5275_v51 = vld [vmem:[#allocation16 + $0x30] sm:$0xf]  ;;  %v5475_v47 = vld [vmem:[#allocation16 + $0x1c0] sm:$0xf]  ;;  %v6111_v48 = vld [vmem:[#allocation16 + $0x1c4] sm:$0xf0] }
 0x2a7   : > { %v5276_v55 = vor.u32 %v6061_v52, %v5275_v51  ;;  %v5395_v51 = vld [vmem:[#allocation16 + $0x120] sm:$0xf]  ;;  %v6091_v52 = vld [vmem:[#allocation16 + $0x124] sm:$0xf0] }
 0x2a8   : > { %2847 = vmatpush.bf16.msra.mxu0 %v4796_v57  ;;  %2873 = vmatpush.bf16.msra.mxu2 %v4800_v58  ;;  %v5348_v57 = vor.u32 %v6079_v15, %v5347_v9  ;;  %v5267_v58 = vld [vmem:[#allocation16 + $0x20] sm:$0xf]  ;;  %v5396_v15 = vor.u32 %v6091_v52, %v5395_v51  ;;  %v6177_v51 = vld [vmem:[#allocation16 + $0x3d4] sm:$0xf0] }
 0x2aa   : > { %2859 = vmatpush.bf16.msra.mxu1 %v5084_v54  ;;  %2885 = vmatpush.bf16.msra.mxu3 %v5088_v59  ;;  %v5259_v54 = vld [vmem:[#allocation16 + $0x10] sm:$0xf]  ;;  %v6057_v59 = vld [vmem:[#allocation16 + $0x14] sm:$0xf0] }
 0x2ab   : > { %v5260_v4 = vor.u32 %v6057_v59, %v5259_v54  ;;  %v5387_v54 = vld [vmem:[#allocation16 + $0x110] sm:$0xf]  ;;  %v6089_v59 = vld [vmem:[#allocation16 + $0x114] sm:$0xf0] }
 0x2ac   : > { %2848 = vmatpush.bf16.msra.mxu0 %v4764_v10  ;;  %2874 = vmatpush.bf16.msra.mxu2 %v4768_v11  ;;  %v5563_v10 = vld [vmem:[#allocation16 + $0x270] sm:$0xf]  ;;  %v6133_v11 = vld [vmem:[#allocation16 + $0x274] sm:$0xf0]  ;;  %v5388_v3 = vor.u32 %v6089_v59, %v5387_v54 }
 0x2ad   : > { %v5564_v25 = vor.u32 %v6133_v11, %v5563_v10  ;;  %v6107_v10 = vld [vmem:[#allocation16 + $0x1a4] sm:$0xf0] }
 0x2ae   : > { %2860 = vmatpush.bf16.msra.mxu1 %v5052_v18  ;;  %2886 = vmatpush.bf16.msra.mxu3 %v5056_v19  ;;  %v5324_v18 = vor.u32 %v6073_v16, %v5323_v12  ;;  %v5555_v19 = vld [vmem:[#allocation16 + $0x260] sm:$0xf]  ;;  %v6139_v16 = vld [vmem:[#allocation16 + $0x2a4] sm:$0xf0] }
 0x2af   : > { %2849 = vmatmul.bf16.vlgmr.msra.gmra.mxu0 %v6999_v13  ;;  %2875 = vmatmul.bf16.vlgmr.msra.gmra.mxu2 %v6999_v13  ;;  %v6063_v13 = vld [vmem:[#allocation16 + $0x44] sm:$0xf0]  ;;  %v5556_v26 = vor.u32 %v6131_v20, %v5555_v19  ;;  %v5587_v12 = vld [vmem:[#allocation16 + $0x2a0] sm:$0xf] }
 0x2b0   : > { %3691 = vmatpush.bf16.msrb.mxu0 %v5308_v17  ;;  %3717 = vmatpush.bf16.msrb.mxu2 %v5436_v27  ;;  %v5284_v49 = vor.u32 %v6063_v13, %v5283_v43  ;;  %v5252_v17 = vor.u32 %v6055_v7, %v5251_v6  ;;  %v5316_v27 = vor.u32 %v6071_v22, %v5315_v21  ;;  %v6093_v43 = vld [vmem:[#allocation16 + $0x134] sm:$0xf0]  ;;  %v5531_v13 = vld [vmem:[#allocation16 + $0x230] sm:$0xf]  ;;  %v5459_v7 = vld [vmem:[#allocation16 + $0x1a0] sm:$0xf] }
 0x2b1   : > { %v5532_v9 = vor.u32 %v6125_v46, %v5531_v13  ;;  %v6121_v6 = vld [vmem:[#allocation16 + $0x214] sm:$0xf0]  ;;  %v5460_v11 = vor.u32 %v6107_v10, %v5459_v7  ;;  %v5507_v20 = vld [vmem:[#allocation16 + $0x200] sm:$0xf]  ;;  %v6119_v21 = vld [vmem:[#allocation16 + $0x204] sm:$0xf0]  ;;  %v5588_v22 = vor.u32 %v6139_v16, %v5587_v12 }
 0x2b2   : > { %2861 = vmatpush.bf16.msra.mxu1 %v5020_v2  ;;  %2887 = vmatpush.bf16.msra.mxu3 %v5024_v31  ;;  %v5411_v2 = vld [vmem:[#allocation16 + $0x140] sm:$0xf]  ;;  %v6095_v31 = vld [vmem:[#allocation16 + $0x144] sm:$0xf0]  ;;  %v5643_v12 = vld [vmem:[#allocation16 + $0x310] sm:$0xf] }
 0x2b3   : > { %v5412_v33 = vor.u32 %v6095_v31, %v5411_v2  ;;  %v5683_v2 = vld [vmem:[#allocation16 + $0x360] sm:$0xf]  ;;  %v6163_v31 = vld [vmem:[#allocation16 + $0x364] sm:$0xf0]  ;;  %v6153_v16 = vld [vmem:[#allocation16 + $0x314] sm:$0xf0] }
 0x2b4   : > { %3692 = vmatpush.bf16.msrb.mxu0 %v5300_v29  ;;  %3718 = vmatpush.bf16.msrb.mxu2 %v5428_v30  ;;  %v5619_v29 = vld [vmem:[#allocation16 + $0x2e0] sm:$0xf]  ;;  %v6147_v30 = vld [vmem:[#allocation16 + $0x2e4] sm:$0xf0] }
 0x2b5   : > { %2862 = vmatmul.bf16.vlgmr.msra.gmra.mxu1 %v7003_v34  ;;  %2888 = vmatmul.bf16.vlgmr.msra.gmra.mxu3 %v7003_v34  ;;  %v5268_v34 = vor.u32 %v6059_v60, %v5267_v58  ;;  %v5620_v37 = vor.u32 %v6147_v30, %v5619_v29  ;;  %v6123_v58 = vld [vmem:[#allocation16 + $0x224] sm:$0xf0]  ;;  %v5467_v60 = vld [vmem:[#allocation16 + $0x1b0] sm:$0xf]  ;;  %v6137_v29 = vld [vmem:[#allocation16 + $0x294] sm:$0xf0]  ;;  %v5508_v30 = vor.u32 %v6119_v21, %v5507_v20 }
 0x2b6   : > { %3704 = vmatpush.bf16.msrb.mxu1 %v5372_v32  ;;  %3730 = vmatpush.bf16.msrb.mxu3 %v5500_v8  ;;  %v5548_v32 = vor.u32 %v6129_v28, %v5547_v56  ;;  %v5611_v8 = vld [vmem:[#allocation16 + $0x2d0] sm:$0xf]  ;;  %v5468_v62 = vor.u32 %v6109_v61, %v5467_v60  ;;  %v5747_v13 = vld [vmem:[#allocation16 + $0x3e0] sm:$0xf]  ;;  %v6175_v61 = vld [vmem:[#allocation16 + $0x3c4] sm:$0xf0] }
 0x2b7   : > { %v5612_v45 = vor.u32 %v6145_v41, %v5611_v8  ;;  %v5579_v28 = vld [vmem:[#allocation16 + $0x290] sm:$0xf]  ;;  %v5731_v60 = vld [vmem:[#allocation16 + $0x3c0] sm:$0xf]  ;;  %v6171_v21 = vld [vmem:[#allocation16 + $0x3a4] sm:$0xf0] }
 0x2b8   : > { %3693 = vmatpush.bf16.msrb.mxu0 %v5292_v42  ;;  %3719 = vmatpush.bf16.msrb.mxu2 %v5420_v14  ;;  %v5403_v42 = vld [vmem:[#allocation16 + $0x130] sm:$0xf]  ;;  %v5715_v20 = vld [vmem:[#allocation16 + $0x3a0] sm:$0xf] }
 0x2b9   : > { %v5404_v14 = vor.u32 %v6093_v43, %v5403_v42  ;;  %v5755_v8 = vld [vmem:[#allocation16 + $0x3f0] sm:$0xf]  ;;  %v5572_v43 = vor.u32 %v6135_v39, %v5571_v38  ;;  %v6084_v38 = vld [vmem:[#allocation16 + $0xf4] sm:$0xf]  ;;  %v5373_v39 = vld [vmem:[#allocation16 + $0xf8] sm:$0xf0] }
 0x2ba   : > { %3705 = vmatpush.bf16.msrb.mxu1 %v5364_v44  ;;  %3731 = vmatpush.bf16.msrb.mxu3 %v5492_v63  ;;  %v5540_v44 = vor.u32 %v6127_v36, %v5539_v35  ;;  %v5476_v63 = vor.u32 %v6111_v48, %v5475_v47  ;;  %v5443_v35 = vld [vmem:[#allocation16 + $0x180] sm:$0xf]  ;;  %v6103_v36 = vld [vmem:[#allocation16 + $0x184] sm:$0xf0]  ;;  %v5675_v42 = vld [vmem:[#allocation16 + $0x350] sm:$0xf] }
 0x2bb   : > { %v5667_v47 = vld [vmem:[#allocation16 + $0x340] sm:$0xf]  ;;  %v6159_v48 = vld [vmem:[#allocation16 + $0x344] sm:$0xf0] }
 0x2bc   : > { %3694 = vmatpush.bf16.msrb.mxu0 %v5284_v49  ;;  %3720 = vmatpush.bf16.msrb.mxu2 %v5412_v33  ;;  %v5603_v49 = vld [vmem:[#allocation16 + $0x2c0] sm:$0xf]  ;;  %v5684_v33 = vor.u32 %v6163_v31, %v5683_v2  ;;  %v5301_v2 = vld [vmem:[#allocation16 + $0x68] sm:$0xf0] }
 0x2be   : > { %3706 = vmatpush.bf16.msrb.mxu1 %v5356_v50  ;;  %3732 = vmatpush.bf16.msrb.mxu3 %v5484_v40  ;;  %v6143_v50 = vld [vmem:[#allocation16 + $0x2c4] sm:$0xf0]  ;;  %v6181_v40 = vld [vmem:[#allocation16 + $0x3f4] sm:$0xf0] }
 0x2bf   : > { %v5756_v41 = vor.u32 %v6181_v40, %v5755_v8 }
 0x2c0   : > { %3695 = vmatpush.bf16.msrb.mxu0 %v5276_v55  ;;  %3721 = vmatpush.bf16.msrb.mxu2 %v5404_v14  ;;  %v5523_v55 = vld [vmem:[#allocation16 + $0x220] sm:$0xf]  ;;  %v6161_v14 = vld [vmem:[#allocation16 + $0x354] sm:$0xf0] }
 0x2c1   : > { %v5524_v1 = vor.u32 %v6123_v58, %v5523_v55  ;;  %v6157_v55 = vld [vmem:[#allocation16 + $0x334] sm:$0xf0] }
 0x2c2   : > { %3707 = vmatpush.bf16.msrb.mxu1 %v5348_v57  ;;  %3733 = vmatpush.bf16.msrb.mxu3 %v5476_v63  ;;  %v5604_v57 = vor.u32 %v6143_v50, %v5603_v49  ;;  %v5668_v63 = vor.u32 %v6159_v48, %v5667_v47  ;;  %v7019_v49 = vld [vmem:[#allocation15] sm:$0xff]  ;;  %v5739_v50 = vld [vmem:[#allocation16 + $0x3d0] sm:$0xf]  ;;  %v6082_v48 = vld [vmem:[#allocation16 + $0xe4] sm:$0xf] }
 0x2c3   : > { %v5740_v52 = vor.u32 %v6177_v51, %v5739_v50  ;;  %v2030_v7 = vperm.slane %v7019_v49, 1 }
 0x2c4   : > { %3696 = vmatpush.bf16.msrb.mxu0 %v5268_v34  ;;  %3722 = vmatpush.bf16.msrb.mxu2 %v5396_v15  ;;  %v5595_v34 = vld [vmem:[#allocation16 + $0x2b0] sm:$0xf] }
 0x2c5   : > { %v5659_v15 = vld [vmem:[#allocation16 + $0x330] sm:$0xf] }
 0x2c6   : > { %3708 = vmatpush.bf16.msrb.mxu1 %v5340_v0  ;;  %v6141_v0 = vld [vmem:[#allocation16 + $0x2b4] sm:$0xf0]  ;;  %3734 = vmatpush.bf16.msrb.mxu3 %v5468_v62  ;;  %v5660_v58 = vor.u32 %v6157_v55, %v5659_v15  ;;  %v5732_v62 = vor.u32 %v6175_v61, %v5731_v60  ;;  %v6062_v15 = vld [vmem:[#allocation16 + $0x44] sm:$0xf]  ;;  %v5285_v55 = vld [vmem:[#allocation16 + $0x48] sm:$0xf0] }
 0x2c8   : > { %3697 = vmatpush.bf16.msrb.mxu0 %v5260_v4  ;;  %v5515_v4 = vld [vmem:[#allocation16 + $0x210] sm:$0xf]  ;;  %3723 = vmatpush.bf16.msrb.mxu2 %v5388_v3 }
 0x2ca   : > { %3709 = vmatpush.bf16.msrb.mxu1 %v5332_v5  ;;  %v5596_v5 = vor.u32 %v6141_v0, %v5595_v34  ;;  %3735 = vmatpush.bf16.msrb.mxu3 %v5460_v11  ;;  %v5651_v34 = vld [vmem:[#allocation16 + $0x320] sm:$0xf]  ;;  %v6155_v0 = vld [vmem:[#allocation16 + $0x324] sm:$0xf0] }
 0x2cb   : > { %v5652_v59 = vor.u32 %v6155_v0, %v5651_v34  ;;  %v6080_v34 = vld [vmem:[#allocation16 + $0xd4] sm:$0xf]  ;;  %v5357_v0 = vld [vmem:[#allocation16 + $0xd8] sm:$0xf0] }
 0x2cc   : > { %3698 = vmatpush.bf16.msrb.mxu0 %v5252_v17  ;;  %v5379_v17 = vld [vmem:[#allocation16 + $0x100] sm:$0xf] }
 0x2ce   : > { %3710 = vmatpush.bf16.msrb.mxu1 %v5324_v18  ;;  %v5516_v18 = vor.u32 %v6121_v6, %v5515_v4  ;;  %v5723_v4 = vld [vmem:[#allocation16 + $0x3b0] sm:$0xf] }
 0x2d0   : > { %3743 = vmatpush.bf16.msra.mxu0 %v5564_v25  ;;  %v6087_v25 = vld [vmem:[#allocation16 + $0x104] sm:$0xf0] }
 0x2d1   : > { %v5380_v19 = vor.u32 %v6087_v25, %v5379_v17  ;;  %v6068_v25 = vld [vmem:[#allocation16 + $0x74] sm:$0xf] }
 0x2d2   : > { %3711 = vmatpush.bf16.msrb.mxu1 %v5316_v27  ;;  %v5692_v27 = vor.u32 %v6165_v24, %v5691_v23  ;;  %v5716_v24 = vor.u32 %v6171_v21, %v5715_v20 }
 0x2d3   : > { %3724 = vmatpush.bf16.msrb.mxu2 %v5380_v19  ;;  %v5644_v19 = vor.u32 %v6153_v16, %v5643_v12  ;;  %v6078_v12 = vld [vmem:[#allocation16 + $0xc4] sm:$0xf]  ;;  %v5349_v16 = vld [vmem:[#allocation16 + $0xc8] sm:$0xf0] }
 0x2d4   : > { %3744 = vmatpush.bf16.msra.mxu0 %v5556_v26  ;;  %v5451_v26 = vld [vmem:[#allocation16 + $0x190] sm:$0xf] }
 0x2d6   : > { %3756 = vmatpush.bf16.msra.mxu1 %v5628_v53  ;;  %v6105_v53 = vld [vmem:[#allocation16 + $0x194] sm:$0xf0] }
 0x2d7   : > { %v5452_v56 = vor.u32 %v6105_v53, %v5451_v26  ;;  %3769 = vmatpush.bf16.msra.mxu2 %v5692_v27  ;;  %v5635_v53 = vld [vmem:[#allocation16 + $0x300] sm:$0xf] }
 0x2d8   : > { %3745 = vmatpush.bf16.msra.mxu0 %v5548_v32  ;;  %v5580_v32 = vor.u32 %v6137_v29, %v5579_v28 }
 0x2d9   : > { %3736 = vmatpush.bf16.msrb.mxu3 %v5452_v56  ;;  %v6151_v56 = vld [vmem:[#allocation16 + $0x304] sm:$0xf0] }
 0x2da   : > { %3757 = vmatpush.bf16.msra.mxu1 %v5620_v37  ;;  %v5444_v37 = vor.u32 %v6103_v36, %v5443_v35  ;;  %v5636_v31 = vor.u32 %v6151_v56, %v5635_v53  ;;  %v5707_v35 = vld [vmem:[#allocation16 + $0x390] sm:$0xf]  ;;  %v6169_v36 = vld [vmem:[#allocation16 + $0x394] sm:$0xf0]  ;;  %v5352_v53 = vor.u32 %v6078_v12, %v5349_v16  ;;  %v6076_v56 = vld [vmem:[#allocation16 + $0xb4] sm:$0xf] }
 0x2db   : > { %3770 = vmatpush.bf16.msra.mxu2 %v5684_v33  ;;  %v5708_v8 = vor.u32 %v6169_v36, %v5707_v35  ;;  %v6056_v35 = vld [vmem:[#allocation16 + $0x14] sm:$0xf]  ;;  %v6070_v16 = vld [vmem:[#allocation16 + $0x84] sm:$0xf] }
 0x2dc   : > { %3746 = vmatpush.bf16.msra.mxu0 %v5540_v44  ;;  %v5676_v44 = vor.u32 %v6161_v14, %v5675_v42  ;;  %v6064_v14 = vld [vmem:[#allocation16 + $0x54] sm:$0xf] }
 0x2dd   : > { %3737 = vmatpush.bf16.msrb.mxu3 %v5444_v37 }
 0x2de   : > { %3758 = vmatpush.bf16.msra.mxu1 %v5612_v45  ;;  %v6179_v45 = vld [vmem:[#allocation16 + $0x3e4] sm:$0xf0] }
 0x2df   : > { %v5748_v46 = vor.u32 %v6179_v45, %v5747_v13  ;;  %3771 = vmatpush.bf16.msra.mxu2 %v5676_v44  ;;  %v5293_v44 = vld [vmem:[#allocation16 + $0x58] sm:$0xf0]  ;;  %v5376_v13 = vor.u32 %v6084_v38, %v5373_v39  ;;  %v5699_v45 = vld [vmem:[#allocation16 + $0x380] sm:$0xf]  ;;  %v6096_v39 = vld [vmem:[#allocation16 + $0x154] sm:$0xf] }
 0x2e0   : > { %3747 = vmatpush.bf16.msra.mxu0 %v5532_v9  ;;  %v5261_v38 = vld [vmem:[#allocation16 + $0x18] sm:$0xf0] }
 0x2e1   : > { %3782 = vmatpush.bf16.msra.mxu3 %v5756_v41 }
 0x2e2   : > { %3759 = vmatpush.bf16.msra.mxu1 %v5604_v57  ;;  %v2029_v57 = vperm.slane %v7019_v49, 0 }
 0x2e3   : > { %3772 = vmatpush.bf16.msra.mxu2 %v5668_v63  ;;  %v5365_v63 = vld [vmem:[#allocation16 + $0xe8] sm:$0xf0] }
 0x2e4   : > { %3748 = vmatpush.bf16.msra.mxu0 %v5524_v1  ;;  %v5368_v60 = vor.u32 %v6082_v48, %v5365_v63  ;;  %v5264_v48 = vor.u32 %v6056_v35, %v5261_v38  ;;  %v6054_v63 = vld [vmem:[#allocation16 + $0x4] sm:$0xf] }
 0x2e5   : > { %3783 = vmatpush.bf16.msra.mxu3 %v5748_v46  ;;  %v6167_v46 = vld [vmem:[#allocation16 + $0x384] sm:$0xf0] }
 0x2e6   : > { %3760 = vmatpush.bf16.msra.mxu1 %v5596_v5  ;;  %v6173_v5 = vld [vmem:[#allocation16 + $0x3b4] sm:$0xf0]  ;;  %v5700_v50 = vor.u32 %v6167_v46, %v5699_v45  ;;  %v5493_v45 = vld [vmem:[#allocation16 + $0x1e8] sm:$0xf0] }
 0x2e7   : > { %3773 = vmatpush.bf16.msra.mxu2 %v5660_v58  ;;  %v5724_v10 = vor.u32 %v6173_v5, %v5723_v4  ;;  %v6100_v5 = vld [vmem:[#allocation16 + $0x174] sm:$0xf] }
 0x2e8   : > { %3749 = vmatpush.bf16.msra.mxu0 %v5516_v18  ;;  %v5309_v18 = vld [vmem:[#allocation16 + $0x78] sm:$0xf0] }
 0x2e9   : > { %3784 = vmatpush.bf16.msra.mxu3 %v5740_v52  ;;  %v5312_v27 = vor.u32 %v6068_v25, %v5309_v18  ;;  %v5296_v52 = vor.u32 %v6064_v14, %v5293_v44  ;;  %v6058_v18 = vld [vmem:[#allocation16 + $0x24] sm:$0xf]  ;;  %v5333_v44 = vld [vmem:[#allocation16 + $0xa8] sm:$0xf0] }
 0x2ea   : > { %3761 = vmatpush.bf16.msra.mxu1 %v5588_v22 }
 0x2eb   : > { %3774 = vmatpush.bf16.msra.mxu2 %v5652_v59  ;;  %v5288_v59 = vor.u32 %v6062_v15, %v5285_v55 }
 0x2ec   : > { %3750 = vmatpush.bf16.msra.mxu0 %v5508_v30  ;;  %v2694_v9 = vpop.f32.mrf.mxu0  ;;  %v6066_v30 = vld [vmem:[#allocation16 + $0x64] sm:$0xf] }
 0x2ed   : > { %v2695_v54 = vadd.f32 %v2694_v9, %v2029_v57  ;;  %3785 = vmatpush.bf16.msra.mxu3 %v5732_v62  ;;  %v5304_v41 = vor.u32 %v6066_v30, %v5301_v2  ;;  %v2032_v62 = vperm.slane %v7019_v49, 3  ;;  %v6116_v2 = vld [vmem:[#allocation16 + $0x1f4] sm:$0xf] }
 0x2ee   : > { %3762 = vmatpush.bf16.msra.mxu1 %v5580_v32 }
 0x2ef   : > { %3775 = vmatpush.bf16.msra.mxu2 %v5644_v19 }
 0x2f1   : > { %3786 = vmatpush.bf16.msra.mxu3 %v5724_v10 }
 0x2f2   : > { %3763 = vmatpush.bf16.msra.mxu1 %v5572_v43  ;;  %v2707_v1 = vpop.f32.mrf.mxu1  ;;  %v2720_v3 = vpop.f32.mrf.mxu2  ;;  %v2031_v43 = vperm.slane %v7019_v49, 2 }
 0x2f3   : > { %v2708_v6 = vadd.f32 %v2707_v1, %v2695_v54  ;;  %v2721_v23 = vadd.f32 %v2720_v3, %v2030_v7  ;;  %3776 = vmatpush.bf16.msra.mxu2 %v5636_v31  ;;  %v6060_v1 = vld [vmem:[#allocation16 + $0x34] sm:$0xf]  ;;  %v5277_v3 = vld [vmem:[#allocation16 + $0x38] sm:$0xf0]  ;;  %v5360_v7 = vor.u32 %v6080_v34, %v5357_v0 }
 0x2f4   : > { %v2696_v11 = vpop.f32.mrf.mxu0  ;;  %v5280_v25 = vor.u32 %v6060_v1, %v5277_v3  ;;  %v5501_v31 = vld [vmem:[#allocation16 + $0x1f8] sm:$0xf0]  ;;  %v6112_v34 = vld [vmem:[#allocation16 + $0x1d4] sm:$0xf] }
 0x2f5   : > { %v2893_v17 = vmul.f32 0.2, %v2708_v6  ;;  %3787 = vmatpush.bf16.msra.mxu3 %v5716_v24  ;;  %v5429_v24 = vld [vmem:[#allocation16 + $0x168] sm:$0xf0]  ;;  %v5485_v0 = vld [vmem:[#allocation16 + $0x1d8] sm:$0xf0] }
 0x2f7   : > { %v2901_v22 = vmax.f32 %v2708_v6, %v2893_v17  ;;  %v5437_v6 = vld [vmem:[#allocation16 + $0x178] sm:$0xf0] }
 0x2f8   : > { %v2733_v26 = vpop.f32.mrf.mxu3  ;;  %v5440_v19 = vor.u32 %v6100_v5, %v5437_v6  ;;  %v5565_v6 = vld [vmem:[#allocation16 + $0x278] sm:$0xf0] }
 0x2f9   : > { %v7023_v28 = vpack.c.bf16 %v2901_v22, %v2901_v22  ;;  %v2734_v29 = vadd.f32 %v2733_v26, %v2721_v23  ;;  %3788 = vmatpush.bf16.msra.mxu3 %v5708_v8  ;;  %v5269_v22 = vld [vmem:[#allocation16 + $0x28] sm:$0xf0]  ;;  %v6098_v23 = vld [vmem:[#allocation16 + $0x164] sm:$0xf]  ;;  %v5421_v8 = vld [vmem:[#allocation16 + $0x158] sm:$0xf0] }
 0x2fa   : > { %v2709_v32 = vpop.f32.mrf.mxu1  ;;  %v2722_v33 = vpop.f32.mrf.mxu2  ;;  %v5432_v36 = vor.u32 %v6098_v23, %v5429_v24 }
 0x2fb   : > { %v2894_v37 = vmul.f32 0.2, %v2734_v29  ;;  %3699 = vmatmul.bf16.vlgmr.msrb.gmra.mxu0 %v7023_v28  ;;  %v5272_v33 = vor.u32 %v6058_v18, %v5269_v22  ;;  %v6110_v18 = vld [vmem:[#allocation16 + $0x1c4] sm:$0xf] }
 0x2fc   : > { %v2746_v40 = vpop.f32.mrf.mxu0  ;;  %3795 = vmatpush.bf16.msrb.mxu0 %v5312_v27 }
 0x2fd   : > { %v2902_v42 = vmax.f32 %v2734_v29, %v2894_v37  ;;  %v2747_v9 = vadd.f32 %v2746_v40, %v2031_v43  ;;  %3789 = vmatpush.bf16.msra.mxu3 %v5700_v50  ;;  %v5341_v29 = vld [vmem:[#allocation16 + $0xb8] sm:$0xf0]  ;;  %v2033_v40 = vperm.slane %v7019_v49, 4  ;;  %v5504_v43 = vor.u32 %v6116_v2, %v5501_v31  ;;  %v6130_v31 = vld [vmem:[#allocation16 + $0x264] sm:$0xf] }
 0x2fe   : > { %v5424_v50 = vor.u32 %v6096_v39, %v5421_v8  ;;  %v6148_v39 = vld [vmem:[#allocation16 + $0x2f4] sm:$0xf]  ;;  %v5629_v8 = vld [vmem:[#allocation16 + $0x2f8] sm:$0xf0] }
 0x2ff   : > { %v7027_v47 = vpack.c.bf16 %v2902_v42, %v2902_v42  ;;  %v6074_v42 = vld [vmem:[#allocation16 + $0xa4] sm:$0xf] }
 0x300   : > { %v2735_v51 = vpop.f32.mrf.mxu3  ;;  %3796 = vmatpush.bf16.msrb.mxu0 %v5304_v41  ;;  %v5344_v41 = vor.u32 %v6076_v56, %v5341_v29  ;;  %v5397_v56 = vld [vmem:[#allocation16 + $0x128] sm:$0xf0] }
 0x301   : > { %3712 = vmatmul.bf16.vlgmr.msrb.gmra.mxu1 %v7027_v47  ;;  %v5253_v51 = vld [vmem:[#allocation16 + $0x8] sm:$0xf0] }
 0x302   : > { %v2759_v57 = vpop.f32.mrf.mxu1  ;;  %v2772_v58 = vpop.f32.mrf.mxu2  ;;  %3808 = vmatpush.bf16.msrb.mxu1 %v5376_v13  ;;  %v6114_v13 = vld [vmem:[#allocation16 + $0x1e4] sm:$0xf]  ;;  %v5256_v3 = vor.u32 %v6054_v63, %v5253_v51 }
 0x303   : > { %v2760_v61 = vadd.f32 %v2759_v57, %v2747_v9  ;;  %v2773_v11 = vadd.f32 %v2772_v58, %v2032_v62  ;;  %v5413_v9 = vld [vmem:[#allocation16 + $0x148] sm:$0xf0]  ;;  %v5336_v57 = vor.u32 %v6074_v42, %v5333_v44  ;;  %v6072_v58 = vld [vmem:[#allocation16 + $0x94] sm:$0xf]  ;;  %v5325_v62 = vld [vmem:[#allocation16 + $0x98] sm:$0xf0] }
 0x304   : > { %v2748_v54 = vpop.f32.mrf.mxu0  ;;  %3797 = vmatpush.bf16.msrb.mxu0 %v5296_v52  ;;  %v6094_v52 = vld [vmem:[#allocation16 + $0x144] sm:$0xf]  ;;  %v5328_v12 = vor.u32 %v6072_v58, %v5325_v62  ;;  %v6088_v42 = vld [vmem:[#allocation16 + $0x114] sm:$0xf]  ;;  %v5541_v62 = vld [vmem:[#allocation16 + $0x248] sm:$0xf0] }
 0x305   : > { %v2895_v4 = vmul.f32 0.2, %v2760_v61  ;;  %v5416_v5 = vor.u32 %v6094_v52, %v5413_v9  ;;  %v6106_v63 = vld [vmem:[#allocation16 + $0x1a4] sm:$0xf]  ;;  %v5621_v9 = vld [vmem:[#allocation16 + $0x2e8] sm:$0xf0] }
 0x306   : > { %3809 = vmatpush.bf16.msrb.mxu1 %v5368_v60  ;;  %v5496_v60 = vor.u32 %v6114_v13, %v5493_v45  ;;  %v6128_v13 = vld [vmem:[#allocation16 + $0x254] sm:$0xf]  ;;  %v5549_v45 = vld [vmem:[#allocation16 + $0x258] sm:$0xf0]  ;;  %v6146_v52 = vld [vmem:[#allocation16 + $0x2e4] sm:$0xf] }
 0x307   : > { %v2903_v10 = vmax.f32 %v2760_v61, %v2895_v4  ;;  %v6132_v4 = vld [vmem:[#allocation16 + $0x274] sm:$0xf]  ;;  %v6086_v58 = vld [vmem:[#allocation16 + $0x104] sm:$0xf] }
 0x308   : > { %v2785_v17 = vpop.f32.mrf.mxu3  ;;  %3798 = vmatpush.bf16.msrb.mxu0 %v5288_v59  ;;  %v2034_v59 = vperm.slane %v7019_v49, 5 }
 0x309   : > { %v7031_v20 = vpack.c.bf16 %v2903_v10, %v2903_v10  ;;  %v2786_v21 = vadd.f32 %v2785_v17, %v2773_v11  ;;  %v5405_v10 = vld [vmem:[#allocation16 + $0x138] sm:$0xf0]  ;;  %v5317_v17 = vld [vmem:[#allocation16 + $0x88] sm:$0xf0] }
 0x30a   : > { %v2761_v26 = vpop.f32.mrf.mxu1  ;;  %v2774_v27 = vpop.f32.mrf.mxu2  ;;  %3810 = vmatpush.bf16.msrb.mxu1 %v5360_v7  ;;  %v6092_v7 = vld [vmem:[#allocation16 + $0x134] sm:$0xf] }
 0x30b   : > { %v2896_v30 = vmul.f32 0.2, %v2786_v21  ;;  %3725 = vmatmul.bf16.vlgmr.msrb.gmra.mxu2 %v7031_v20  ;;  %v5408_v23 = vor.u32 %v6092_v7, %v5405_v10  ;;  %v5568_v26 = vor.u32 %v6132_v4, %v5565_v6  ;;  %v5320_v27 = vor.u32 %v6070_v16, %v5317_v17  ;;  %v6124_v6 = vld [vmem:[#allocation16 + $0x234] sm:$0xf]  ;;  %v5533_v7 = vld [vmem:[#allocation16 + $0x238] sm:$0xf0] }
 0x30c   : > { %v2798_v32 = vpop.f32.mrf.mxu0  ;;  %3799 = vmatpush.bf16.msrb.mxu0 %v5280_v25  ;;  %3821 = vmatpush.bf16.msrb.mxu2 %v5440_v19  ;;  %v5488_v25 = vor.u32 %v6112_v34, %v5485_v0  ;;  %v5477_v19 = vld [vmem:[#allocation16 + $0x1c8] sm:$0xf0]  ;;  %v5624_v0 = vor.u32 %v6146_v52, %v5621_v9  ;;  %v6142_v17 = vld [vmem:[#allocation16 + $0x2c4] sm:$0xf] }
 0x30d   : > { %v2904_v37 = vmax.f32 %v2786_v21, %v2896_v30  ;;  %v2799_v15 = vadd.f32 %v2798_v32, %v2033_v40  ;;  %v5557_v32 = vld [vmem:[#allocation16 + $0x268] sm:$0xf0] }
 0x30e   : > { %3811 = vmatpush.bf16.msrb.mxu1 %v5352_v53  ;;  %v6090_v53 = vld [vmem:[#allocation16 + $0x124] sm:$0xf]  ;;  %v5445_v16 = vld [vmem:[#allocation16 + $0x188] sm:$0xf0] }
 0x30f   : > { %v7035_v14 = vpack.c.bf16 %v2904_v37, %v2904_v37  ;;  %v5469_v37 = vld [vmem:[#allocation16 + $0x1b8] sm:$0xf0]  ;;  %v5400_v40 = vor.u32 %v6090_v53, %v5397_v56 }
 0x310   : > { %v2787_v46 = vpop.f32.mrf.mxu3  ;;  %3800 = vmatpush.bf16.msrb.mxu0 %v5272_v33  ;;  %3822 = vmatpush.bf16.msrb.mxu2 %v5432_v36  ;;  %v5480_v33 = vor.u32 %v6110_v18, %v5477_v19  ;;  %v6108_v36 = vld [vmem:[#allocation16 + $0x1b4] sm:$0xf]  ;;  %v5536_v19 = vor.u32 %v6124_v6, %v5533_v7  ;;  %v5597_v53 = vld [vmem:[#allocation16 + $0x2b8] sm:$0xf0] }
 0x311   : > { %3738 = vmatmul.bf16.vlgmr.msrb.gmra.mxu3 %v7035_v14  ;;  %v5472_v46 = vor.u32 %v6108_v36, %v5469_v37  ;;  %v2036_v37 = vperm.slane %v7019_v49, 7 }
 0x312   : > { %v2824_v55 = vpop.f32.mrf.mxu2  ;;  %3812 = vmatpush.bf16.msrb.mxu1 %v5344_v41  ;;  %3834 = vmatpush.bf16.msrb.mxu3 %v5504_v43  ;;  %v2811_v61 = vpop.f32.mrf.mxu1  ;;  %v5560_v41 = vor.u32 %v6130_v31, %v5557_v32  ;;  %v5389_v43 = vld [vmem:[#allocation16 + $0x118] sm:$0xf0] }
 0x313   : > { %v2812_v54 = vadd.f32 %v2811_v61, %v2799_v15  ;;  %v2825_v22 = vadd.f32 %v2824_v55, %v2034_v59  ;;  %v5392_v15 = vor.u32 %v6088_v42, %v5389_v43  ;;  %v6126_v61 = vld [vmem:[#allocation16 + $0x244] sm:$0xf]  ;;  %v5453_v59 = vld [vmem:[#allocation16 + $0x198] sm:$0xf0]  ;;  %v6164_v43 = vld [vmem:[#allocation16 + $0x374] sm:$0xf] }
 0x314   : > { %v2800_v1 = vpop.f32.mrf.mxu0  ;;  %3801 = vmatpush.bf16.msrb.mxu0 %v5264_v48  ;;  %3823 = vmatpush.bf16.msrb.mxu2 %v5424_v50  ;;  %v5632_v48 = vor.u32 %v6148_v39, %v5629_v8  ;;  %v5461_v50 = vld [vmem:[#allocation16 + $0x1a8] sm:$0xf0]  ;;  %v5517_v31 = vld [vmem:[#allocation16 + $0x218] sm:$0xf0] }
 0x315   : > { %v2897_v11 = vmul.f32 0.2, %v2812_v54  ;;  %v5464_v34 = vor.u32 %v6106_v63, %v5461_v50  ;;  %v6144_v1 = vld [vmem:[#allocation16 + $0x2d4] sm:$0xf]  ;;  %v5589_v39 = vld [vmem:[#allocation16 + $0x2a8] sm:$0xf0] }
 0x316   : > { %3813 = vmatpush.bf16.msrb.mxu1 %v5336_v57  ;;  %3835 = vmatpush.bf16.msrb.mxu3 %v5496_v60  ;;  %v5552_v57 = vor.u32 %v6128_v13, %v5549_v45  ;;  %v5381_v60 = vld [vmem:[#allocation16 + $0x108] sm:$0xf0]  ;;  %v5581_v63 = vld [vmem:[#allocation16 + $0x298] sm:$0xf0] }
 0x317   : > { %v2905_v21 = vmax.f32 %v2812_v54, %v2897_v11  ;;  %v6104_v54 = vld [vmem:[#allocation16 + $0x194] sm:$0xf]  ;;  %v5384_v4 = vor.u32 %v6086_v58, %v5381_v60 }
 0x318   : > { %3802 = vmatpush.bf16.msrb.mxu0 %v5256_v3  ;;  %3824 = vmatpush.bf16.msrb.mxu2 %v5416_v5  ;;  %v2837_v24 = vpop.f32.mrf.mxu3  ;;  %v5613_v3 = vld [vmem:[#allocation16 + $0x2d8] sm:$0xf0]  ;;  %v5544_v5 = vor.u32 %v6126_v61, %v5541_v62  ;;  %v5456_v10 = vor.u32 %v6104_v54, %v5453_v59  ;;  %v6134_v61 = vld [vmem:[#allocation16 + $0x284] sm:$0xf]  ;;  %v5573_v62 = vld [vmem:[#allocation16 + $0x288] sm:$0xf0] }
 0x319   : > { %v7039_v29 = vpack.c.bf16 %v2905_v21, %v2905_v21  ;;  %v2838_v30 = vadd.f32 %v2837_v24, %v2825_v22  ;;  %v5616_v11 = vor.u32 %v6144_v1, %v5613_v3  ;;  %v2035_v21 = vperm.slane %v7019_v49, 6  ;;  %v6122_v22 = vld [vmem:[#allocation16 + $0x224] sm:$0xf]  ;;  %v5757_v54 = vld [vmem:[#allocation16 + $0x3f8] sm:$0xf0] }
 0x31a   : > { %v2826_v2 = vpop.f32.mrf.mxu2  ;;  %3814 = vmatpush.bf16.msrb.mxu1 %v5328_v12  ;;  %3836 = vmatpush.bf16.msrb.mxu3 %v5488_v25  ;;  %v2813_v35 = vpop.f32.mrf.mxu1  ;;  %v6102_v12 = vld [vmem:[#allocation16 + $0x184] sm:$0xf]  ;;  %v5605_v25 = vld [vmem:[#allocation16 + $0x2c8] sm:$0xf0]  ;;  %v6160_v3 = vld [vmem:[#allocation16 + $0x354] sm:$0xf] }
 0x31b   : > { %v2898_v38 = vmul.f32 0.2, %v2838_v30  ;;  %3751 = vmatmul.bf16.vlgmr.msra.gmra.mxu0 %v7039_v29  ;;  %v5448_v24 = vor.u32 %v6102_v12, %v5445_v16  ;;  %v6120_v2 = vld [vmem:[#allocation16 + $0x214] sm:$0xf] }
 0x31c   : > { %3825 = vmatpush.bf16.msrb.mxu2 %v5408_v23  ;;  %3847 = vmatpush.bf16.msra.mxu0 %v5568_v26  ;;  %v5525_v23 = vld [vmem:[#allocation16 + $0x228] sm:$0xf0]  ;;  %v5608_v26 = vor.u32 %v6142_v17, %v5605_v25  ;;  %v6158_v17 = vld [vmem:[#allocation16 + $0x344] sm:$0xf] }
 0x31d   : > { %v2906_v44 = vmax.f32 %v2838_v30, %v2898_v38  ;;  %v5528_v56 = vor.u32 %v6122_v22, %v5525_v23  ;;  %v6138_v38 = vld [vmem:[#allocation16 + $0x2a4] sm:$0xf]  ;;  %v5669_v25 = vld [vmem:[#allocation16 + $0x348] sm:$0xf0]  ;;  %v6156_v23 = vld [vmem:[#allocation16 + $0x334] sm:$0xf] }
 0x31e   : > { %3815 = vmatpush.bf16.msrb.mxu1 %v5320_v27  ;;  %3837 = vmatpush.bf16.msrb.mxu3 %v5480_v33  ;;  %v6140_v27 = vld [vmem:[#allocation16 + $0x2b4] sm:$0xf]  ;;  %v5592_v13 = vor.u32 %v6138_v38, %v5589_v39  ;;  %v5672_v22 = vor.u32 %v6158_v17, %v5669_v25  ;;  %v5717_v38 = vld [vmem:[#allocation16 + $0x3a8] sm:$0xf0] }
 0x31f   : > { %v7042_v51 = vpack.c.bf16 %v2906_v44, %v2906_v44  ;;  %v5600_v35 = vor.u32 %v6140_v27, %v5597_v53  ;;  %v5693_v44 = vld [vmem:[#allocation16 + $0x378] sm:$0xf0]  ;;  %v5733_v27 = vld [vmem:[#allocation16 + $0x3c8] sm:$0xf0] }
 0x320   : > { %3826 = vmatpush.bf16.msrb.mxu2 %v5400_v40  ;;  %v2839_v55 = vpop.f32.mrf.mxu3  ;;  %3848 = vmatpush.bf16.msra.mxu0 %v5560_v41  ;;  %v6118_v40 = vld [vmem:[#allocation16 + $0x204] sm:$0xf]  ;;  %v5509_v41 = vld [vmem:[#allocation16 + $0x208] sm:$0xf0]  ;;  %v5696_v52 = vor.u32 %v6164_v43, %v5693_v44 }
 0x321   : > { %3764 = vmatmul.bf16.vlgmr.msra.gmra.mxu1 %v7042_v51  ;;  %v5512_v49 = vor.u32 %v6118_v40, %v5509_v41  ;;  %v6162_v55 = vld [vmem:[#allocation16 + $0x364] sm:$0xf]  ;;  %v6168_v41 = vld [vmem:[#allocation16 + $0x394] sm:$0xf] }
 0x322   : > { %3838 = vmatpush.bf16.msrb.mxu3 %v5472_v46  ;;  %3860 = vmatpush.bf16.msra.mxu1 %v5632_v48  ;;  %v6136_v48 = vld [vmem:[#allocation16 + $0x294] sm:$0xf]  ;;  %v6166_v44 = vld [vmem:[#allocation16 + $0x384] sm:$0xf] }
 0x324   : > { %3827 = vmatpush.bf16.msrb.mxu2 %v5392_v15  ;;  %3849 = vmatpush.bf16.msra.mxu0 %v5552_v57  ;;  %v5685_v57 = vld [vmem:[#allocation16 + $0x368] sm:$0xf0] }
 0x325   : > { %v5688_v59 = vor.u32 %v6162_v55, %v5685_v57 }
 0x326   : > { %3839 = vmatpush.bf16.msrb.mxu3 %v5464_v34  ;;  %3861 = vmatpush.bf16.msra.mxu1 %v5624_v0  ;;  %v6180_v0 = vld [vmem:[#allocation16 + $0x3f4] sm:$0xf] }
 0x327   : > { %v5760_v6 = vor.u32 %v6180_v0, %v5757_v54 }
 0x328   : > { %3828 = vmatpush.bf16.msrb.mxu2 %v5384_v4  ;;  %3850 = vmatpush.bf16.msra.mxu0 %v5544_v5  ;;  %v5677_v4 = vld [vmem:[#allocation16 + $0x358] sm:$0xf0]  ;;  %v5576_v5 = vor.u32 %v6134_v61, %v5573_v62 }
 0x329   : > { %v5680_v16 = vor.u32 %v6160_v3, %v5677_v4 }
 0x32a   : > { %3840 = vmatpush.bf16.msrb.mxu3 %v5456_v10  ;;  %3862 = vmatpush.bf16.msra.mxu1 %v5616_v11  ;;  %v6178_v10 = vld [vmem:[#allocation16 + $0x3e4] sm:$0xf]  ;;  %v5749_v11 = vld [vmem:[#allocation16 + $0x3e8] sm:$0xf0] }
 0x32b   : > { %3803 = vmatmul.bf16.vlgmr.msrb.gmra.mxu0 %v7023_v28  ;;  %v5520_v28 = vor.u32 %v6120_v2, %v5517_v31  ;;  %v6172_v31 = vld [vmem:[#allocation16 + $0x3b4] sm:$0xf] }
 0x32c   : > { %v2850_v18 = vpop.f32.mrf.mxu0  ;;  %3851 = vmatpush.bf16.msra.mxu0 %v5536_v19  ;;  %v6176_v19 = vld [vmem:[#allocation16 + $0x3d4] sm:$0xf] }
 0x32d   : > { %v2851_v30 = vadd.f32 %v2850_v18, %v2035_v21  ;;  %v5752_v18 = vor.u32 %v6178_v10, %v5749_v11  ;;  %v5741_v21 = vld [vmem:[#allocation16 + $0x3d8] sm:$0xf0] }
 0x32e   : > { %3841 = vmatpush.bf16.msrb.mxu3 %v5448_v24  ;;  %3863 = vmatpush.bf16.msra.mxu1 %v5608_v26  ;;  %v5661_v24 = vld [vmem:[#allocation16 + $0x338] sm:$0xf0]  ;;  %v6174_v26 = vld [vmem:[#allocation16 + $0x3c4] sm:$0xf] }
 0x32f   : > { %v5664_v53 = vor.u32 %v6156_v23, %v5661_v24  ;;  %v5736_v2 = vor.u32 %v6174_v26, %v5733_v27 }
 0x330   : > { %3852 = vmatpush.bf16.msra.mxu0 %v5528_v56  ;;  %v6154_v56 = vld [vmem:[#allocation16 + $0x324] sm:$0xf] }
 0x331   : > { %3816 = vmatmul.bf16.vlgmr.msrb.gmra.mxu1 %v7027_v47  ;;  %v5584_v47 = vor.u32 %v6136_v48, %v5581_v63 }
 0x332   : > { %v2863_v32 = vpop.f32.mrf.mxu1  ;;  %v2876_v33 = vpop.f32.mrf.mxu2  ;;  %3864 = vmatpush.bf16.msra.mxu1 %v5600_v35  ;;  %v6152_v35 = vld [vmem:[#allocation16 + $0x314] sm:$0xf] }
 0x333   : > { %v2864_v36 = vadd.f32 %v2863_v32, %v2851_v30  ;;  %v2877_v46 = vadd.f32 %v2876_v33, %v2036_v37  ;;  %v5653_v30 = vld [vmem:[#allocation16 + $0x328] sm:$0xf0]  ;;  %v5725_v32 = vld [vmem:[#allocation16 + $0x3b8] sm:$0xf0]  ;;  %v6170_v37 = vld [vmem:[#allocation16 + $0x3a4] sm:$0xf] }
 0x334   : > { %v2852_v8 = vpop.f32.mrf.mxu0  ;;  %3853 = vmatpush.bf16.msra.mxu0 %v5520_v28  ;;  %v5656_v33 = vor.u32 %v6154_v56, %v5653_v30  ;;  %v5637_v28 = vld [vmem:[#allocation16 + $0x308] sm:$0xf0]  ;;  %v5720_v40 = vor.u32 %v6170_v37, %v5717_v38 }
 0x335   : > { %v2899_v42 = vmul.f32 0.2, %v2864_v36  ;;  %v6150_v8 = vld [vmem:[#allocation16 + $0x304] sm:$0xf] }
 0x336   : > { %3865 = vmatpush.bf16.msra.mxu1 %v5592_v13  ;;  %v5701_v13 = vld [vmem:[#allocation16 + $0x388] sm:$0xf0] }
 0x337   : > { %v2907_v45 = vmax.f32 %v2864_v36, %v2899_v42  ;;  %v5728_v36 = vor.u32 %v6172_v31, %v5725_v32  ;;  %v5640_v42 = vor.u32 %v6150_v8, %v5637_v28 }
 0x338   : > { %v2889_v50 = vpop.f32.mrf.mxu3  ;;  %3854 = vmatpush.bf16.msra.mxu0 %v5512_v49 }
 0x339   : > { %v7049_v9 = vpack.c.bf16 %v2907_v45, %v2907_v45  ;;  %v2890_v15 = vadd.f32 %v2889_v50, %v2877_v46  ;;  %v5704_v45 = vor.u32 %v6166_v44, %v5701_v13 }
 0x33a   : > { %v2865_v58 = vpop.f32.mrf.mxu1  ;;  %v2878_v60 = vpop.f32.mrf.mxu2  ;;  %3866 = vmatpush.bf16.msra.mxu1 %v5584_v47 }
 0x33b   : > { %v2900_v34 = vmul.f32 0.2, %v2890_v15  ;;  %3777 = vmatmul.bf16.vlgmr.msra.gmra.mxu2 %v7049_v9  ;;  %3855 = vmatmul.bf16.vlgmr.msra.gmra.mxu0 %v7039_v29  ;;  %v5744_v29 = vor.u32 %v6176_v19, %v5741_v21 }
 0x33c   : > { %3873 = vmatpush.bf16.msra.mxu2 %v5696_v52 }
 0x33d   : > { %v2908_v1 = vmax.f32 %v2890_v15, %v2900_v34 }
 0x33e   : > { %3867 = vmatpush.bf16.msra.mxu1 %v5576_v5 }
 0x33f   : > { %v2916_v7 = vpack.c.bf16 %v2908_v1, %v2908_v1 }
 0x340   : > { %v2891_v12 = vpop.f32.mrf.mxu3  ;;  %3874 = vmatpush.bf16.msra.mxu2 %v5688_v59 }
 0x341   : > { %3790 = vmatmul.bf16.vlgmr.msra.gmra.mxu3 %v2916_v7  ;;  %3868 = vmatmul.bf16.vlgmr.msra.gmra.mxu1 %v7042_v51  ;;  %v5645_v51 = vld [vmem:[#allocation16 + $0x318] sm:$0xf0] }
 0x342   : > { %3886 = vmatpush.bf16.msra.mxu3 %v5760_v6  ;;  %v5648_v39 = vor.u32 %v6152_v35, %v5645_v51 }
 0x344   : > { %3875 = vmatpush.bf16.msra.mxu2 %v5680_v16 }
 0x346   : > { %3887 = vmatpush.bf16.msra.mxu3 %v5752_v18 }
 0x348   : > { %3876 = vmatpush.bf16.msra.mxu2 %v5672_v22 }
 0x34a   : > { %3888 = vmatpush.bf16.msra.mxu3 %v5744_v29 }
 0x34b   : > { %3829 = vmatmul.bf16.vlgmr.msrb.gmra.mxu2 %v7031_v20  ;;  %v5709_v20 = vld [vmem:[#allocation16 + $0x398] sm:$0xf0] }
 0x34c   : > { %3877 = vmatpush.bf16.msra.mxu2 %v5664_v53  ;;  %v5712_v43 = vor.u32 %v6168_v41, %v5709_v20 }
 0x34e   : > { %3889 = vmatpush.bf16.msra.mxu3 %v5736_v2 }
 0x350   : > { %3878 = vmatpush.bf16.msra.mxu2 %v5656_v33 }
 0x351   : > { %3842 = vmatmul.bf16.vlgmr.msrb.gmra.mxu3 %v7035_v14 }
 0x352   : > { %3890 = vmatpush.bf16.msra.mxu3 %v5728_v36 }
 0x354   : > { %3879 = vmatpush.bf16.msra.mxu2 %v5648_v39 }
 0x356   : > { %3891 = vmatpush.bf16.msra.mxu3 %v5720_v40 }
 0x358   : > { %3880 = vmatpush.bf16.msra.mxu2 %v5640_v42 }
 0x35a   : > { %3892 = vmatpush.bf16.msra.mxu3 %v5712_v43 }
 0x35b   : > { %3881 = vmatmul.bf16.vlgmr.msra.gmra.mxu2 %v7049_v9  ;;  %v3045_v9 = vld [vmem:[%s7112_s3] sm:$0x3] }
 0x35c   : > { %v3047_v62 = vperm.slane %v3045_v9, 0  ;;  %v3048_v22 = vperm.slane %v3045_v9, 1 }
 0x35e   : > { %3893 = vmatpush.bf16.msra.mxu3 %v5704_v45 }
 0x361   : > { %3894 = vmatmul.bf16.vlgmr.msra.gmra.mxu3 %v2916_v7 }
 0x378   : > { %v3700_v14 = vpop.f32.mrf.mxu0 }
 0x379   : > { %v3701_v0 = vadd.f32 %v3700_v14, %v3047_v62 }
 0x37e   : > { %v3713_v46 = vpop.f32.mrf.mxu1 }
 0x37f   : > { %v3714_v54 = vadd.f32 %v3713_v46, %v3701_v0 }
 0x380   : > { %v3702_v48 = vpop.f32.mrf.mxu0 }
 0x386   : > { %v3715_v63 = vpop.f32.mrf.mxu1 }
 0x38e   : > { %v3726_v50 = vpop.f32.mrf.mxu2 }
 0x38f   : > { %v3727_v1 = vadd.f32 %v3726_v50, %v3714_v54 }
 0x394   : > { %v3739_v49 = vpop.f32.mrf.mxu3 }
 0x395   : > { %v3740_v4 = vadd.f32 %v3739_v49, %v3727_v1 }
 0x396   : > { %v3728_v52 = vpop.f32.mrf.mxu2 }
 0x398   : > { %v3752_v15 = vpop.f32.mrf.mxu0 }
 0x399   : > { %v3753_v6 = vadd.f32 %v3752_v15, %v3740_v4 }
 0x39c   : > { %v3741_v55 = vpop.f32.mrf.mxu3 }
 0x39e   : > { %v3765_v57 = vpop.f32.mrf.mxu1 }
 0x39f   : > { %v3766_v7 = vadd.f32 %v3765_v57, %v3753_v6 }
 0x3a0   : > { %v3754_v58 = vpop.f32.mrf.mxu0 }
 0x3a6   : > { %v3767_v60 = vpop.f32.mrf.mxu1 }
 0x3a8   : > { %v3804_v47 = vpop.f32.mrf.mxu0 }
 0x3a9   : > { %v3805_v23 = vadd.f32 %v3804_v47, %v3048_v22 }
 0x3ae   : > { %v3817_v61 = vpop.f32.mrf.mxu1 }
 0x3af   : > { %v3818_v29 = vadd.f32 %v3817_v61, %v3805_v23 }
 0x3b0   : > { %v3806_v34 = vpop.f32.mrf.mxu0 }
 0x3b6   : > { %v3819_v59 = vpop.f32.mrf.mxu1 }
 0x3b8   : > { %v3856_v3 = vpop.f32.mrf.mxu0 }
 0x3be   : > { %v3778_v5 = vpop.f32.mrf.mxu2  ;;  %v3869_v10 = vpop.f32.mrf.mxu1 }
 0x3bf   : > { %v3779_v11 = vadd.f32 %v3778_v5, %v3766_v7 }
 0x3c0   : > { %v3858_v16 = vpop.f32.mrf.mxu0 }
 0x3c4   : > { %v3791_v12 = vpop.f32.mrf.mxu3 }
 0x3c5   : > { %v3792_v17 = vadd.f32 %v3791_v12, %v3779_v11 }
 0x3c6   : > { %v3780_v25 = vpop.f32.mrf.mxu2  ;;  %v3871_v18 = vpop.f32.mrf.mxu1 }
 0x3c7   : > { %3899 = vst [vmem:[%s628_s19] sm:$0xff] %v3792_v17 }
 0x3cc   : > { %v3793_v19 = vpop.f32.mrf.mxu3 }
 0x3ce   : > { %v3830_v21 = vpop.f32.mrf.mxu2 }
 0x3cf   : > { %v3831_v27 = vadd.f32 %v3830_v21, %v3818_v29 }
 0x3d4   : > { %v3843_v24 = vpop.f32.mrf.mxu3 }
 0x3d5   : > { %v3844_v53 = vadd.f32 %v3843_v24, %v3831_v27 }
 0x3d6   : > { %v3832_v26 = vpop.f32.mrf.mxu2 }
 0x3d7   : > { %v3857_v30 = vadd.f32 %v3856_v3, %v3844_v53 }
 0x3d9   : > { %v3870_v31 = vadd.f32 %v3869_v10, %v3857_v30 }
 0x3dc   : > { %v3845_v56 = vpop.f32.mrf.mxu3 }
 0x3de   : > { %v3882_v2 = vpop.f32.mrf.mxu2 }
 0x3df   : > { %v3883_v32 = vadd.f32 %v3882_v2, %v3870_v31 }
 0x3e4   : > { %v3895_v33 = vpop.f32.mrf.mxu3 }
 0x3e5   : > { %v3896_v35 = vadd.f32 %v3895_v33, %v3883_v32 }
 0x3e6   : > { %v3884_v51 = vpop.f32.mrf.mxu2 }
 0x3e7   : > { %3900 = vst [vmem:[%s628_s19 + $0x8] sm:$0xff] %v3896_v35 }
 0x3ec   : > { %v3897_v36 = vpop.f32.mrf.mxu3 }
 0x3ed PF: > { %p30_p3 = scmp.ge.s32.totalorder %s6847_s24, 4   ;;  %s7114_s25 = smov %s6661_s26 }
 0x3ee   : > { %s7115_s26 = smov %s6665_s27  ;;  %s7116_s27 = smov %s6859_s23 }
 0x3ef   : > { %s7117_s28 = smov %s6847_s24  ;;  %32 = sbr.rel (!%p30_p3) target bundleno = 19 (0x13), region = 157 }
 0x3f4   :  { %3922 = vsyncpa [#allocation3], 1 }
 0x3f5   :  { %3924 = vsyncpa [#allocation3 + $0x1], 1 }
 0x3f6   :  { %3925 = vsyncpa [#allocation5], 1 }
 0x3f7   :  { %3927 = vsyncpa [#allocation5 + $0x1], 1 }
 0x3f8   :  { %3928 = vsyncpa [#allocation8], 1 }
 0x3f9   :  { %3929 = vsyncpa [#allocation11], 1 }
 0x3fa   :  { %3930 = vsyncpa [#allocation14], 1 }
 0x3fb   :  { %3931 = vsyncpa [#allocation17], 1 }

</bundles_post_ra>
